<compile_context>
chip_gen: v7x
topology: tpu7x:2x2x1
jax: 0.10.0
libtpu: 0.0.40
codegen_flags: <defaults>
</compile_context>

<pallas_src>
import functools

import jax
import jax.numpy as jnp
from jax.experimental import pallas as pl
from jax.experimental.pallas import tpu as pltpu


_FC_OUT_ORDER = ("d1", "d2", "z1_mu", "z1_sigma", "z2_mu", "z2_sigma",
                 "z3_mu", "z3_sigma", "z1", "z2", "z3", "train3", "train2")
_HID_WIDE = frozenset({"d1", "d2", "train3", "train2"})


def _fc_out_layout(hid, lad):
    layout, off = {}, 0
    for name in _FC_OUT_ORDER:
        w = hid if name in _HID_WIDE else lad
        layout[name] = (off, w)
        off += w
    padded = ((off + 127) // 128) * 128
    return layout, padded


def _full_spec(a):
    return pl.BlockSpec(a.shape, lambda i, _nd=a.ndim: (0,) * _nd)


# ----------------------------------------------------------------------------
# The single fused kernel
# ----------------------------------------------------------------------------
def _vladder_kernel(xp_ref, eps_ref, wconv_ref, whl_ref, whid_ref, wlad_ref,
                    wcat_ref, ball_ref, ofc_ref, odec_ref,
                    e2_scr, hl_scr, g1_scr, *, m):
    B, S = m["B"], m["S"]
    C, c1, c2 = m["C"], m["c1"], m["c2"]
    hid, lad, flat = m["hid"], m["lad"], m["flat"]
    boff, hid_off, conv_rows = m["boff"], m["hid_off"], m["conv_rows"]
    f32 = jnp.float32

    relu = lambda v: jnp.maximum(v, 0.0)
    softplus = lambda v: jnp.maximum(v, 0.0) + jnp.log(1.0 + jnp.exp(-jnp.abs(v)))

    def bias(name, width, extra=0):
        o = boff[name] + extra
        return ball_ref[:, o:o + width]            # (1, width), broadcast over rows

    def conv_w(name):
        r0, nr, nc = conv_rows[name]
        return wconv_ref[r0:r0 + nr, 0:nc]

    def hid_lin(x, name, act=None):
        o, w = hid_off[name]
        y = jnp.dot(x, whid_ref[:, o:o + w], preferred_element_type=f32)
        y = y + bias("hid", w, o)
        return relu(y) if act == "relu" else y

    # -------- encoder conv stack: hidden + ladder branch fused into 2 GEMMs --------
    xp = xp_ref[...]                                               # (S*B, 16*C)
    e1 = relu(jnp.dot(xp, conv_w("enc_w1"), preferred_element_type=f32)
              + bias("enc_b1", 8 * c1))
    e2 = relu(jnp.dot(e1, conv_w("enc_w2"), preferred_element_type=f32)
              + bias("enc_b2", 2 * c2))                            # (S*B, 2*c2)
    e2_scr[...] = e2

    # fold conv rows (spatial, batch) into FC lanes:  hl = [hflat | lflat], (B, 2*flat)
    for s in range(S):
        blk = e2_scr[s * B:(s + 1) * B, :]
        hl_scr[:, s * c2:(s + 1) * c2] = blk[:, 0:c2]
        hl_scr[:, flat + s * c2:flat + (s + 1) * c2] = blk[:, c2:2 * c2]
    hl = hl_scr[...]

    # -------- encoder FC:  d1 / z1 heads from one block-diagonal GEMM --------
    y = jnp.dot(hl, whl_ref[...], preferred_element_type=f32) + bias("hl", hid + 2 * lad)
    d1 = relu(y[:, 0:hid])
    z1_mu = y[:, hid:hid + lad]
    z1_sigma = softplus(y[:, hid + lad:hid + 2 * lad])

    hl2 = hid_lin(d1, "h2l2_lin1", "relu")                         # [h2_lin1 | l2_lin1]
    h2a, l2a = hl2[:, 0:hid], hl2[:, hid:2 * hid]
    h2b = hid_lin(h2a, "h2_lin2", "relu")
    d2 = hid_lin(h2b, "h2_lin3", "relu")
    l2b = hid_lin(l2a, "l2_lin2", "relu")
    heads2 = hid_lin(l2b, "l2_heads")                              # [l2_mu | l2_sigma]
    z2_mu = heads2[:, 0:lad]
    z2_sigma = softplus(heads2[:, lad:2 * lad])

    l3a = hid_lin(d2, "l3_lin1", "relu")
    l3b = hid_lin(l3a, "l3_lin2", "relu")
    heads3 = hid_lin(l3b, "l3_heads")                              # [l3_mu | l3_sigma]
    z3_mu = heads3[:, 0:lad]
    z3_sigma = softplus(heads3[:, lad:2 * lad])

    # -------- reparametrization (fused epilogue, eps supplied from outside) --------
    eps = eps_ref[...]
    z1 = z1_mu + z1_sigma * eps[:, 0:lad]
    z2 = z2_mu + z2_sigma * eps[:, lad:2 * lad]
    z3 = z3_mu + z3_sigma * eps[:, 2 * lad:3 * lad]

    # -------- generative FC stack --------
    zcat = jnp.concatenate([z3, z2, z1], axis=1)                   # (B, 3*lad)
    yl = jnp.dot(zcat, wlad_ref[...], preferred_element_type=f32) + bias("lad", 3 * hid)
    t3a = relu(yl[:, 0:hid])                                       # g3_lin1(z3), relu
    z2p = yl[:, hid:2 * hid]                                       # g2_init(z2)
    z1p = yl[:, 2 * hid:3 * hid]                                   # g1_init(z1)

    t3b = hid_lin(t3a, "g3_lin2", "relu")
    train3 = hid_lin(t3b, "g3_lin3")

    cat2 = jnp.concatenate([train3, z2p], axis=1)                  # (B, 2*hid)
    t2a = relu(jnp.dot(cat2, wcat_ref[:, 0:hid], preferred_element_type=f32)
               + bias("cat", hid))
    t2b = hid_lin(t2a, "g2_lin2", "relu")
    train2 = hid_lin(t2b, "g2_lin3")

    cat1 = jnp.concatenate([train2, z1p], axis=1)                  # (B, 2*hid)
    g1flat = relu(jnp.dot(cat1, wcat_ref[:, hid:hid + flat], preferred_element_type=f32)
                  + bias("cat", flat, hid))                        # (B, flat), (s, c2) order

    # -------- FC output slab: single lane-dense, 128-multiple store --------
    vals = {"d1": d1, "d2": d2, "z1_mu": z1_mu, "z1_sigma": z1_sigma,
            "z2_mu": z2_mu, "z2_sigma": z2_sigma, "z3_mu": z3_mu, "z3_sigma": z3_sigma,
            "z1": z1, "z2": z2, "z3": z3, "train3": train3, "train2": train2}
    fc_cat = jnp.concatenate([vals[n] for n in _FC_OUT_ORDER], axis=1)
    pad = ofc_ref.shape[1] - fc_cat.shape[1]
    if pad:
        fc_cat = jnp.concatenate([fc_cat, jnp.zeros((B, pad), f32)], axis=1)
    ofc_ref[...] = fc_cat

    # -------- decoder deconv stack + sigmoid read-out --------
    for s in range(S):
        g1_scr[s * B:(s + 1) * B, :] = g1flat[:, s * c2:(s + 1) * c2]
    g = g1_scr[...]                                                # (S*B, c2)
    u = relu(jnp.dot(g, conv_w("dec_w2"), preferred_element_type=f32)
             + bias("dec_b2", 4 * c1))                             # (S*B, 4*c1)
    t1 = jnp.dot(u, conv_w("dec_w1"), preferred_element_type=f32) + bias("dec_b1", 16 * C)
    out = 1.0 / (1.0 + jnp.exp(-t1))                               # sigmoid read-out (EUP)
    odec_ref[...] = jnp.concatenate([t1, out], axis=1)             # (S*B, 32*C) lane-dense


# ----------------------------------------------------------------------------
# Forward wrapper (one pallas_call, boundary transposes only)
# ----------------------------------------------------------------------------
def vladder_forward(packed, x, eps1, eps2, eps3, meta):
    B, C, H, W = x.shape
    h4, w4, S = meta["h4"], meta["w4"], meta["S"]
    c1, c2 = meta["c1"], meta["c2"]
    hid, lad, flat = meta["hid"], meta["lad"], meta["flat"]

    # Pack NCHW input into the (S*B, 16*C) patch layout consumed by the conv GEMMs:
    # rows = (i4, j4, b); cols = (di, dj, pi, pj, c); pixel i = 4*i4 + 2*di + pi.
    xp = x.astype(jnp.float32).reshape(B, C, h4, 2, 2, w4, 2, 2)
    xp = xp.transpose(2, 5, 0, 3, 6, 4, 7, 1).reshape(S * B, 16 * C)
    eps = jnp.concatenate([eps1, eps2, eps3], axis=1).astype(jnp.float32)

    layout, fc_width = _fc_out_layout(hid, lad)
    m = dict(meta)
    m["B"] = B

    args = (xp, eps, packed["wconv"], packed["whl"], packed["whid"],
            packed["wlad"], packed["wcat"], packed["ball"])
    out_shapes = (jax.ShapeDtypeStruct((B, fc_width), jnp.float32),
                  jax.ShapeDtypeStruct((S * B, 2 * 16 * C), jnp.float32))

    flops = (2 * S * B * ((16 * C) * (8 * c1) + (8 * c1) * (2 * c2)
                          + c2 * (4 * c1) + (4 * c1) * (16 * C))
             + 2 * B * ((2 * flat) * (hid + 2 * lad)
                        + hid * int(packed["whid"].shape[1])
                        + (3 * lad) * (3 * hid)
                        + (2 * hid) * (hid + flat)))
    out_elems = B * fc_width + S * B * 2 * 16 * C
    bytes_accessed = 4 * (sum(int(a.size) for a in args) + out_elems)
    transcendentals = S * B * 16 * C + 12 * B * lad

    ofc, odec = pl.pallas_call(
        functools.partial(_vladder_kernel, m=m),
        out_shape=out_shapes,
        grid=(1,),
        in_specs=[_full_spec(a) for a in args],
        out_specs=(pl.BlockSpec((B, fc_width), lambda i: (0, 0)),
                   pl.BlockSpec((S * B, 2 * 16 * C), lambda i: (0, 0))),
        scratch_shapes=[pltpu.VMEM((S * B, 2 * c2), jnp.float32),
                        pltpu.VMEM((B, 2 * flat), jnp.float32),
                        pltpu.VMEM((S * B, c2), jnp.float32)],
        compiler_params=pltpu.CompilerParams(dimension_semantics=("arbitrary",)),
        cost_estimate=pl.CostEstimate(flops=int(flops),
                                      transcendentals=int(transcendentals),
                                      bytes_accessed=int(bytes_accessed)),
    )(*args)

    out = {name: ofc[:, o:o + w] for name, (o, w) in layout.items()}

    def unpack(slab):     # (S*B, 16*C) packed slab -> NCHW (single external transpose)
        y = slab.reshape(h4, w4, B, 2, 2, 2, 2, C)
        return y.transpose(2, 7, 0, 3, 5, 1, 4, 6).reshape(B, C, H, W)

    out["train1"] = unpack(odec[:, 0:16 * C])
    out["out"] = unpack(odec[:, 16 * C:2 * 16 * C])
    return out


# ----------------------------------------------------------------------------
# Deterministic parameter init (torch-style uniform +-1/sqrt(fan_in))
# ----------------------------------------------------------------------------
def _init_linear(key, fan_in, fan_out):
    k1, k2 = jax.random.split(key)
    bound = 1.0 / jnp.sqrt(fan_in)
    return {"w": jax.random.uniform(k1, (fan_in, fan_out), jnp.float32, -bound, bound),
            "b": jax.random.uniform(k2, (fan_out,), jnp.float32, -bound, bound)}


def _init_conv(key, cin, cout):
    k1, k2 = jax.random.split(key)
    bound = 1.0 / jnp.sqrt(cin * 4)
    return {"w": jax.random.uniform(k1, (cout, cin, 2, 2), jnp.float32, -bound, bound),
            "b": jax.random.uniform(k2, (cout,), jnp.float32, -bound, bound)}


def _init_deconv(key, cin, cout):
    k1, k2 = jax.random.split(key)
    bound = 1.0 / jnp.sqrt(cin * 4)
    return {"w": jax.random.uniform(k1, (cin, cout, 2, 2), jnp.float32, -bound, bound),
            "b": jax.random.uniform(k2, (cout,), jnp.float32, -bound, bound)}


def make_params(key, cfg):
    keys = iter(jax.random.split(key, 64))
    C, H, W = cfg["in_ch"], cfg["H"], cfg["W"]
    hid, lad = cfg["hidden_dim"], cfg["ladder_dim"]
    c1, c2 = cfg["conv_ch1"], cfg["conv_ch2"]
    flat = c2 * (H // 4) * (W // 4)
    p = {}
    p["h1_conv1"] = _init_conv(next(keys), C, c1)
    p["h1_conv2"] = _init_conv(next(keys), c1, c2)
    p["h1_lin"] = _init_linear(next(keys), flat, hid)
    p["l1_conv1"] = _init_conv(next(keys), C, c1)
    p["l1_conv2"] = _init_conv(next(keys), c1, c2)
    p["l1_mu"] = _init_linear(next(keys), flat, lad)
    p["l1_sigma"] = _init_linear(next(keys), flat, lad)
    p["h2_lin1"] = _init_linear(next(keys), hid, hid)
    p["h2_lin2"] = _init_linear(next(keys), hid, hid)
    p["h2_lin3"] = _init_linear(next(keys), hid, hid)
    for name in ("l2", "l3"):
        p[f"{name}_lin1"] = _init_linear(next(keys), hid, hid)
        p[f"{name}_lin2"] = _init_linear(next(keys), hid, hid)
        p[f"{name}_mu"] = _init_linear(next(keys), hid, lad)
        p[f"{name}_sigma"] = _init_linear(next(keys), hid, lad)
    p["g3_lin1"] = _init_linear(next(keys), lad, hid)
    p["g3_lin2"] = _init_linear(next(keys), hid, hid)
    p["g3_lin3"] = _init_linear(next(keys), hid, hid)
    p["g2_init"] = _init_linear(next(keys), lad, hid)
    p["g2_lin1"] = _init_linear(next(keys), 2 * hid, hid)
    p["g2_lin2"] = _init_linear(next(keys), hid, hid)
    p["g2_lin3"] = _init_linear(next(keys), hid, hid)
    p["g1_init"] = _init_linear(next(keys), lad, hid)
    p["g1_lin"] = _init_linear(next(keys), 2 * hid, flat)
    p["g1_deconv2"] = _init_deconv(next(keys), c2, c1)
    p["g1_deconv1"] = _init_deconv(next(keys), c1, C)
    return p


# ----------------------------------------------------------------------------
# One-time weight pre-packing (outside jit): conv->GEMM layout, branch fusion via
# block-diagonal / kron weights, sibling-GEMM fusion, lane-dense slabs, one bias slab
# ----------------------------------------------------------------------------
def prepack_params(p, cfg):
    C, c1, c2 = cfg["in_ch"], cfg["conv_ch1"], cfg["conv_ch2"]
    H, W = cfg["H"], cfg["W"]
    h4, w4 = H // 4, W // 4
    S = h4 * w4
    hid, lad = cfg["hidden_dim"], cfg["ladder_dim"]
    flat = S * c2
    f32 = lambda a: jnp.asarray(a, jnp.float32)
    eye4 = jnp.eye(4, dtype=jnp.float32)

    def conv_w(w):        # torch Conv2d [Cout, Cin, 2, 2] -> GEMM [(ki,kj,cin), cout]
        w = f32(w)
        return w.transpose(2, 3, 1, 0).reshape(4 * w.shape[1], w.shape[0])

    def deconv_w(w):      # torch ConvTranspose2d [Cin, Cout, 2, 2] -> [cin, (ki,kj,cout)]
        w = f32(w)
        return w.transpose(0, 2, 3, 1).reshape(w.shape[0], 4 * w.shape[1])

    def chw_rows_to_hwc(w):   # FC weight whose rows index a CHW flatten -> (h, w, c) order
        w = f32(w)
        return w.reshape(c2, h4, w4, -1).transpose(1, 2, 0, 3).reshape(flat, -1)

    def chw_cols_to_hwc(w):   # FC weight whose cols index a CHW flatten -> (h, w, c) order
        w = f32(w)
        return w.reshape(w.shape[0], c2, h4, w4).transpose(0, 2, 3, 1).reshape(w.shape[0], flat)

    # ---- conv / deconv slab (both encoder branches + both decoder deconvs) ----
    enc_w1 = jnp.concatenate([jnp.kron(eye4, conv_w(p["h1_conv1"]["w"])),
                              jnp.kron(eye4, conv_w(p["l1_conv1"]["w"]))], axis=1)
    enc_b1 = jnp.concatenate([jnp.tile(f32(p["h1_conv1"]["b"]), 4),
                              jnp.tile(f32(p["l1_conv1"]["b"]), 4)])
    hz = jnp.zeros((4 * c1, c2), jnp.float32)
    enc_w2 = jnp.concatenate(
        [jnp.concatenate([conv_w(p["h1_conv2"]["w"]), hz], axis=1),
         jnp.concatenate([hz, conv_w(p["l1_conv2"]["w"])], axis=1)], axis=0)
    enc_b2 = jnp.concatenate([f32(p["h1_conv2"]["b"]), f32(p["l1_conv2"]["b"])])
    dec_w2 = deconv_w(p["g1_deconv2"]["w"])
    dec_b2 = jnp.tile(f32(p["g1_deconv2"]["b"]), 4)
    dec_w1 = jnp.kron(eye4, deconv_w(p["g1_deconv1"]["w"]))
    dec_b1 = jnp.tile(f32(p["g1_deconv1"]["b"]), 16)

    conv_blocks = [("enc_w1", enc_w1), ("enc_w2", enc_w2), ("dec_w2", dec_w2), ("dec_w1", dec_w1)]
    conv_width = max(w.shape[1] for _, w in conv_blocks)
    conv_rows, padded, r = {}, [], 0
    for name, w in conv_blocks:
        conv_rows[name] = (r, w.shape[0], w.shape[1])
        r += w.shape[0]
        if w.shape[1] < conv_width:
            w = jnp.concatenate(
                [w, jnp.zeros((w.shape[0], conv_width - w.shape[1]), jnp.float32)], axis=1)
        padded.append(w)
    wconv = jnp.concatenate(padded, axis=0)

    # ---- W_HL: [hflat | lflat] -> [d1 | z1_mu | z1_sigma] (block-diagonal) ----
    whl = jnp.concatenate(
        [jnp.concatenate([chw_rows_to_hwc(p["h1_lin"]["w"]),
                          jnp.zeros((flat, 2 * lad), jnp.float32)], axis=1),
         jnp.concatenate([jnp.zeros((flat, hid), jnp.float32),
                          chw_rows_to_hwc(p["l1_mu"]["w"]),
                          chw_rows_to_hwc(p["l1_sigma"]["w"])], axis=1)], axis=0)
    b_hl = jnp.concatenate([f32(p["h1_lin"]["b"]), f32(p["l1_mu"]["b"]), f32(p["l1_sigma"]["b"])])

    # ---- W_HID: every K=hid FC layer packed along lanes (sibling heads fused) ----
    hid_blocks = [
        ("h2l2_lin1",
         jnp.concatenate([f32(p["h2_lin1"]["w"]), f32(p["l2_lin1"]["w"])], axis=1),
         jnp.concatenate([f32(p["h2_lin1"]["b"]), f32(p["l2_lin1"]["b"])])),
        ("h2_lin2", f32(p["h2_lin2"]["w"]), f32(p["h2_lin2"]["b"])),
        ("h2_lin3", f32(p["h2_lin3"]["w"]), f32(p["h2_lin3"]["b"])),
        ("l2_lin2", f32(p["l2_lin2"]["w"]), f32(p["l2_lin2"]["b"])),
        ("l2_heads",
         jnp.concatenate([f32(p["l2_mu"]["w"]), f32(p["l2_sigma"]["w"])], axis=1),
         jnp.concatenate([f32(p["l2_mu"]["b"]), f32(p["l2_sigma"]["b"])])),
        ("l3_lin1", f32(p["l3_lin1"]["w"]), f32(p["l3_lin1"]["b"])),
        ("l3_lin2", f32(p["l3_lin2"]["w"]), f32(p["l3_lin2"]["b"])),
        ("l3_heads",
         jnp.concatenate([f32(p["l3_mu"]["w"]), f32(p["l3_sigma"]["w"])], axis=1),
         jnp.concatenate([f32(p["l3_mu"]["b"]), f32(p["l3_sigma"]["b"])])),
        ("g3_lin2", f32(p["g3_lin2"]["w"]), f32(p["g3_lin2"]["b"])),
        ("g3_lin3", f32(p["g3_lin3"]["w"]), f32(p["g3_lin3"]["b"])),
        ("g2_lin2", f32(p["g2_lin2"]["w"]), f32(p["g2_lin2"]["b"])),
        ("g2_lin3", f32(p["g2_lin3"]["w"]), f32(p["g2_lin3"]["b"])),
    ]
    hid_off, o = {}, 0
    for name, w, _ in hid_blocks:
        hid_off[name] = (o, w.shape[1])
        o += w.shape[1]
    whid = jnp.concatenate([w for _, w, _ in hid_blocks], axis=1)
    b_hid = jnp.concatenate([b for _, _, b in hid_blocks])

    # ---- W_LAD: block-diagonal z injection [z3 | z2 | z1] -> [g3a | z2p | z1p] ----
    wlad = jnp.zeros((3 * lad, 3 * hid), jnp.float32)
    wlad = wlad.at[0:lad, 0:hid].set(f32(p["g3_lin1"]["w"]))
    wlad = wlad.at[lad:2 * lad, hid:2 * hid].set(f32(p["g2_init"]["w"]))
    wlad = wlad.at[2 * lad:3 * lad, 2 * hid:3 * hid].set(f32(p["g1_init"]["w"]))
    b_lad = jnp.concatenate([f32(p["g3_lin1"]["b"]), f32(p["g2_init"]["b"]), f32(p["g1_init"]["b"])])

    # ---- W_CAT: the two concat-input layers as single K=2*hid GEMMs ----
    wcat = jnp.concatenate([f32(p["g2_lin1"]["w"]), chw_cols_to_hwc(p["g1_lin"]["w"])], axis=1)
    g1b = f32(p["g1_lin"]["b"]).reshape(c2, h4, w4).transpose(1, 2, 0).reshape(flat)
    b_cat = jnp.concatenate([f32(p["g2_lin1"]["b"]), g1b])

    # ---- one bias slab ----
    bias_parts = [("enc_b1", enc_b1), ("enc_b2", enc_b2), ("dec_b2", dec_b2), ("dec_b1", dec_b1),
                  ("hl", b_hl), ("hid", b_hid), ("lad", b_lad), ("cat", b_cat)]
    boff, o = {}, 0
    for name, b in bias_parts:
        boff[name] = o
        o += b.shape[0]
    ball = jnp.concatenate([b for _, b in bias_parts]).reshape(1, -1)

    packed = {"wconv": wconv, "whl": whl, "whid": whid, "wlad": wlad, "wcat": wcat, "ball": ball}
    meta = {"C": C, "c1": c1, "c2": c2, "h4": h4, "w4": w4, "S": S,
            "hid": hid, "lad": lad, "flat": flat,
            "conv_rows": conv_rows, "hid_off": hid_off, "boff": boff}
    return packed, meta


# ----------------------------------------------------------------------------
# Pure-JAX reference of the same (assumed) architecture — parity check
# ----------------------------------------------------------------------------
def vladder_reference(p, x, eps1, eps2, eps3, cfg):
    hi = jax.lax.Precision.HIGHEST
    relu = lambda v: jnp.maximum(v, 0.0)
    softplus = lambda v: jnp.maximum(v, 0.0) + jnp.log(1.0 + jnp.exp(-jnp.abs(v)))

    def conv2x2(t, prm):            # Conv2d(k=2, s=2), NCHW, torch OIHW weight
        w, b = prm["w"], prm["b"]
        bsz, cin, hh, ww = t.shape
        tr = t.reshape(bsz, cin, hh // 2, 2, ww // 2, 2)
        y = jnp.einsum("bcikjl,ockl->boij", tr, w, precision=hi)
        return y + b[None, :, None, None]

    def deconv2x2(t, prm):          # ConvTranspose2d(k=2, s=2), torch IOHW weight
        w, b = prm["w"], prm["b"]
        bsz, cin, hh, ww = t.shape
        y = jnp.einsum("bcij,cokl->boikjl", t, w, precision=hi)
        y = y.reshape(bsz, w.shape[1], 2 * hh, 2 * ww)
        return y + b[None, :, None, None]

    def lin(t, prm):
        return jnp.dot(t, prm["w"], precision=hi) + prm["b"]

    B = x.shape[0]
    c2, h4, w4 = cfg["conv_ch2"], cfg["H"] // 4, cfg["W"] // 4

    h = relu(conv2x2(x, p["h1_conv1"]))
    h = relu(conv2x2(h, p["h1_conv2"]))
    d1 = relu(lin(h.reshape(B, -1), p["h1_lin"]))

    l = relu(conv2x2(x, p["l1_conv1"]))
    l = relu(conv2x2(l, p["l1_conv2"]))
    lf = l.reshape(B, -1)
    z1_mu = lin(lf, p["l1_mu"])
    z1_sigma = softplus(lin(lf, p["l1_sigma"]))

    t = relu(lin(d1, p["h2_lin1"]))
    t = relu(lin(t, p["h2_lin2"]))
    d2 = relu(lin(t, p["h2_lin3"]))

    t = relu(lin(d1, p["l2_lin1"]))
    t = relu(lin(t, p["l2_lin2"]))
    z2_mu = lin(t, p["l2_mu"])
    z2_sigma = softplus(lin(t, p["l2_sigma"]))

    t = relu(lin(d2, p["l3_lin1"]))
    t = relu(lin(t, p["l3_lin2"]))
    z3_mu = lin(t, p["l3_mu"])
    z3_sigma = softplus(lin(t, p["l3_sigma"]))

    z1 = z1_mu + z1_sigma * eps1
    z2 = z2_mu + z2_sigma * eps2
    z3 = z3_mu + z3_sigma * eps3

    t = relu(lin(z3, p["g3_lin1"]))
    t = relu(lin(t, p["g3_lin2"]))
    train3 = lin(t, p["g3_lin3"])

    z2p = lin(z2, p["g2_init"])
    t = relu(lin(jnp.concatenate([train3, z2p], axis=1), p["g2_lin1"]))
    t = relu(lin(t, p["g2_lin2"]))
    train2 = lin(t, p["g2_lin3"])

    z1p = lin(z1, p["g1_init"])
    g1f = relu(lin(jnp.concatenate([train2, z1p], axis=1), p["g1_lin"]))
    fmap = g1f.reshape(B, c2, h4, w4)
    u = relu(deconv2x2(fmap, p["g1_deconv2"]))
    train1 = deconv2x2(u, p["g1_deconv1"])
    out = 1.0 / (1.0 + jnp.exp(-train1))

    return {"d1": d1, "d2": d2,
            "z1_mu": z1_mu, "z1_sigma": z1_sigma,
            "z2_mu": z2_mu, "z2_sigma": z2_sigma,
            "z3_mu": z3_mu, "z3_sigma": z3_sigma,
            "z1": z1, "z2": z2, "z3": z3,
            "train3": train3, "train2": train2,
            "train1": train1, "out": out}


# ----------------------------------------------------------------------------
if __name__ == "__main__":
    cfg = {"batch": 2, "in_ch": 4, "H": 16, "W": 16,
           "conv_ch1": 8, "conv_ch2": 16, "hidden_dim": 32, "ladder_dim": 8}

    key = jax.random.PRNGKey(0)
    k_param, k_x, k_e1, k_e2, k_e3 = jax.random.split(key, 5)

    raw_params = make_params(k_param, cfg)
    packed, meta = prepack_params(raw_params, cfg)        # one-time pack, outside jit

    x = jax.random.uniform(k_x, (cfg["batch"], cfg["in_ch"], cfg["H"], cfg["W"]), jnp.float32)
    eps1 = jax.random.normal(k_e1, (cfg["batch"], cfg["ladder_dim"]), jnp.float32)
    eps2 = jax.random.normal(k_e2, (cfg["batch"], cfg["ladder_dim"]), jnp.float32)
    eps3 = jax.random.normal(k_e3, (cfg["batch"], cfg["ladder_dim"]), jnp.float32)

    fwd = jax.jit(functools.partial(vladder_forward, meta=meta))
    out = fwd(packed, x, eps1, eps2, eps3)
    jax.block_until_ready(out)

    # shape / range sanity
    assert out["out"].shape == (cfg["batch"], cfg["in_ch"], cfg["H"], cfg["W"])
    assert out["train1"].shape == (cfg["batch"], cfg["in_ch"], cfg["H"], cfg["W"])
    assert out["z1_mu"].shape == (cfg["batch"], cfg["ladder_dim"])
    assert out["d1"].shape == (cfg["batch"], cfg["hidden_dim"])
    assert bool(jnp.all(jnp.isfinite(out["out"])))
    assert bool(jnp.all((out["out"] >= 0.0) & (out["out"] <= 1.0)))

    # numerical parity vs a plain-JAX reference (guards the GEMM packing / layouts)
    ref = vladder_reference(raw_params, x, eps1, eps2, eps3, cfg)
    for k, v in ref.items():
        assert out[k].shape == v.shape, k
        assert bool(jnp.allclose(out[k], v, atol=5e-3, rtol=5e-3)), k

    print("KERNEL_OK")
</pallas_src>

<mosaic_0001>
module attributes {stable_mosaic.version = 11 : i64} {
  func.func @_vladder_kernel(%arg0: i32, %arg1: memref<32x64xf32, #tpu.memory_space<vmem>>, %arg2: memref<2x24xf32, #tpu.memory_space<vmem>>, %arg3: memref<176x64xf32, #tpu.memory_space<vmem>>, %arg4: memref<512x48xf32, #tpu.memory_space<vmem>>, %arg5: memref<32x384xf32, #tpu.memory_space<vmem>>, %arg6: memref<24x96xf32, #tpu.memory_space<vmem>>, %arg7: memref<64x288xf32, #tpu.memory_space<vmem>>, %arg8: memref<1x1008xf32, #tpu.memory_space<vmem>>, %arg9: memref<2x256xf32, #tpu.memory_space<vmem>>, %arg10: memref<32x128xf32, #tpu.memory_space<vmem>>, %arg11: memref<32x32xf32, #tpu.memory_space<vmem>>, %arg12: memref<2x512xf32, #tpu.memory_space<vmem>>, %arg13: memref<32x16xf32, #tpu.memory_space<vmem>>) attributes {dimension_semantics = [#tpu.dimension_semantics<arbitrary>], iteration_bounds = array<i64: 1>, scalar_prefetch = 0 : i64, scratch_operands = 3 : i64, tpu.core_type = #tpu.core_type<tc>, window_params = [{pipeline_mode = #tpu.pipeline_mode<synchronous>, transform_indices = @transform_0, window_bounds = array<i64: 32, 64>}, {pipeline_mode = #tpu.pipeline_mode<synchronous>, transform_indices = @transform_1, window_bounds = array<i64: 2, 24>}, {pipeline_mode = #tpu.pipeline_mode<synchronous>, transform_indices = @transform_2, window_bounds = array<i64: 176, 64>}, {pipeline_mode = #tpu.pipeline_mode<synchronous>, transform_indices = @transform_3, window_bounds = array<i64: 512, 48>}, {pipeline_mode = #tpu.pipeline_mode<synchronous>, transform_indices = @transform_4, window_bounds = array<i64: 32, 384>}, {pipeline_mode = #tpu.pipeline_mode<synchronous>, transform_indices = @transform_5, window_bounds = array<i64: 24, 96>}, {pipeline_mode = #tpu.pipeline_mode<synchronous>, transform_indices = @transform_6, window_bounds = array<i64: 64, 288>}, {pipeline_mode = #tpu.pipeline_mode<synchronous>, transform_indices = @transform_7, window_bounds = array<i64: 1, 1008>}, {pipeline_mode = #tpu.pipeline_mode<synchronous>, transform_indices = @transform_8, window_bounds = array<i64: 2, 256>}, {pipeline_mode = #tpu.pipeline_mode<synchronous>, transform_indices = @transform_9, window_bounds = array<i64: 32, 128>}]} {
    %c0 = arith.constant 0 : index
    %c0_0 = arith.constant 0 : index
    %0 = vector.load %arg1[%c0, %c0_0] : memref<32x64xf32, #tpu.memory_space<vmem>>, vector<32x64xf32>
    %c0_1 = arith.constant 0 : index
    %c0_2 = arith.constant 0 : index
    %1 = vector.load %arg3[%c0_1, %c0_2] : memref<176x64xf32, #tpu.memory_space<vmem>>, vector<64x64xf32>
    %cst = arith.constant dense<0.000000e+00> : vector<32x64xf32>
    %2 = tpu.matmul %0, %1, %cst {dimension_numbers = #tpu.dot_dimension_numbers<[1], [0], [0], [1], [0, 0, 1, 1], [], []>} : vector<32x64xf32>, vector<64x64xf32>, vector<32x64xf32> -> vector<32x64xf32>
    %c0_3 = arith.constant 0 : index
    %c0_4 = arith.constant 0 : index
    %3 = vector.load %arg8[%c0_3, %c0_4] : memref<1x1008xf32, #tpu.memory_space<vmem>>, vector<1x64xf32>
    %4 = vector.broadcast %3 : vector<1x64xf32> to vector<32x64xf32>
    %5 = arith.addf %2, %4 : vector<32x64xf32>
    %cst_5 = arith.constant 0.000000e+00 : f32
    %6 = vector.broadcast %cst_5 : f32 to vector<32x64xf32>
    %7 = arith.maximumf %5, %6 : vector<32x64xf32>
    %c64 = arith.constant 64 : index
    %c0_6 = arith.constant 0 : index
    %8 = vector.load %arg3[%c64, %c0_6] : memref<176x64xf32, #tpu.memory_space<vmem>>, vector<64x32xf32>
    %cst_7 = arith.constant dense<0.000000e+00> : vector<32x32xf32>
    %9 = tpu.matmul %7, %8, %cst_7 {dimension_numbers = #tpu.dot_dimension_numbers<[1], [0], [0], [1], [0, 0, 1, 1], [], []>} : vector<32x64xf32>, vector<64x32xf32>, vector<32x32xf32> -> vector<32x32xf32>
    %c0_8 = arith.constant 0 : index
    %c64_9 = arith.constant 64 : index
    %10 = vector.load %arg8[%c0_8, %c64_9] : memref<1x1008xf32, #tpu.memory_space<vmem>>, vector<1x32xf32>
    %11 = vector.broadcast %10 : vector<1x32xf32> to vector<32x32xf32>
    %12 = arith.addf %9, %11 : vector<32x32xf32>
    %cst_10 = arith.constant 0.000000e+00 : f32
    %13 = vector.broadcast %cst_10 : f32 to vector<32x32xf32>
    %14 = arith.maximumf %12, %13 : vector<32x32xf32>
    %c0_11 = arith.constant 0 : index
    %c0_12 = arith.constant 0 : index
    %15 = vector.load %arg11[%c0_11, %c0_12] : memref<32x32xf32, #tpu.memory_space<vmem>>, vector<32x32xf32>
    tpu.vector_store %arg11[%c0_11, %c0_12], %14 {strides = array<i32>} : memref<32x32xf32, #tpu.memory_space<vmem>>, vector<32x32xf32>,
    %c0_13 = arith.constant 0 : index
    %c0_14 = arith.constant 0 : index
    %16 = vector.load %arg11[%c0_13, %c0_14] : memref<32x32xf32, #tpu.memory_space<vmem>>, vector<2x32xf32>
    %17 = vector.extract_strided_slice %16 {offsets = [0, 0], sizes = [2, 16], strides = [1, 1]} : vector<2x32xf32> to vector<2x16xf32>
    %c0_15 = arith.constant 0 : index
    %c0_16 = arith.constant 0 : index
    %18 = vector.load %arg12[%c0_15, %c0_16] : memref<2x512xf32, #tpu.memory_space<vmem>>, vector<2x16xf32>
    tpu.vector_store %arg12[%c0_15, %c0_16], %17 {strides = array<i32>} : memref<2x512xf32, #tpu.memory_space<vmem>>, vector<2x16xf32>,
    %19 = vector.extract_strided_slice %16 {offsets = [0, 16], sizes = [2, 16], strides = [1, 1]} : vector<2x32xf32> to vector<2x16xf32>
    %c0_17 = arith.constant 0 : index
    %c256 = arith.constant 256 : index
    %20 = vector.load %arg12[%c0_17, %c256] : memref<2x512xf32, #tpu.memory_space<vmem>>, vector<2x16xf32>
    tpu.vector_store %arg12[%c0_17, %c256], %19 {strides = array<i32>} : memref<2x512xf32, #tpu.memory_space<vmem>>, vector<2x16xf32>,
    %c2 = arith.constant 2 : index
    %c0_18 = arith.constant 0 : index
    %21 = vector.load %arg11[%c2, %c0_18] : memref<32x32xf32, #tpu.memory_space<vmem>>, vector<2x32xf32>
    %22 = vector.extract_strided_slice %21 {offsets = [0, 0], sizes = [2, 16], strides = [1, 1]} : vector<2x32xf32> to vector<2x16xf32>
    %c0_19 = arith.constant 0 : index
    %c16 = arith.constant 16 : index
    %23 = vector.load %arg12[%c0_19, %c16] : memref<2x512xf32, #tpu.memory_space<vmem>>, vector<2x16xf32>
    tpu.vector_store %arg12[%c0_19, %c16], %22 {strides = array<i32>} : memref<2x512xf32, #tpu.memory_space<vmem>>, vector<2x16xf32>,
    %24 = vector.extract_strided_slice %21 {offsets = [0, 16], sizes = [2, 16], strides = [1, 1]} : vector<2x32xf32> to vector<2x16xf32>
    %c0_20 = arith.constant 0 : index
    %c272 = arith.constant 272 : index
    %25 = vector.load %arg12[%c0_20, %c272] : memref<2x512xf32, #tpu.memory_space<vmem>>, vector<2x16xf32>
    tpu.vector_store %arg12[%c0_20, %c272], %24 {strides = array<i32>} : memref<2x512xf32, #tpu.memory_space<vmem>>, vector<2x16xf32>,
    %c4 = arith.constant 4 : index
    %c0_21 = arith.constant 0 : index
    %26 = vector.load %arg11[%c4, %c0_21] : memref<32x32xf32, #tpu.memory_space<vmem>>, vector<2x32xf32>
    %27 = vector.extract_strided_slice %26 {offsets = [0, 0], sizes = [2, 16], strides = [1, 1]} : vector<2x32xf32> to vector<2x16xf32>
    %c0_22 = arith.constant 0 : index
    %c32 = arith.constant 32 : index
    %28 = vector.load %arg12[%c0_22, %c32] : memref<2x512xf32, #tpu.memory_space<vmem>>, vector<2x16xf32>
    tpu.vector_store %arg12[%c0_22, %c32], %27 {strides = array<i32>} : memref<2x512xf32, #tpu.memory_space<vmem>>, vector<2x16xf32>,
    %29 = vector.extract_strided_slice %26 {offsets = [0, 16], sizes = [2, 16], strides = [1, 1]} : vector<2x32xf32> to vector<2x16xf32>
    %c0_23 = arith.constant 0 : index
    %c288 = arith.constant 288 : index
    %30 = vector.load %arg12[%c0_23, %c288] : memref<2x512xf32, #tpu.memory_space<vmem>>, vector<2x16xf32>
    tpu.vector_store %arg12[%c0_23, %c288], %29 {strides = array<i32>} : memref<2x512xf32, #tpu.memory_space<vmem>>, vector<2x16xf32>,
    %c6 = arith.constant 6 : index
    %c0_24 = arith.constant 0 : index
    %31 = vector.load %arg11[%c6, %c0_24] : memref<32x32xf32, #tpu.memory_space<vmem>>, vector<2x32xf32>
    %32 = vector.extract_strided_slice %31 {offsets = [0, 0], sizes = [2, 16], strides = [1, 1]} : vector<2x32xf32> to vector<2x16xf32>
    %c0_25 = arith.constant 0 : index
    %c48 = arith.constant 48 : index
    %33 = vector.load %arg12[%c0_25, %c48] : memref<2x512xf32, #tpu.memory_space<vmem>>, vector<2x16xf32>
    tpu.vector_store %arg12[%c0_25, %c48], %32 {strides = array<i32>} : memref<2x512xf32, #tpu.memory_space<vmem>>, vector<2x16xf32>,
    %34 = vector.extract_strided_slice %31 {offsets = [0, 16], sizes = [2, 16], strides = [1, 1]} : vector<2x32xf32> to vector<2x16xf32>
    %c0_26 = arith.constant 0 : index
    %c304 = arith.constant 304 : index
    %35 = vector.load %arg12[%c0_26, %c304] : memref<2x512xf32, #tpu.memory_space<vmem>>, vector<2x16xf32>
    tpu.vector_store %arg12[%c0_26, %c304], %34 {strides = array<i32>} : memref<2x512xf32, #tpu.memory_space<vmem>>, vector<2x16xf32>,
    %c8 = arith.constant 8 : index
    %c0_27 = arith.constant 0 : index
    %36 = vector.load %arg11[%c8, %c0_27] : memref<32x32xf32, #tpu.memory_space<vmem>>, vector<2x32xf32>
    %37 = vector.extract_strided_slice %36 {offsets = [0, 0], sizes = [2, 16], strides = [1, 1]} : vector<2x32xf32> to vector<2x16xf32>
    %c0_28 = arith.constant 0 : index
    %c64_29 = arith.constant 64 : index
    %38 = vector.load %arg12[%c0_28, %c64_29] : memref<2x512xf32, #tpu.memory_space<vmem>>, vector<2x16xf32>
    tpu.vector_store %arg12[%c0_28, %c64_29], %37 {strides = array<i32>} : memref<2x512xf32, #tpu.memory_space<vmem>>, vector<2x16xf32>,
    %39 = vector.extract_strided_slice %36 {offsets = [0, 16], sizes = [2, 16], strides = [1, 1]} : vector<2x32xf32> to vector<2x16xf32>
    %c0_30 = arith.constant 0 : index
    %c320 = arith.constant 320 : index
    %40 = vector.load %arg12[%c0_30, %c320] : memref<2x512xf32, #tpu.memory_space<vmem>>, vector<2x16xf32>
    tpu.vector_store %arg12[%c0_30, %c320], %39 {strides = array<i32>} : memref<2x512xf32, #tpu.memory_space<vmem>>, vector<2x16xf32>,
    %c10 = arith.constant 10 : index
    %c0_31 = arith.constant 0 : index
    %41 = vector.load %arg11[%c10, %c0_31] : memref<32x32xf32, #tpu.memory_space<vmem>>, vector<2x32xf32>
    %42 = vector.extract_strided_slice %41 {offsets = [0, 0], sizes = [2, 16], strides = [1, 1]} : vector<2x32xf32> to vector<2x16xf32>
    %c0_32 = arith.constant 0 : index
    %c80 = arith.constant 80 : index
    %43 = vector.load %arg12[%c0_32, %c80] : memref<2x512xf32, #tpu.memory_space<vmem>>, vector<2x16xf32>
    tpu.vector_store %arg12[%c0_32, %c80], %42 {strides = array<i32>} : memref<2x512xf32, #tpu.memory_space<vmem>>, vector<2x16xf32>,
    %44 = vector.extract_strided_slice %41 {offsets = [0, 16], sizes = [2, 16], strides = [1, 1]} : vector<2x32xf32> to vector<2x16xf32>
    %c0_33 = arith.constant 0 : index
    %c336 = arith.constant 336 : index
    %45 = vector.load %arg12[%c0_33, %c336] : memref<2x512xf32, #tpu.memory_space<vmem>>, vector<2x16xf32>
    tpu.vector_store %arg12[%c0_33, %c336], %44 {strides = array<i32>} : memref<2x512xf32, #tpu.memory_space<vmem>>, vector<2x16xf32>,
    %c12 = arith.constant 12 : index
    %c0_34 = arith.constant 0 : index
    %46 = vector.load %arg11[%c12, %c0_34] : memref<32x32xf32, #tpu.memory_space<vmem>>, vector<2x32xf32>
    %47 = vector.extract_strided_slice %46 {offsets = [0, 0], sizes = [2, 16], strides = [1, 1]} : vector<2x32xf32> to vector<2x16xf32>
    %c0_35 = arith.constant 0 : index
    %c96 = arith.constant 96 : index
    %48 = vector.load %arg12[%c0_35, %c96] : memref<2x512xf32, #tpu.memory_space<vmem>>, vector<2x16xf32>
    tpu.vector_store %arg12[%c0_35, %c96], %47 {strides = array<i32>} : memref<2x512xf32, #tpu.memory_space<vmem>>, vector<2x16xf32>,
    %49 = vector.extract_strided_slice %46 {offsets = [0, 16], sizes = [2, 16], strides = [1, 1]} : vector<2x32xf32> to vector<2x16xf32>
    %c0_36 = arith.constant 0 : index
    %c352 = arith.constant 352 : index
    %50 = vector.load %arg12[%c0_36, %c352] : memref<2x512xf32, #tpu.memory_space<vmem>>, vector<2x16xf32>
    tpu.vector_store %arg12[%c0_36, %c352], %49 {strides = array<i32>} : memref<2x512xf32, #tpu.memory_space<vmem>>, vector<2x16xf32>,
    %c14 = arith.constant 14 : index
    %c0_37 = arith.constant 0 : index
    %51 = vector.load %arg11[%c14, %c0_37] : memref<32x32xf32, #tpu.memory_space<vmem>>, vector<2x32xf32>
    %52 = vector.extract_strided_slice %51 {offsets = [0, 0], sizes = [2, 16], strides = [1, 1]} : vector<2x32xf32> to vector<2x16xf32>
    %c0_38 = arith.constant 0 : index
    %c112 = arith.constant 112 : index
    %53 = vector.load %arg12[%c0_38, %c112] : memref<2x512xf32, #tpu.memory_space<vmem>>, vector<2x16xf32>
    tpu.vector_store %arg12[%c0_38, %c112], %52 {strides = array<i32>} : memref<2x512xf32, #tpu.memory_space<vmem>>, vector<2x16xf32>,
    %54 = vector.extract_strided_slice %51 {offsets = [0, 16], sizes = [2, 16], strides = [1, 1]} : vector<2x32xf32> to vector<2x16xf32>
    %c0_39 = arith.constant 0 : index
    %c368 = arith.constant 368 : index
    %55 = vector.load %arg12[%c0_39, %c368] : memref<2x512xf32, #tpu.memory_space<vmem>>, vector<2x16xf32>
    tpu.vector_store %arg12[%c0_39, %c368], %54 {strides = array<i32>} : memref<2x512xf32, #tpu.memory_space<vmem>>, vector<2x16xf32>,
    %c16_40 = arith.constant 16 : index
    %c0_41 = arith.constant 0 : index
    %56 = vector.load %arg11[%c16_40, %c0_41] : memref<32x32xf32, #tpu.memory_space<vmem>>, vector<2x32xf32>
    %57 = vector.extract_strided_slice %56 {offsets = [0, 0], sizes = [2, 16], strides = [1, 1]} : vector<2x32xf32> to vector<2x16xf32>
    %c0_42 = arith.constant 0 : index
    %c128 = arith.constant 128 : index
    %58 = vector.load %arg12[%c0_42, %c128] : memref<2x512xf32, #tpu.memory_space<vmem>>, vector<2x16xf32>
    tpu.vector_store %arg12[%c0_42, %c128], %57 {strides = array<i32>} : memref<2x512xf32, #tpu.memory_space<vmem>>, vector<2x16xf32>,
    %59 = vector.extract_strided_slice %56 {offsets = [0, 16], sizes = [2, 16], strides = [1, 1]} : vector<2x32xf32> to vector<2x16xf32>
    %c0_43 = arith.constant 0 : index
    %c384 = arith.constant 384 : index
    %60 = vector.load %arg12[%c0_43, %c384] : memref<2x512xf32, #tpu.memory_space<vmem>>, vector<2x16xf32>
    tpu.vector_store %arg12[%c0_43, %c384], %59 {strides = array<i32>} : memref<2x512xf32, #tpu.memory_space<vmem>>, vector<2x16xf32>,
    %c18 = arith.constant 18 : index
    %c0_44 = arith.constant 0 : index
    %61 = vector.load %arg11[%c18, %c0_44] : memref<32x32xf32, #tpu.memory_space<vmem>>, vector<2x32xf32>
    %62 = vector.extract_strided_slice %61 {offsets = [0, 0], sizes = [2, 16], strides = [1, 1]} : vector<2x32xf32> to vector<2x16xf32>
    %c0_45 = arith.constant 0 : index
    %c144 = arith.constant 144 : index
    %63 = vector.load %arg12[%c0_45, %c144] : memref<2x512xf32, #tpu.memory_space<vmem>>, vector<2x16xf32>
    tpu.vector_store %arg12[%c0_45, %c144], %62 {strides = array<i32>} : memref<2x512xf32, #tpu.memory_space<vmem>>, vector<2x16xf32>,
    %64 = vector.extract_strided_slice %61 {offsets = [0, 16], sizes = [2, 16], strides = [1, 1]} : vector<2x32xf32> to vector<2x16xf32>
    %c0_46 = arith.constant 0 : index
    %c400 = arith.constant 400 : index
    %65 = vector.load %arg12[%c0_46, %c400] : memref<2x512xf32, #tpu.memory_space<vmem>>, vector<2x16xf32>
    tpu.vector_store %arg12[%c0_46, %c400], %64 {strides = array<i32>} : memref<2x512xf32, #tpu.memory_space<vmem>>, vector<2x16xf32>,
    %c20 = arith.constant 20 : index
    %c0_47 = arith.constant 0 : index
    %66 = vector.load %arg11[%c20, %c0_47] : memref<32x32xf32, #tpu.memory_space<vmem>>, vector<2x32xf32>
    %67 = vector.extract_strided_slice %66 {offsets = [0, 0], sizes = [2, 16], strides = [1, 1]} : vector<2x32xf32> to vector<2x16xf32>
    %c0_48 = arith.constant 0 : index
    %c160 = arith.constant 160 : index
    %68 = vector.load %arg12[%c0_48, %c160] : memref<2x512xf32, #tpu.memory_space<vmem>>, vector<2x16xf32>
    tpu.vector_store %arg12[%c0_48, %c160], %67 {strides = array<i32>} : memref<2x512xf32, #tpu.memory_space<vmem>>, vector<2x16xf32>,
    %69 = vector.extract_strided_slice %66 {offsets = [0, 16], sizes = [2, 16], strides = [1, 1]} : vector<2x32xf32> to vector<2x16xf32>
    %c0_49 = arith.constant 0 : index
    %c416 = arith.constant 416 : index
    %70 = vector.load %arg12[%c0_49, %c416] : memref<2x512xf32, #tpu.memory_space<vmem>>, vector<2x16xf32>
    tpu.vector_store %arg12[%c0_49, %c416], %69 {strides = array<i32>} : memref<2x512xf32, #tpu.memory_space<vmem>>, vector<2x16xf32>,
    %c22 = arith.constant 22 : index
    %c0_50 = arith.constant 0 : index
    %71 = vector.load %arg11[%c22, %c0_50] : memref<32x32xf32, #tpu.memory_space<vmem>>, vector<2x32xf32>
    %72 = vector.extract_strided_slice %71 {offsets = [0, 0], sizes = [2, 16], strides = [1, 1]} : vector<2x32xf32> to vector<2x16xf32>
    %c0_51 = arith.constant 0 : index
    %c176 = arith.constant 176 : index
    %73 = vector.load %arg12[%c0_51, %c176] : memref<2x512xf32, #tpu.memory_space<vmem>>, vector<2x16xf32>
    tpu.vector_store %arg12[%c0_51, %c176], %72 {strides = array<i32>} : memref<2x512xf32, #tpu.memory_space<vmem>>, vector<2x16xf32>,
    %74 = vector.extract_strided_slice %71 {offsets = [0, 16], sizes = [2, 16], strides = [1, 1]} : vector<2x32xf32> to vector<2x16xf32>
    %c0_52 = arith.constant 0 : index
    %c432 = arith.constant 432 : index
    %75 = vector.load %arg12[%c0_52, %c432] : memref<2x512xf32, #tpu.memory_space<vmem>>, vector<2x16xf32>
    tpu.vector_store %arg12[%c0_52, %c432], %74 {strides = array<i32>} : memref<2x512xf32, #tpu.memory_space<vmem>>, vector<2x16xf32>,
    %c24 = arith.constant 24 : index
    %c0_53 = arith.constant 0 : index
    %76 = vector.load %arg11[%c24, %c0_53] : memref<32x32xf32, #tpu.memory_space<vmem>>, vector<2x32xf32>
    %77 = vector.extract_strided_slice %76 {offsets = [0, 0], sizes = [2, 16], strides = [1, 1]} : vector<2x32xf32> to vector<2x16xf32>
    %c0_54 = arith.constant 0 : index
    %c192 = arith.constant 192 : index
    %78 = vector.load %arg12[%c0_54, %c192] : memref<2x512xf32, #tpu.memory_space<vmem>>, vector<2x16xf32>
    tpu.vector_store %arg12[%c0_54, %c192], %77 {strides = array<i32>} : memref<2x512xf32, #tpu.memory_space<vmem>>, vector<2x16xf32>,
    %79 = vector.extract_strided_slice %76 {offsets = [0, 16], sizes = [2, 16], strides = [1, 1]} : vector<2x32xf32> to vector<2x16xf32>
    %c0_55 = arith.constant 0 : index
    %c448 = arith.constant 448 : index
    %80 = vector.load %arg12[%c0_55, %c448] : memref<2x512xf32, #tpu.memory_space<vmem>>, vector<2x16xf32>
    tpu.vector_store %arg12[%c0_55, %c448], %79 {strides = array<i32>} : memref<2x512xf32, #tpu.memory_space<vmem>>, vector<2x16xf32>,
    %c26 = arith.constant 26 : index
    %c0_56 = arith.constant 0 : index
    %81 = vector.load %arg11[%c26, %c0_56] : memref<32x32xf32, #tpu.memory_space<vmem>>, vector<2x32xf32>
    %82 = vector.extract_strided_slice %81 {offsets = [0, 0], sizes = [2, 16], strides = [1, 1]} : vector<2x32xf32> to vector<2x16xf32>
    %c0_57 = arith.constant 0 : index
    %c208 = arith.constant 208 : index
    %83 = vector.load %arg12[%c0_57, %c208] : memref<2x512xf32, #tpu.memory_space<vmem>>, vector<2x16xf32>
    tpu.vector_store %arg12[%c0_57, %c208], %82 {strides = array<i32>} : memref<2x512xf32, #tpu.memory_space<vmem>>, vector<2x16xf32>,
    %84 = vector.extract_strided_slice %81 {offsets = [0, 16], sizes = [2, 16], strides = [1, 1]} : vector<2x32xf32> to vector<2x16xf32>
    %c0_58 = arith.constant 0 : index
    %c464 = arith.constant 464 : index
    %85 = vector.load %arg12[%c0_58, %c464] : memref<2x512xf32, #tpu.memory_space<vmem>>, vector<2x16xf32>
    tpu.vector_store %arg12[%c0_58, %c464], %84 {strides = array<i32>} : memref<2x512xf32, #tpu.memory_space<vmem>>, vector<2x16xf32>,
    %c28 = arith.constant 28 : index
    %c0_59 = arith.constant 0 : index
    %86 = vector.load %arg11[%c28, %c0_59] : memref<32x32xf32, #tpu.memory_space<vmem>>, vector<2x32xf32>
    %87 = vector.extract_strided_slice %86 {offsets = [0, 0], sizes = [2, 16], strides = [1, 1]} : vector<2x32xf32> to vector<2x16xf32>
    %c0_60 = arith.constant 0 : index
    %c224 = arith.constant 224 : index
    %88 = vector.load %arg12[%c0_60, %c224] : memref<2x512xf32, #tpu.memory_space<vmem>>, vector<2x16xf32>
    tpu.vector_store %arg12[%c0_60, %c224], %87 {strides = array<i32>} : memref<2x512xf32, #tpu.memory_space<vmem>>, vector<2x16xf32>,
    %89 = vector.extract_strided_slice %86 {offsets = [0, 16], sizes = [2, 16], strides = [1, 1]} : vector<2x32xf32> to vector<2x16xf32>
    %c0_61 = arith.constant 0 : index
    %c480 = arith.constant 480 : index
    %90 = vector.load %arg12[%c0_61, %c480] : memref<2x512xf32, #tpu.memory_space<vmem>>, vector<2x16xf32>
    tpu.vector_store %arg12[%c0_61, %c480], %89 {strides = array<i32>} : memref<2x512xf32, #tpu.memory_space<vmem>>, vector<2x16xf32>,
    %c30 = arith.constant 30 : index
    %c0_62 = arith.constant 0 : index
    %91 = vector.load %arg11[%c30, %c0_62] : memref<32x32xf32, #tpu.memory_space<vmem>>, vector<2x32xf32>
    %92 = vector.extract_strided_slice %91 {offsets = [0, 0], sizes = [2, 16], strides = [1, 1]} : vector<2x32xf32> to vector<2x16xf32>
    %c0_63 = arith.constant 0 : index
    %c240 = arith.constant 240 : index
    %93 = vector.load %arg12[%c0_63, %c240] : memref<2x512xf32, #tpu.memory_space<vmem>>, vector<2x16xf32>
    tpu.vector_store %arg12[%c0_63, %c240], %92 {strides = array<i32>} : memref<2x512xf32, #tpu.memory_space<vmem>>, vector<2x16xf32>,
    %94 = vector.extract_strided_slice %91 {offsets = [0, 16], sizes = [2, 16], strides = [1, 1]} : vector<2x32xf32> to vector<2x16xf32>
    %c0_64 = arith.constant 0 : index
    %c496 = arith.constant 496 : index
    %95 = vector.load %arg12[%c0_64, %c496] : memref<2x512xf32, #tpu.memory_space<vmem>>, vector<2x16xf32>
    tpu.vector_store %arg12[%c0_64, %c496], %94 {strides = array<i32>} : memref<2x512xf32, #tpu.memory_space<vmem>>, vector<2x16xf32>,
    %c0_65 = arith.constant 0 : index
    %c0_66 = arith.constant 0 : index
    %96 = vector.load %arg12[%c0_65, %c0_66] : memref<2x512xf32, #tpu.memory_space<vmem>>, vector<2x512xf32>
    %c0_67 = arith.constant 0 : index
    %c0_68 = arith.constant 0 : index
    %97 = vector.load %arg4[%c0_67, %c0_68] : memref<512x48xf32, #tpu.memory_space<vmem>>, vector<512x48xf32>
    %cst_69 = arith.constant dense<0.000000e+00> : vector<2x48xf32>
    %98 = tpu.matmul %96, %97, %cst_69 {dimension_numbers = #tpu.dot_dimension_numbers<[1], [0], [0], [1], [0, 0, 1, 1], [], []>} : vector<2x512xf32>, vector<512x48xf32>, vector<2x48xf32> -> vector<2x48xf32>
    %c0_70 = arith.constant 0 : index
    %c192_71 = arith.constant 192 : index
    %99 = vector.load %arg8[%c0_70, %c192_71] : memref<1x1008xf32, #tpu.memory_space<vmem>>, vector<1x48xf32>
    %100 = vector.broadcast %99 : vector<1x48xf32> to vector<2x48xf32>
    %101 = arith.addf %98, %100 : vector<2x48xf32>
    %102 = vector.extract_strided_slice %101 {offsets = [0, 0], sizes = [2, 32], strides = [1, 1]} : vector<2x48xf32> to vector<2x32xf32>
    %cst_72 = arith.constant 0.000000e+00 : f32
    %103 = vector.broadcast %cst_72 : f32 to vector<2x32xf32>
    %104 = arith.maximumf %102, %103 : vector<2x32xf32>
    %105 = vector.extract_strided_slice %101 {offsets = [0, 32], sizes = [2, 8], strides = [1, 1]} : vector<2x48xf32> to vector<2x8xf32>
    %106 = vector.extract_strided_slice %101 {offsets = [0, 40], sizes = [2, 8], strides = [1, 1]} : vector<2x48xf32> to vector<2x8xf32>
    %cst_73 = arith.constant 0.000000e+00 : f32
    %107 = vector.broadcast %cst_73 : f32 to vector<2x8xf32>
    %108 = arith.maximumf %106, %107 : vector<2x8xf32>
    %109 = math.absf %106 : vector<2x8xf32>
    %cst_74 = arith.constant 0.000000e+00 : f32
    %110 = vector.broadcast %cst_74 : f32 to vector<2x8xf32>
    %111 = arith.subf %110, %109 : vector<2x8xf32>
    %112 = math.exp %111 : vector<2x8xf32>
    %cst_75 = arith.constant 1.000000e+00 : f32
    %113 = vector.broadcast %cst_75 : f32 to vector<2x8xf32>
    %114 = arith.addf %113, %112 : vector<2x8xf32>
    %115 = math.log %114 : vector<2x8xf32>
    %116 = arith.addf %108, %115 : vector<2x8xf32>
    %c0_76 = arith.constant 0 : index
    %c0_77 = arith.constant 0 : index
    %117 = vector.load %arg5[%c0_76, %c0_77] : memref<32x384xf32, #tpu.memory_space<vmem>>, vector<32x64xf32>
    %cst_78 = arith.constant dense<0.000000e+00> : vector<2x64xf32>
    %118 = tpu.matmul %104, %117, %cst_78 {dimension_numbers = #tpu.dot_dimension_numbers<[1], [0], [0], [1], [0, 0, 1, 1], [], []>} : vector<2x32xf32>, vector<32x64xf32>, vector<2x64xf32> -> vector<2x64xf32>
    %c0_79 = arith.constant 0 : index
    %c240_80 = arith.constant 240 : index
    %119 = vector.load %arg8[%c0_79, %c240_80] : memref<1x1008xf32, #tpu.memory_space<vmem>>, vector<1x64xf32>
    %120 = vector.broadcast %119 : vector<1x64xf32> to vector<2x64xf32>
    %121 = arith.addf %118, %120 : vector<2x64xf32>
    %cst_81 = arith.constant 0.000000e+00 : f32
    %122 = vector.broadcast %cst_81 : f32 to vector<2x64xf32>
    %123 = arith.maximumf %121, %122 : vector<2x64xf32>
    %124 = vector.extract_strided_slice %123 {offsets = [0, 0], sizes = [2, 32], strides = [1, 1]} : vector<2x64xf32> to vector<2x32xf32>
    %125 = vector.extract_strided_slice %123 {offsets = [0, 32], sizes = [2, 32], strides = [1, 1]} : vector<2x64xf32> to vector<2x32xf32>
    %c0_82 = arith.constant 0 : index
    %c64_83 = arith.constant 64 : index
    %126 = vector.load %arg5[%c0_82, %c64_83] : memref<32x384xf32, #tpu.memory_space<vmem>>, vector<32x32xf32>
    %cst_84 = arith.constant dense<0.000000e+00> : vector<2x32xf32>
    %127 = tpu.matmul %124, %126, %cst_84 {dimension_numbers = #tpu.dot_dimension_numbers<[1], [0], [0], [1], [0, 0, 1, 1], [], []>} : vector<2x32xf32>, vector<32x32xf32>, vector<2x32xf32> -> vector<2x32xf32>
    %c0_85 = arith.constant 0 : index
    %c304_86 = arith.constant 304 : index
    %128 = vector.load %arg8[%c0_85, %c304_86] : memref<1x1008xf32, #tpu.memory_space<vmem>>, vector<1x32xf32>
    %129 = vector.broadcast %128 : vector<1x32xf32> to vector<2x32xf32>
    %130 = arith.addf %127, %129 : vector<2x32xf32>
    %cst_87 = arith.constant 0.000000e+00 : f32
    %131 = vector.broadcast %cst_87 : f32 to vector<2x32xf32>
    %132 = arith.maximumf %130, %131 : vector<2x32xf32>
    %c0_88 = arith.constant 0 : index
    %c96_89 = arith.constant 96 : index
    %133 = vector.load %arg5[%c0_88, %c96_89] : memref<32x384xf32, #tpu.memory_space<vmem>>, vector<32x32xf32>
    %cst_90 = arith.constant dense<0.000000e+00> : vector<2x32xf32>
    %134 = tpu.matmul %132, %133, %cst_90 {dimension_numbers = #tpu.dot_dimension_numbers<[1], [0], [0], [1], [0, 0, 1, 1], [], []>} : vector<2x32xf32>, vector<32x32xf32>, vector<2x32xf32> -> vector<2x32xf32>
    %c0_91 = arith.constant 0 : index
    %c336_92 = arith.constant 336 : index
    %135 = vector.load %arg8[%c0_91, %c336_92] : memref<1x1008xf32, #tpu.memory_space<vmem>>, vector<1x32xf32>
    %136 = vector.broadcast %135 : vector<1x32xf32> to vector<2x32xf32>
    %137 = arith.addf %134, %136 : vector<2x32xf32>
    %cst_93 = arith.constant 0.000000e+00 : f32
    %138 = vector.broadcast %cst_93 : f32 to vector<2x32xf32>
    %139 = arith.maximumf %137, %138 : vector<2x32xf32>
    %c0_94 = arith.constant 0 : index
    %c128_95 = arith.constant 128 : index
    %140 = vector.load %arg5[%c0_94, %c128_95] : memref<32x384xf32, #tpu.memory_space<vmem>>, vector<32x32xf32>
    %cst_96 = arith.constant dense<0.000000e+00> : vector<2x32xf32>
    %141 = tpu.matmul %125, %140, %cst_96 {dimension_numbers = #tpu.dot_dimension_numbers<[1], [0], [0], [1], [0, 0, 1, 1], [], []>} : vector<2x32xf32>, vector<32x32xf32>, vector<2x32xf32> -> vector<2x32xf32>
    %c0_97 = arith.constant 0 : index
    %c368_98 = arith.constant 368 : index
    %142 = vector.load %arg8[%c0_97, %c368_98] : memref<1x1008xf32, #tpu.memory_space<vmem>>, vector<1x32xf32>
    %143 = vector.broadcast %142 : vector<1x32xf32> to vector<2x32xf32>
    %144 = arith.addf %141, %143 : vector<2x32xf32>
    %cst_99 = arith.constant 0.000000e+00 : f32
    %145 = vector.broadcast %cst_99 : f32 to vector<2x32xf32>
    %146 = arith.maximumf %144, %145 : vector<2x32xf32>
    %c0_100 = arith.constant 0 : index
    %c160_101 = arith.constant 160 : index
    %147 = vector.load %arg5[%c0_100, %c160_101] : memref<32x384xf32, #tpu.memory_space<vmem>>, vector<32x16xf32>
    %cst_102 = arith.constant dense<0.000000e+00> : vector<2x16xf32>
    %148 = tpu.matmul %146, %147, %cst_102 {dimension_numbers = #tpu.dot_dimension_numbers<[1], [0], [0], [1], [0, 0, 1, 1], [], []>} : vector<2x32xf32>, vector<32x16xf32>, vector<2x16xf32> -> vector<2x16xf32>
    %c0_103 = arith.constant 0 : index
    %c400_104 = arith.constant 400 : index
    %149 = vector.load %arg8[%c0_103, %c400_104] : memref<1x1008xf32, #tpu.memory_space<vmem>>, vector<1x16xf32>
    %150 = vector.broadcast %149 : vector<1x16xf32> to vector<2x16xf32>
    %151 = arith.addf %148, %150 : vector<2x16xf32>
    %152 = vector.extract_strided_slice %151 {offsets = [0, 0], sizes = [2, 8], strides = [1, 1]} : vector<2x16xf32> to vector<2x8xf32>
    %153 = vector.extract_strided_slice %151 {offsets = [0, 8], sizes = [2, 8], strides = [1, 1]} : vector<2x16xf32> to vector<2x8xf32>
    %cst_105 = arith.constant 0.000000e+00 : f32
    %154 = vector.broadcast %cst_105 : f32 to vector<2x8xf32>
    %155 = arith.maximumf %153, %154 : vector<2x8xf32>
    %156 = math.absf %153 : vector<2x8xf32>
    %cst_106 = arith.constant 0.000000e+00 : f32
    %157 = vector.broadcast %cst_106 : f32 to vector<2x8xf32>
    %158 = arith.subf %157, %156 : vector<2x8xf32>
    %159 = math.exp %158 : vector<2x8xf32>
    %cst_107 = arith.constant 1.000000e+00 : f32
    %160 = vector.broadcast %cst_107 : f32 to vector<2x8xf32>
    %161 = arith.addf %160, %159 : vector<2x8xf32>
    %162 = math.log %161 : vector<2x8xf32>
    %163 = arith.addf %155, %162 : vector<2x8xf32>
    %c0_108 = arith.constant 0 : index
    %c176_109 = arith.constant 176 : index
    %164 = vector.load %arg5[%c0_108, %c176_109] : memref<32x384xf32, #tpu.memory_space<vmem>>, vector<32x32xf32>
    %cst_110 = arith.constant dense<0.000000e+00> : vector<2x32xf32>
    %165 = tpu.matmul %139, %164, %cst_110 {dimension_numbers = #tpu.dot_dimension_numbers<[1], [0], [0], [1], [0, 0, 1, 1], [], []>} : vector<2x32xf32>, vector<32x32xf32>, vector<2x32xf32> -> vector<2x32xf32>
    %c0_111 = arith.constant 0 : index
    %c416_112 = arith.constant 416 : index
    %166 = vector.load %arg8[%c0_111, %c416_112] : memref<1x1008xf32, #tpu.memory_space<vmem>>, vector<1x32xf32>
    %167 = vector.broadcast %166 : vector<1x32xf32> to vector<2x32xf32>
    %168 = arith.addf %165, %167 : vector<2x32xf32>
    %cst_113 = arith.constant 0.000000e+00 : f32
    %169 = vector.broadcast %cst_113 : f32 to vector<2x32xf32>
    %170 = arith.maximumf %168, %169 : vector<2x32xf32>
    %c0_114 = arith.constant 0 : index
    %c208_115 = arith.constant 208 : index
    %171 = vector.load %arg5[%c0_114, %c208_115] : memref<32x384xf32, #tpu.memory_space<vmem>>, vector<32x32xf32>
    %cst_116 = arith.constant dense<0.000000e+00> : vector<2x32xf32>
    %172 = tpu.matmul %170, %171, %cst_116 {dimension_numbers = #tpu.dot_dimension_numbers<[1], [0], [0], [1], [0, 0, 1, 1], [], []>} : vector<2x32xf32>, vector<32x32xf32>, vector<2x32xf32> -> vector<2x32xf32>
    %c0_117 = arith.constant 0 : index
    %c448_118 = arith.constant 448 : index
    %173 = vector.load %arg8[%c0_117, %c448_118] : memref<1x1008xf32, #tpu.memory_space<vmem>>, vector<1x32xf32>
    %174 = vector.broadcast %173 : vector<1x32xf32> to vector<2x32xf32>
    %175 = arith.addf %172, %174 : vector<2x32xf32>
    %cst_119 = arith.constant 0.000000e+00 : f32
    %176 = vector.broadcast %cst_119 : f32 to vector<2x32xf32>
    %177 = arith.maximumf %175, %176 : vector<2x32xf32>
    %c0_120 = arith.constant 0 : index
    %c240_121 = arith.constant 240 : index
    %178 = vector.load %arg5[%c0_120, %c240_121] : memref<32x384xf32, #tpu.memory_space<vmem>>, vector<32x16xf32>
    %cst_122 = arith.constant dense<0.000000e+00> : vector<2x16xf32>
    %179 = tpu.matmul %177, %178, %cst_122 {dimension_numbers = #tpu.dot_dimension_numbers<[1], [0], [0], [1], [0, 0, 1, 1], [], []>} : vector<2x32xf32>, vector<32x16xf32>, vector<2x16xf32> -> vector<2x16xf32>
    %c0_123 = arith.constant 0 : index
    %c480_124 = arith.constant 480 : index
    %180 = vector.load %arg8[%c0_123, %c480_124] : memref<1x1008xf32, #tpu.memory_space<vmem>>, vector<1x16xf32>
    %181 = vector.broadcast %180 : vector<1x16xf32> to vector<2x16xf32>
    %182 = arith.addf %179, %181 : vector<2x16xf32>
    %183 = vector.extract_strided_slice %182 {offsets = [0, 0], sizes = [2, 8], strides = [1, 1]} : vector<2x16xf32> to vector<2x8xf32>
    %184 = vector.extract_strided_slice %182 {offsets = [0, 8], sizes = [2, 8], strides = [1, 1]} : vector<2x16xf32> to vector<2x8xf32>
    %cst_125 = arith.constant 0.000000e+00 : f32
    %185 = vector.broadcast %cst_125 : f32 to vector<2x8xf32>
    %186 = arith.maximumf %184, %185 : vector<2x8xf32>
    %187 = math.absf %184 : vector<2x8xf32>
    %cst_126 = arith.constant 0.000000e+00 : f32
    %188 = vector.broadcast %cst_126 : f32 to vector<2x8xf32>
    %189 = arith.subf %188, %187 : vector<2x8xf32>
    %190 = math.exp %189 : vector<2x8xf32>
    %cst_127 = arith.constant 1.000000e+00 : f32
    %191 = vector.broadcast %cst_127 : f32 to vector<2x8xf32>
    %192 = arith.addf %191, %190 : vector<2x8xf32>
    %193 = math.log %192 : vector<2x8xf32>
    %194 = arith.addf %186, %193 : vector<2x8xf32>
    %c0_128 = arith.constant 0 : index
    %c0_129 = arith.constant 0 : index
    %195 = vector.load %arg2[%c0_128, %c0_129] : memref<2x24xf32, #tpu.memory_space<vmem>>, vector<2x24xf32>
    %196 = vector.extract_strided_slice %195 {offsets = [0, 0], sizes = [2, 8], strides = [1, 1]} : vector<2x24xf32> to vector<2x8xf32>
    %197 = arith.mulf %116, %196 : vector<2x8xf32>
    %198 = arith.addf %105, %197 : vector<2x8xf32>
    %199 = vector.extract_strided_slice %195 {offsets = [0, 8], sizes = [2, 8], strides = [1, 1]} : vector<2x24xf32> to vector<2x8xf32>
    %200 = arith.mulf %163, %199 : vector<2x8xf32>
    %201 = arith.addf %152, %200 : vector<2x8xf32>
    %202 = vector.extract_strided_slice %195 {offsets = [0, 16], sizes = [2, 8], strides = [1, 1]} : vector<2x24xf32> to vector<2x8xf32>
    %203 = arith.mulf %194, %202 : vector<2x8xf32>
    %204 = arith.addf %183, %203 : vector<2x8xf32>
    %205 = tpu.concatenate %204, %201, %198 in 1 : vector<2x8xf32>, vector<2x8xf32>, vector<2x8xf32> -> vector<2x24xf32>
    %c0_130 = arith.constant 0 : index
    %c0_131 = arith.constant 0 : index
    %206 = vector.load %arg6[%c0_130, %c0_131] : memref<24x96xf32, #tpu.memory_space<vmem>>, vector<24x96xf32>
    %cst_132 = arith.constant dense<0.000000e+00> : vector<2x96xf32>
    %207 = tpu.matmul %205, %206, %cst_132 {dimension_numbers = #tpu.dot_dimension_numbers<[1], [0], [0], [1], [0, 0, 1, 1], [], []>} : vector<2x24xf32>, vector<24x96xf32>, vector<2x96xf32> -> vector<2x96xf32>
    %c0_133 = arith.constant 0 : index
    %c624 = arith.constant 624 : index
    %208 = vector.load %arg8[%c0_133, %c624] : memref<1x1008xf32, #tpu.memory_space<vmem>>, vector<1x96xf32>
    %209 = vector.broadcast %208 : vector<1x96xf32> to vector<2x96xf32>
    %210 = arith.addf %207, %209 : vector<2x96xf32>
    %211 = vector.extract_strided_slice %210 {offsets = [0, 0], sizes = [2, 32], strides = [1, 1]} : vector<2x96xf32> to vector<2x32xf32>
    %cst_134 = arith.constant 0.000000e+00 : f32
    %212 = vector.broadcast %cst_134 : f32 to vector<2x32xf32>
    %213 = arith.maximumf %211, %212 : vector<2x32xf32>
    %214 = vector.extract_strided_slice %210 {offsets = [0, 32], sizes = [2, 32], strides = [1, 1]} : vector<2x96xf32> to vector<2x32xf32>
    %215 = vector.extract_strided_slice %210 {offsets = [0, 64], sizes = [2, 32], strides = [1, 1]} : vector<2x96xf32> to vector<2x32xf32>
    %c0_135 = arith.constant 0 : index
    %c256_136 = arith.constant 256 : index
    %216 = vector.load %arg5[%c0_135, %c256_136] : memref<32x384xf32, #tpu.memory_space<vmem>>, vector<32x32xf32>
    %cst_137 = arith.constant dense<0.000000e+00> : vector<2x32xf32>
    %217 = tpu.matmul %213, %216, %cst_137 {dimension_numbers = #tpu.dot_dimension_numbers<[1], [0], [0], [1], [0, 0, 1, 1], [], []>} : vector<2x32xf32>, vector<32x32xf32>, vector<2x32xf32> -> vector<2x32xf32>
    %c0_138 = arith.constant 0 : index
    %c496_139 = arith.constant 496 : index
    %218 = vector.load %arg8[%c0_138, %c496_139] : memref<1x1008xf32, #tpu.memory_space<vmem>>, vector<1x32xf32>
    %219 = vector.broadcast %218 : vector<1x32xf32> to vector<2x32xf32>
    %220 = arith.addf %217, %219 : vector<2x32xf32>
    %cst_140 = arith.constant 0.000000e+00 : f32
    %221 = vector.broadcast %cst_140 : f32 to vector<2x32xf32>
    %222 = arith.maximumf %220, %221 : vector<2x32xf32>
    %c0_141 = arith.constant 0 : index
    %c288_142 = arith.constant 288 : index
    %223 = vector.load %arg5[%c0_141, %c288_142] : memref<32x384xf32, #tpu.memory_space<vmem>>, vector<32x32xf32>
    %cst_143 = arith.constant dense<0.000000e+00> : vector<2x32xf32>
    %224 = tpu.matmul %222, %223, %cst_143 {dimension_numbers = #tpu.dot_dimension_numbers<[1], [0], [0], [1], [0, 0, 1, 1], [], []>} : vector<2x32xf32>, vector<32x32xf32>, vector<2x32xf32> -> vector<2x32xf32>
    %c0_144 = arith.constant 0 : index
    %c528 = arith.constant 528 : index
    %225 = vector.load %arg8[%c0_144, %c528] : memref<1x1008xf32, #tpu.memory_space<vmem>>, vector<1x32xf32>
    %226 = vector.broadcast %225 : vector<1x32xf32> to vector<2x32xf32>
    %227 = arith.addf %224, %226 : vector<2x32xf32>
    %228 = tpu.concatenate %227, %214 in 1 : vector<2x32xf32>, vector<2x32xf32> -> vector<2x64xf32>
    %c0_145 = arith.constant 0 : index
    %c0_146 = arith.constant 0 : index
    %229 = vector.load %arg7[%c0_145, %c0_146] : memref<64x288xf32, #tpu.memory_space<vmem>>, vector<64x32xf32>
    %cst_147 = arith.constant dense<0.000000e+00> : vector<2x32xf32>
    %230 = tpu.matmul %228, %229, %cst_147 {dimension_numbers = #tpu.dot_dimension_numbers<[1], [0], [0], [1], [0, 0, 1, 1], [], []>} : vector<2x64xf32>, vector<64x32xf32>, vector<2x32xf32> -> vector<2x32xf32>
    %c0_148 = arith.constant 0 : index
    %c720 = arith.constant 720 : index
    %231 = vector.load %arg8[%c0_148, %c720] : memref<1x1008xf32, #tpu.memory_space<vmem>>, vector<1x32xf32>
    %232 = vector.broadcast %231 : vector<1x32xf32> to vector<2x32xf32>
    %233 = arith.addf %230, %232 : vector<2x32xf32>
    %cst_149 = arith.constant 0.000000e+00 : f32
    %234 = vector.broadcast %cst_149 : f32 to vector<2x32xf32>
    %235 = arith.maximumf %233, %234 : vector<2x32xf32>
    %c0_150 = arith.constant 0 : index
    %c320_151 = arith.constant 320 : index
    %236 = vector.load %arg5[%c0_150, %c320_151] : memref<32x384xf32, #tpu.memory_space<vmem>>, vector<32x32xf32>
    %cst_152 = arith.constant dense<0.000000e+00> : vector<2x32xf32>
    %237 = tpu.matmul %235, %236, %cst_152 {dimension_numbers = #tpu.dot_dimension_numbers<[1], [0], [0], [1], [0, 0, 1, 1], [], []>} : vector<2x32xf32>, vector<32x32xf32>, vector<2x32xf32> -> vector<2x32xf32>
    %c0_153 = arith.constant 0 : index
    %c560 = arith.constant 560 : index
    %238 = vector.load %arg8[%c0_153, %c560] : memref<1x1008xf32, #tpu.memory_space<vmem>>, vector<1x32xf32>
    %239 = vector.broadcast %238 : vector<1x32xf32> to vector<2x32xf32>
    %240 = arith.addf %237, %239 : vector<2x32xf32>
    %cst_154 = arith.constant 0.000000e+00 : f32
    %241 = vector.broadcast %cst_154 : f32 to vector<2x32xf32>
    %242 = arith.maximumf %240, %241 : vector<2x32xf32>
    %c0_155 = arith.constant 0 : index
    %c352_156 = arith.constant 352 : index
    %243 = vector.load %arg5[%c0_155, %c352_156] : memref<32x384xf32, #tpu.memory_space<vmem>>, vector<32x32xf32>
    %cst_157 = arith.constant dense<0.000000e+00> : vector<2x32xf32>
    %244 = tpu.matmul %242, %243, %cst_157 {dimension_numbers = #tpu.dot_dimension_numbers<[1], [0], [0], [1], [0, 0, 1, 1], [], []>} : vector<2x32xf32>, vector<32x32xf32>, vector<2x32xf32> -> vector<2x32xf32>
    %c0_158 = arith.constant 0 : index
    %c592 = arith.constant 592 : index
    %245 = vector.load %arg8[%c0_158, %c592] : memref<1x1008xf32, #tpu.memory_space<vmem>>, vector<1x32xf32>
    %246 = vector.broadcast %245 : vector<1x32xf32> to vector<2x32xf32>
    %247 = arith.addf %244, %246 : vector<2x32xf32>
    %248 = tpu.concatenate %247, %215 in 1 : vector<2x32xf32>, vector<2x32xf32> -> vector<2x64xf32>
    %c0_159 = arith.constant 0 : index
    %c32_160 = arith.constant 32 : index
    %249 = vector.load %arg7[%c0_159, %c32_160] : memref<64x288xf32, #tpu.memory_space<vmem>>, vector<64x256xf32>
    %cst_161 = arith.constant dense<0.000000e+00> : vector<2x256xf32>
    %250 = tpu.matmul %248, %249, %cst_161 {dimension_numbers = #tpu.dot_dimension_numbers<[1], [0], [0], [1], [0, 0, 1, 1], [], []>} : vector<2x64xf32>, vector<64x256xf32>, vector<2x256xf32> -> vector<2x256xf32>
    %c0_162 = arith.constant 0 : index
    %c752 = arith.constant 752 : index
    %251 = vector.load %arg8[%c0_162, %c752] : memref<1x1008xf32, #tpu.memory_space<vmem>>, vector<1x256xf32>
    %252 = vector.broadcast %251 : vector<1x256xf32> to vector<2x256xf32>
    %253 = arith.addf %250, %252 : vector<2x256xf32>
    %cst_163 = arith.constant 0.000000e+00 : f32
    %254 = vector.broadcast %cst_163 : f32 to vector<2x256xf32>
    %255 = arith.maximumf %253, %254 : vector<2x256xf32>
    %256 = tpu.concatenate %104, %139, %105, %116, %152, %163, %183, %194, %198, %201, %204, %227, %247 in 1 : vector<2x32xf32>, vector<2x32xf32>, vector<2x8xf32>, vector<2x8xf32>, vector<2x8xf32>, vector<2x8xf32>, vector<2x8xf32>, vector<2x8xf32>, vector<2x8xf32>, vector<2x8xf32>, vector<2x8xf32>, vector<2x32xf32>, vector<2x32xf32> -> vector<2x200xf32>
    %cst_164 = arith.constant 0.000000e+00 : f32
    %257 = vector.broadcast %cst_164 : f32 to vector<2x56xf32>
    %258 = tpu.concatenate %256, %257 in 1 : vector<2x200xf32>, vector<2x56xf32> -> vector<2x256xf32>
    %c0_165 = arith.constant 0 : index
    %c0_166 = arith.constant 0 : index
    %259 = vector.load %arg9[%c0_165, %c0_166] : memref<2x256xf32, #tpu.memory_space<vmem>>, vector<2x256xf32>
    tpu.vector_store %arg9[%c0_165, %c0_166], %258 {strides = array<i32>} : memref<2x256xf32, #tpu.memory_space<vmem>>, vector<2x256xf32>,
    %260 = vector.extract_strided_slice %255 {offsets = [0, 0], sizes = [2, 16], strides = [1, 1]} : vector<2x256xf32> to vector<2x16xf32>
    %c0_167 = arith.constant 0 : index
    %c0_168 = arith.constant 0 : index
    %261 = vector.load %arg13[%c0_167, %c0_168] : memref<32x16xf32, #tpu.memory_space<vmem>>, vector<2x16xf32>
    tpu.vector_store %arg13[%c0_167, %c0_168], %260 {strides = array<i32>} : memref<32x16xf32, #tpu.memory_space<vmem>>, vector<2x16xf32>,
    %262 = vector.extract_strided_slice %255 {offsets = [0, 16], sizes = [2, 16], strides = [1, 1]} : vector<2x256xf32> to vector<2x16xf32>
    %c2_169 = arith.constant 2 : index
    %c0_170 = arith.constant 0 : index
    %263 = vector.load %arg13[%c2_169, %c0_170] : memref<32x16xf32, #tpu.memory_space<vmem>>, vector<2x16xf32>
    tpu.vector_store %arg13[%c2_169, %c0_170], %262 {strides = array<i32>} : memref<32x16xf32, #tpu.memory_space<vmem>>, vector<2x16xf32>,
    %264 = vector.extract_strided_slice %255 {offsets = [0, 32], sizes = [2, 16], strides = [1, 1]} : vector<2x256xf32> to vector<2x16xf32>
    %c4_171 = arith.constant 4 : index
    %c0_172 = arith.constant 0 : index
    %265 = vector.load %arg13[%c4_171, %c0_172] : memref<32x16xf32, #tpu.memory_space<vmem>>, vector<2x16xf32>
    tpu.vector_store %arg13[%c4_171, %c0_172], %264 {strides = array<i32>} : memref<32x16xf32, #tpu.memory_space<vmem>>, vector<2x16xf32>,
    %266 = vector.extract_strided_slice %255 {offsets = [0, 48], sizes = [2, 16], strides = [1, 1]} : vector<2x256xf32> to vector<2x16xf32>
    %c6_173 = arith.constant 6 : index
    %c0_174 = arith.constant 0 : index
    %267 = vector.load %arg13[%c6_173, %c0_174] : memref<32x16xf32, #tpu.memory_space<vmem>>, vector<2x16xf32>
    tpu.vector_store %arg13[%c6_173, %c0_174], %266 {strides = array<i32>} : memref<32x16xf32, #tpu.memory_space<vmem>>, vector<2x16xf32>,
    %268 = vector.extract_strided_slice %255 {offsets = [0, 64], sizes = [2, 16], strides = [1, 1]} : vector<2x256xf32> to vector<2x16xf32>
    %c8_175 = arith.constant 8 : index
    %c0_176 = arith.constant 0 : index
    %269 = vector.load %arg13[%c8_175, %c0_176] : memref<32x16xf32, #tpu.memory_space<vmem>>, vector<2x16xf32>
    tpu.vector_store %arg13[%c8_175, %c0_176], %268 {strides = array<i32>} : memref<32x16xf32, #tpu.memory_space<vmem>>, vector<2x16xf32>,
    %270 = vector.extract_strided_slice %255 {offsets = [0, 80], sizes = [2, 16], strides = [1, 1]} : vector<2x256xf32> to vector<2x16xf32>
    %c10_177 = arith.constant 10 : index
    %c0_178 = arith.constant 0 : index
    %271 = vector.load %arg13[%c10_177, %c0_178] : memref<32x16xf32, #tpu.memory_space<vmem>>, vector<2x16xf32>
    tpu.vector_store %arg13[%c10_177, %c0_178], %270 {strides = array<i32>} : memref<32x16xf32, #tpu.memory_space<vmem>>, vector<2x16xf32>,
    %272 = vector.extract_strided_slice %255 {offsets = [0, 96], sizes = [2, 16], strides = [1, 1]} : vector<2x256xf32> to vector<2x16xf32>
    %c12_179 = arith.constant 12 : index
    %c0_180 = arith.constant 0 : index
    %273 = vector.load %arg13[%c12_179, %c0_180] : memref<32x16xf32, #tpu.memory_space<vmem>>, vector<2x16xf32>
    tpu.vector_store %arg13[%c12_179, %c0_180], %272 {strides = array<i32>} : memref<32x16xf32, #tpu.memory_space<vmem>>, vector<2x16xf32>,
    %274 = vector.extract_strided_slice %255 {offsets = [0, 112], sizes = [2, 16], strides = [1, 1]} : vector<2x256xf32> to vector<2x16xf32>
    %c14_181 = arith.constant 14 : index
    %c0_182 = arith.constant 0 : index
    %275 = vector.load %arg13[%c14_181, %c0_182] : memref<32x16xf32, #tpu.memory_space<vmem>>, vector<2x16xf32>
    tpu.vector_store %arg13[%c14_181, %c0_182], %274 {strides = array<i32>} : memref<32x16xf32, #tpu.memory_space<vmem>>, vector<2x16xf32>,
    %276 = vector.extract_strided_slice %255 {offsets = [0, 128], sizes = [2, 16], strides = [1, 1]} : vector<2x256xf32> to vector<2x16xf32>
    %c16_183 = arith.constant 16 : index
    %c0_184 = arith.constant 0 : index
    %277 = vector.load %arg13[%c16_183, %c0_184] : memref<32x16xf32, #tpu.memory_space<vmem>>, vector<2x16xf32>
    tpu.vector_store %arg13[%c16_183, %c0_184], %276 {strides = array<i32>} : memref<32x16xf32, #tpu.memory_space<vmem>>, vector<2x16xf32>,
    %278 = vector.extract_strided_slice %255 {offsets = [0, 144], sizes = [2, 16], strides = [1, 1]} : vector<2x256xf32> to vector<2x16xf32>
    %c18_185 = arith.constant 18 : index
    %c0_186 = arith.constant 0 : index
    %279 = vector.load %arg13[%c18_185, %c0_186] : memref<32x16xf32, #tpu.memory_space<vmem>>, vector<2x16xf32>
    tpu.vector_store %arg13[%c18_185, %c0_186], %278 {strides = array<i32>} : memref<32x16xf32, #tpu.memory_space<vmem>>, vector<2x16xf32>,
    %280 = vector.extract_strided_slice %255 {offsets = [0, 160], sizes = [2, 16], strides = [1, 1]} : vector<2x256xf32> to vector<2x16xf32>
    %c20_187 = arith.constant 20 : index
    %c0_188 = arith.constant 0 : index
    %281 = vector.load %arg13[%c20_187, %c0_188] : memref<32x16xf32, #tpu.memory_space<vmem>>, vector<2x16xf32>
    tpu.vector_store %arg13[%c20_187, %c0_188], %280 {strides = array<i32>} : memref<32x16xf32, #tpu.memory_space<vmem>>, vector<2x16xf32>,
    %282 = vector.extract_strided_slice %255 {offsets = [0, 176], sizes = [2, 16], strides = [1, 1]} : vector<2x256xf32> to vector<2x16xf32>
    %c22_189 = arith.constant 22 : index
    %c0_190 = arith.constant 0 : index
    %283 = vector.load %arg13[%c22_189, %c0_190] : memref<32x16xf32, #tpu.memory_space<vmem>>, vector<2x16xf32>
    tpu.vector_store %arg13[%c22_189, %c0_190], %282 {strides = array<i32>} : memref<32x16xf32, #tpu.memory_space<vmem>>, vector<2x16xf32>,
    %284 = vector.extract_strided_slice %255 {offsets = [0, 192], sizes = [2, 16], strides = [1, 1]} : vector<2x256xf32> to vector<2x16xf32>
    %c24_191 = arith.constant 24 : index
    %c0_192 = arith.constant 0 : index
    %285 = vector.load %arg13[%c24_191, %c0_192] : memref<32x16xf32, #tpu.memory_space<vmem>>, vector<2x16xf32>
    tpu.vector_store %arg13[%c24_191, %c0_192], %284 {strides = array<i32>} : memref<32x16xf32, #tpu.memory_space<vmem>>, vector<2x16xf32>,
    %286 = vector.extract_strided_slice %255 {offsets = [0, 208], sizes = [2, 16], strides = [1, 1]} : vector<2x256xf32> to vector<2x16xf32>
    %c26_193 = arith.constant 26 : index
    %c0_194 = arith.constant 0 : index
    %287 = vector.load %arg13[%c26_193, %c0_194] : memref<32x16xf32, #tpu.memory_space<vmem>>, vector<2x16xf32>
    tpu.vector_store %arg13[%c26_193, %c0_194], %286 {strides = array<i32>} : memref<32x16xf32, #tpu.memory_space<vmem>>, vector<2x16xf32>,
    %288 = vector.extract_strided_slice %255 {offsets = [0, 224], sizes = [2, 16], strides = [1, 1]} : vector<2x256xf32> to vector<2x16xf32>
    %c28_195 = arith.constant 28 : index
    %c0_196 = arith.constant 0 : index
    %289 = vector.load %arg13[%c28_195, %c0_196] : memref<32x16xf32, #tpu.memory_space<vmem>>, vector<2x16xf32>
    tpu.vector_store %arg13[%c28_195, %c0_196], %288 {strides = array<i32>} : memref<32x16xf32, #tpu.memory_space<vmem>>, vector<2x16xf32>,
    %290 = vector.extract_strided_slice %255 {offsets = [0, 240], sizes = [2, 16], strides = [1, 1]} : vector<2x256xf32> to vector<2x16xf32>
    %c30_197 = arith.constant 30 : index
    %c0_198 = arith.constant 0 : index
    %291 = vector.load %arg13[%c30_197, %c0_198] : memref<32x16xf32, #tpu.memory_space<vmem>>, vector<2x16xf32>
    tpu.vector_store %arg13[%c30_197, %c0_198], %290 {strides = array<i32>} : memref<32x16xf32, #tpu.memory_space<vmem>>, vector<2x16xf32>,
    %c0_199 = arith.constant 0 : index
    %c0_200 = arith.constant 0 : index
    %292 = vector.load %arg13[%c0_199, %c0_200] : memref<32x16xf32, #tpu.memory_space<vmem>>, vector<32x16xf32>
    %c128_201 = arith.constant 128 : index
    %c0_202 = arith.constant 0 : index
    %293 = vector.load %arg3[%c128_201, %c0_202] : memref<176x64xf32, #tpu.memory_space<vmem>>, vector<16x32xf32>
    %cst_203 = arith.constant dense<0.000000e+00> : vector<32x32xf32>
    %294 = tpu.matmul %292, %293, %cst_203 {dimension_numbers = #tpu.dot_dimension_numbers<[1], [0], [0], [1], [0, 0, 1, 1], [], []>} : vector<32x16xf32>, vector<16x32xf32>, vector<32x32xf32> -> vector<32x32xf32>
    %c0_204 = arith.constant 0 : index
    %c96_205 = arith.constant 96 : index
    %295 = vector.load %arg8[%c0_204, %c96_205] : memref<1x1008xf32, #tpu.memory_space<vmem>>, vector<1x32xf32>
    %296 = vector.broadcast %295 : vector<1x32xf32> to vector<32x32xf32>
    %297 = arith.addf %294, %296 : vector<32x32xf32>
    %cst_206 = arith.constant 0.000000e+00 : f32
    %298 = vector.broadcast %cst_206 : f32 to vector<32x32xf32>
    %299 = arith.maximumf %297, %298 : vector<32x32xf32>
    %c144_207 = arith.constant 144 : index
    %c0_208 = arith.constant 0 : index
    %300 = vector.load %arg3[%c144_207, %c0_208] : memref<176x64xf32, #tpu.memory_space<vmem>>, vector<32x64xf32>
    %cst_209 = arith.constant dense<0.000000e+00> : vector<32x64xf32>
    %301 = tpu.matmul %299, %300, %cst_209 {dimension_numbers = #tpu.dot_dimension_numbers<[1], [0], [0], [1], [0, 0, 1, 1], [], []>} : vector<32x32xf32>, vector<32x64xf32>, vector<32x64xf32> -> vector<32x64xf32>
    %c0_210 = arith.constant 0 : index
    %c128_211 = arith.constant 128 : index
    %302 = vector.load %arg8[%c0_210, %c128_211] : memref<1x1008xf32, #tpu.memory_space<vmem>>, vector<1x64xf32>
    %303 = vector.broadcast %302 : vector<1x64xf32> to vector<32x64xf32>
    %304 = arith.addf %301, %303 : vector<32x64xf32>
    %cst_212 = arith.constant 0.000000e+00 : f32
    %305 = vector.broadcast %cst_212 : f32 to vector<32x64xf32>
    %306 = arith.subf %305, %304 : vector<32x64xf32>
    %307 = math.exp %306 : vector<32x64xf32>
    %cst_213 = arith.constant 1.000000e+00 : f32
    %308 = vector.broadcast %cst_213 : f32 to vector<32x64xf32>
    %309 = arith.addf %308, %307 : vector<32x64xf32>
    %cst_214 = arith.constant 1.000000e+00 : f32
    %310 = vector.broadcast %cst_214 : f32 to vector<32x64xf32>
    %311 = arith.divf %310, %309 : vector<32x64xf32>
    %312 = tpu.concatenate %304, %311 in 1 : vector<32x64xf32>, vector<32x64xf32> -> vector<32x128xf32>
    %c0_215 = arith.constant 0 : index
    %c0_216 = arith.constant 0 : index
    %313 = vector.load %arg10[%c0_215, %c0_216] : memref<32x128xf32, #tpu.memory_space<vmem>>, vector<32x128xf32>
    tpu.vector_store %arg10[%c0_215, %c0_216], %312 {strides = array<i32>} : memref<32x128xf32, #tpu.memory_space<vmem>>, vector<32x128xf32>,
    return
  }
  func.func @transform_0(%arg0: i32) -> (i32, i32) {
    %c0_i32 = arith.constant 0 : i32
    %c0_i32_0 = arith.constant 0 : i32
    %c0_i32_1 = arith.constant 0 : i32
    return %c0_i32, %c0_i32_0 : i32, i32
  }
  func.func @transform_1(%arg0: i32) -> (i32, i32) {
    %c0_i32 = arith.constant 0 : i32
    %c0_i32_0 = arith.constant 0 : i32
    %c0_i32_1 = arith.constant 0 : i32
    return %c0_i32, %c0_i32_0 : i32, i32
  }
  func.func @transform_2(%arg0: i32) -> (i32, i32) {
    %c0_i32 = arith.constant 0 : i32
    %c0_i32_0 = arith.constant 0 : i32
    %c0_i32_1 = arith.constant 0 : i32
    return %c0_i32, %c0_i32_0 : i32, i32
  }
  func.func @transform_3(%arg0: i32) -> (i32, i32) {
    %c0_i32 = arith.constant 0 : i32
    %c0_i32_0 = arith.constant 0 : i32
    %c0_i32_1 = arith.constant 0 : i32
    return %c0_i32, %c0_i32_0 : i32, i32
  }
  func.func @transform_4(%arg0: i32) -> (i32, i32) {
    %c0_i32 = arith.constant 0 : i32
    %c0_i32_0 = arith.constant 0 : i32
    %c0_i32_1 = arith.constant 0 : i32
    return %c0_i32, %c0_i32_0 : i32, i32
  }
  func.func @transform_5(%arg0: i32) -> (i32, i32) {
    %c0_i32 = arith.constant 0 : i32
    %c0_i32_0 = arith.constant 0 : i32
    %c0_i32_1 = arith.constant 0 : i32
    return %c0_i32, %c0_i32_0 : i32, i32
  }
  func.func @transform_6(%arg0: i32) -> (i32, i32) {
    %c0_i32 = arith.constant 0 : i32
    %c0_i32_0 = arith.constant 0 : i32
    %c0_i32_1 = arith.constant 0 : i32
    return %c0_i32, %c0_i32_0 : i32, i32
  }
  func.func @transform_7(%arg0: i32) -> (i32, i32) {
    %c0_i32 = arith.constant 0 : i32
    %c0_i32_0 = arith.constant 0 : i32
    %c0_i32_1 = arith.constant 0 : i32
    return %c0_i32, %c0_i32_0 : i32, i32
  }
  func.func @transform_8(%arg0: i32) -> (i32, i32) {
    %c0_i32 = arith.constant 0 : i32
    %c0_i32_0 = arith.constant 0 : i32
    %c0_i32_1 = arith.constant 0 : i32
    return %c0_i32, %c0_i32_0 : i32, i32
  }
  func.func @transform_9(%arg0: i32) -> (i32, i32) {
    %c0_i32 = arith.constant 0 : i32
    %c0_i32_0 = arith.constant 0 : i32
    %c0_i32_1 = arith.constant 0 : i32
    return %c0_i32, %c0_i32_0 : i32, i32
  }
}

</mosaic_0001>

<bundles_post_ra>
// kernel: vladder_forward.1
= control target key start
LH: loop header
LB: loop body
LE: loop exit
PB: predicated region body
PF: predicated region fallthrough
CT: control target
= control target key end

     0   :  { %vm50_vm0 = vcmask 523264   ;;  %s3645_s30 = smov 64   ;;  %vm264_vm1 = vcmask 261120   ;;  %vm270_vm2 = vcmask 123904   ;;  %s3647_s10 = smov 80   ;;  %v276_v60 = vlaneseq  ;;  %s4626_s2 = inlined_call_operand.vmem [shape: f32[176,64], index: 2, kind: input, shape index: {}]   ;;  %s4627_s0 = inlined_call_operand.vmem [shape: f32[32,64], index: 0, kind: input, shape index: {}]   ;;  %s4628_s7 = inlined_call_operand.vmem [shape: f32[1,1008], index: 7, kind: input, shape index: {}]   ;;  %s4629_s3 = inlined_call_operand.vmem [shape: f32[512,48], index: 3, kind: input, shape index: {}]   ;;  %s4630_s4 = inlined_call_operand.vmem [shape: f32[32,384], index: 4, kind: input, shape index: {}]   ;;  %s4631_s1 = inlined_call_operand.vmem [shape: f32[2,24], index: 1, kind: input, shape index: {}]   ;;  %s4632_s5 = inlined_call_operand.vmem [shape: f32[24,96], index: 5, kind: input, shape index: {}]   ;;  %s4633_s6 = inlined_call_operand.vmem [shape: f32[64,288], index: 6, kind: input, shape index: {}]   ;;  %s4634_s8 = inlined_call_operand.vmem [shape: f32[2,256], index: 8, kind: output, shape index: {0}]   ;;  %s4635_s9 = inlined_call_operand.vmem [shape: f32[32,128], index: 9, kind: output, shape index: {1}]  }
   0x1   :  { %v35_v0 = vld [vmem:[%s4626_s2] sm:$0xff]  ;;  %v36_v1 = vld [vmem:[%s4626_s2 + $0x8] sm:$0xff]  ;;  %v37_v2 = vld [vmem:[%s4626_s2 + $0x10] sm:$0xff]  ;;  %v3648_v58 = vmov 1983009808   ;;  %s3649_s11 = smov 96  }
   0x2   :  { %v3241_v3 = vpack.c.bf16 %v36_v1, %v35_v0  ;;  %v38_v4 = vld [vmem:[%s4626_s2 + $0x18] sm:$0xff]  ;;  %v39_v6 = vld [vmem:[%s4626_s2 + $0x20] sm:$0xff]  ;;  %v40_v7 = vld [vmem:[%s4626_s2 + $0x28] sm:$0xff]  ;;  %v274_v59 = vunpack.c.l.s4 %v3648_v58  ;;  %v3796_v63 = vshrl.u32 %v276_v60, 7  ;;  %s3650_s12 = smov 16   ;;  %s3651_s13 = smov 32  }
   0x3   :  { %v3245_v5 = vpack.c.bf16 %v38_v4, %v37_v2  ;;  %v31_v8 = vld [vmem:[%s4627_s0] sm:$0xff]  ;;  %v153_v10 = vld [vmem:[%s4626_s2 + $0x48] sm:$0xff]  ;;  %v154_v11 = vld [vmem:[%s4626_s2 + $0x50] sm:$0xff]  ;;  %v3249_v12 = vpack.c.bf16 %v40_v7, %v39_v6  ;;  %s3652_s20 = smov 112   ;;  %vm296_vm3 = vcmask 255104   ;;  %vm311_vm4 = vcmask 386304  }
   0x4   :  { %3242 = vmatprep.subr.bf16.mxu0 %v3241_v3  ;;  %3029 = vmatprep.mubr.msk.f32.mxu0 %vm50_vm0, %v31_v8  ;;  %v152_v9 = vld [vmem:[%s4626_s2 + $0x40] sm:$0xff]  ;;  %v41_v13 = vld [vmem:[%s4626_s2 + $0x30] sm:$0xff]  ;;  %v155_v15 = vld [vmem:[%s4626_s2 + $0x58] sm:$0xff]  ;;  %v275_v62 = vunpack.c.0.s8 %v274_v59  ;;  %vm329_vm5 = vcmask 517504   ;;  %vm347_vm6 = vcmask 648704   ;;  %vm365_vm7 = vcmask 779904  }
   0x5   :  { %3244 = vmatpush3.bf16.msra.mxu0 %v3241_v3  ;;  %v3257_v14 = vpack.c.bf16 %v153_v10, %v152_v9  ;;  %v42_v16 = vld [vmem:[%s4626_s2 + $0x38] sm:$0xff]  ;;  %v3261_v17 = vpack.c.bf16 %v155_v15, %v154_v11  ;;  %v156_v18 = vld [vmem:[%s4626_s2 + $0x60] sm:$0xff]  ;;  %v157_v19 = vld [vmem:[%s4626_s2 + $0x68] sm:$0xff]  ;;  %vm383_vm8 = vcmask 911104   ;;  %vm401_vm9 = vcmask 1042304   ;;  %s3656_s18 = smov 40  }
   0x6   :  { %3246 = vmatprep.subr.bf16.mxu0 %v3245_v5  ;;  %v3253_v20 = vpack.c.bf16 %v42_v16, %v41_v13  ;;  %v3265_v21 = vpack.c.bf16 %v157_v19, %v156_v18  ;;  %v32_v22 = vld [vmem:[%s4627_s0 + $0x8] sm:$0xff]  ;;  %v33_v23 = vld [vmem:[%s4627_s0 + $0x10] sm:$0xff]  ;;  %v34_v24 = vld [vmem:[%s4627_s0 + $0x18] sm:$0xff]  ;;  %s3646_s0 = smov 48   ;;  %v3801_v1 = vsub.s32 %v275_v62, %v3796_v63  ;;  %vm3654_vm10 = vmmov 0   ;;  %s3657_s19 = smov 120  }
   0x7   :  { %3258 = vmatprep.subr.bf16.mxu1 %v3257_v14  ;;  %v158_v25 = vld [vmem:[%s4626_s2 + $0x70] sm:$0xff]  ;;  %v159_v26 = vld [vmem:[%s4626_s2 + $0x78] sm:$0xff]  ;;  %v2780_v28 = vld [vmem:[%s4628_s7] ss:$0 sm:$0xff]  ;;  %vm800_vm11 = vcmask 130048   ;;  %vm1576_vm12 = vcmask 64512  }
   0x8   :  { %3260 = vmatpush3.bf16.msra.mxu1 %v3257_v14  ;;  %v3269_v27 = vpack.c.bf16 %v159_v26, %v158_v25  ;;  %160 = vrot.lane.b32.xlu0 %v2780_v28, %s3645_s30  ;;  %v554_v6 = vld [vmem:[%s4629_s3 + $0x80] sm:$0xff]  ;;  %v555_v7 = vld [vmem:[%s4629_s3 + $0x88] sm:$0xff]  ;;  %v556_v18 = vld [vmem:[%s4629_s3 + $0x90] sm:$0xff]  ;;  %vm1598_vm13 = vcmask 195584   ;;  %vm2249_vm14 = vcmask 785408   ;;  %vm2411_vm15 = vcmask 588800  }
   0x9   :  { %3248 = vmatpush3.bf16.msra.mxu0 %v3245_v5  ;;  %3262 = vmatprep.subr.bf16.mxu1 %v3261_v17  ;;  %v538_v8 = vld [vmem:[%s4629_s3] sm:$0xff]  ;;  %v3273_v9 = vpack.c.bf16 %v555_v7, %v554_v6  ;;  %v539_v10 = vld [vmem:[%s4629_s3 + $0x8] sm:$0xff]  ;;  %v588_v25 = vld [vmem:[%s4629_s3 + $0x190] sm:$0xff] }
   0xa   :  { %3250 = vmatprep.subr.bf16.mxu0 %v3249_v12  ;;  %v586_v11 = vld [vmem:[%s4629_s3 + $0x180] sm:$0xff]  ;;  %v3275_v13 = vpack.c.bf16 %v539_v10, %v538_v8  ;;  %v587_v14 = vld [vmem:[%s4629_s3 + $0x188] sm:$0xff]  ;;  %v589_v26 = vld [vmem:[%s4629_s3 + $0x198] sm:$0xff] }
   0xb   :  { %v3305_v15 = vpack.c.bf16 %v587_v14, %v586_v11  ;;  %v570_v16 = vld [vmem:[%s4629_s3 + $0x100] sm:$0xff]  ;;  %v576_v58 = vld [vmem:[%s4629_s3 + $0x130] sm:$0xff]  ;;  %v577_v59 = vld [vmem:[%s4629_s3 + $0x138] sm:$0xff] }
   0xc   :  { %3264 = vmatpush3.bf16.msra.mxu1 %v3261_v17  ;;  %v571_v17 = vld [vmem:[%s4629_s3 + $0x108] sm:$0xff]  ;;  %v562_v60 = vld [vmem:[%s4629_s3 + $0xc0] sm:$0xff]  ;;  %v564_v11 = vld [vmem:[%s4629_s3 + $0xd0] sm:$0xff] }
   0xd   :  { %3252 = vmatpush3.bf16.msra.mxu0 %v3249_v12  ;;  %3266 = vmatprep.subr.bf16.mxu1 %v3265_v21  ;;  %v3307_v19 = vpack.c.bf16 %v571_v17, %v570_v16  ;;  %v563_v62 = vld [vmem:[%s4629_s3 + $0xc8] sm:$0xff]  ;;  %v594_v6 = vld [vmem:[%s4629_s3 + $0x1c0] sm:$0xff]  ;;  %v548_v14 = vld [vmem:[%s4629_s3 + $0x50] sm:$0xff] }
   0xe   :  { %3254 = vmatprep.subr.bf16.mxu0 %v3253_v20  ;;  %v595_v7 = vld [vmem:[%s4629_s3 + $0x1c8] sm:$0xff]  ;;  %v578_v8 = vld [vmem:[%s4629_s3 + $0x140] sm:$0xff] }
   0xf   :  { %v579_v10 = vld [vmem:[%s4629_s3 + $0x148] sm:$0xff] }
  0x10   :  { %3268 = vmatpush3.bf16.msra.mxu1 %v3265_v21  ;;  %v540_v21 = vld [vmem:[%s4629_s3 + $0x10] sm:$0xff] }
  0x11   :  { %3256 = vmatpush3.bf16.msra.mxu0 %v3253_v20  ;;  %3270 = vmatprep.subr.bf16.mxu1 %v3269_v27  ;;  %v557_v20 = vld [vmem:[%s4629_s3 + $0x98] sm:$0xff] }
  0x12   :  { %3274 = vmatprep.subr.bf16.mxu0 %v3273_v9  ;;  %v3321_v9 = vpack.c.bf16 %v595_v7, %v594_v6 }
  0x14   :  { %3030 = vmatmul.mubr.msk.f32.vlgmr.msra.gmra.mrb[0].mxu0 %vm50_vm0, %v32_v22  ;;  %3272 = vmatpush3.bf16.msra.mxu1 %v3269_v27  ;;  %v541_v22 = vld [vmem:[%s4629_s3 + $0x18] sm:$0xff] }
  0x15   :  { %3032 = vmatprep.mubr.msk.f32.mxu0 %vm50_vm0, %v33_v23  ;;  %3276 = vmatpush3.bf16.msra.mxu0 %v3275_v13  ;;  %v3277_v23 = vpack.c.bf16 %v557_v20, %v556_v18  ;;  %v565_v13 = vld [vmem:[%s4629_s3 + $0xd8] sm:$0xff] }
  0x16   :  { %3306 = vmatprep.subr.bf16.mxu1 %v3305_v15  ;;  %v549_v15 = vld [vmem:[%s4629_s3 + $0x58] sm:$0xff]  ;;  %v3293_v18 = vpack.c.bf16 %v565_v13, %v564_v11 }
  0x17   :  { %3278 = vmatprep.subr.bf16.mxu0 %v3277_v23  ;;  %v597_v20 = vld [vmem:[%s4629_s3 + $0x1d8] sm:$0xff] }
  0x18   :  { %3033 = vmatmul.mubr.msk.f32.gmra.mrb[2].mxu0 %vm50_vm0, %v34_v24  ;;  %v3279_v24 = vpack.c.bf16 %v541_v22, %v540_v21  ;;  %v580_v21 = vld [vmem:[%s4629_s3 + $0x150] sm:$0xff]  ;;  %v3295_v22 = vpack.c.bf16 %v549_v15, %v548_v14  ;;  %v581_v23 = vld [vmem:[%s4629_s3 + $0x158] sm:$0xff] }
  0x1a   :  { %3280 = vmatpush3.bf16.msra.mxu0 %v3279_v24  ;;  %v566_v24 = vld [vmem:[%s4629_s3 + $0xe0] sm:$0xff] }
  0x7a   :  { %v161_v41 = vpop.permute.xlu0 %160 }
  0xe7   :  { %v3031_v29 = vpop.f32.mrb[0].mxu0 }
  0xe8   :  { %v135_v30 = vadd.f32 %v3031_v29, %v2780_v28  ;;  %v129_v31 = vpop.f32.mrb[1].mxu0  ;;  %v572_v29 = vld [vmem:[%s4629_s3 + $0x110] sm:$0xff] }
  0xe9   :  { %v130_v32 = vadd.f32 %v2780_v28, %v129_v31  ;;  %v558_v31 = vld [vmem:[%s4629_s3 + $0xa0] sm:$0xff] }
  0xea   :  { %v149_v35 = vmax.f32 %v135_v30, 0.0  ;;  %v573_v30 = vld [vmem:[%s4629_s3 + $0x118] sm:$0xff] }
  0xeb   :  { %v148_v33 = vmax.f32 %v130_v32, 0.0  ;;  %v3034_v34 = vpop.f32.mrb[2].mxu0  ;;  %v3311_v32 = vpack.c.bf16 %v573_v30, %v572_v29  ;;  %v598_v30 = vld [vmem:[%s4629_s3 + $0x1e0] sm:$0xff] }
  0xec   :  { %v145_v36 = vadd.f32 %v3034_v34, %v2780_v28  ;;  %v139_v37 = vpop.f32.mrb[3].mxu0  ;;  %v542_v34 = vld [vmem:[%s4629_s3 + $0x20] sm:$0xff] }
  0xed   :  { %v140_v38 = vadd.f32 %v2780_v28, %v139_v37  ;;  %3051 = vmatprep.mubr.msk.f32.mxu1 %vm50_vm0, %v148_v33  ;;  %v3309_v28 = vpack.c.bf16 %v589_v26, %v588_v25  ;;  %v559_v33 = vld [vmem:[%s4629_s3 + $0xa8] sm:$0xff]  ;;  %v550_v26 = vld [vmem:[%s4629_s3 + $0x60] sm:$0xff] }
  0xee   :  { %v151_v39 = vmax.f32 %v145_v36, 0.0  ;;  %3052 = vmatmul.mubr.msk.f32.vlgmr.msra.gmra.mrb[0].mxu1 %vm50_vm0, %v149_v35  ;;  %v543_v35 = vld [vmem:[%s4629_s3 + $0x28] sm:$0xff]  ;;  %v3281_v36 = vpack.c.bf16 %v559_v33, %v558_v31 }
  0xef   :  { %v150_v40 = vmax.f32 %v140_v38, 0.0  ;;  %3308 = vmatpush3.bf16.msra.mxu1 %v3307_v19  ;;  %v3283_v37 = vpack.c.bf16 %v543_v35, %v542_v34  ;;  %v590_v38 = vld [vmem:[%s4629_s3 + $0x1a0] sm:$0xff]  ;;  %v596_v19 = vld [vmem:[%s4629_s3 + $0x1d0] sm:$0xff]  ;;  %v567_v25 = vld [vmem:[%s4629_s3 + $0xe8] sm:$0xff] }
  0xf0   :  { %3310 = vmatprep.subr.bf16.mxu1 %v3309_v28  ;;  %3282 = vmatprep.subr.bf16.mxu0 %v3281_v36  ;;  %v3327_v28 = vpack.c.bf16 %v581_v23, %v580_v21  ;;  %v3297_v29 = vpack.c.bf16 %v567_v25, %v566_v24  ;;  %v599_v31 = vld [vmem:[%s4629_s3 + $0x1e8] sm:$0xff]  ;;  %v568_v35 = vld [vmem:[%s4629_s3 + $0xf0] sm:$0xff]  ;;  %v569_v36 = vld [vmem:[%s4629_s3 + $0xf8] sm:$0xff]  ;;  %v3653_v24 = vmov 0.0|0.0  }
  0xf1   :  { %3054 = vmatprep.mubr.msk.f32.mxu1 %vm50_vm0, %v150_v40  ;;  %3284 = vmatpush3.bf16.msra.mxu0 %v3283_v37  ;;  %v3329_v33 = vpack.c.bf16 %v599_v31, %v598_v30  ;;  %v583_v34 = vld [vmem:[%s4629_s3 + $0x168] sm:$0xff]  ;;  %v782_v25 = vld [vmem:[%s4630_s4] sm:$0xff]  ;;  %v3655_v30 = vmov 0.0  }
  0xf2   :  { %3055 = vmatmul.mubr.msk.f32.gmra.mrb[2].mxu1 %vm50_vm0, %v151_v39  ;;  %v591_v39 = vld [vmem:[%s4629_s3 + $0x1a8] sm:$0xff] }
  0xf3   :  { %v3313_v40 = vpack.c.bf16 %v591_v39, %v590_v38  ;;  %3312 = vmatpush3.bf16.msra.mxu1 %v3311_v32  ;;  %v582_v32 = vld [vmem:[%s4629_s3 + $0x160] sm:$0xff]  ;;  %v552_v39 = vld [vmem:[%s4629_s3 + $0x70] sm:$0xff] }
  0xf5   :  { %3314 = vmatprep.subr.bf16.mxu1 %v3313_v40  ;;  %v600_v40 = vld [vmem:[%s4629_s3 + $0x1f0] sm:$0xff] }
 0x1c1   :  { %v3053_v42 = vpop.f32.mrb[0].mxu1 }
 0x1c2   :  { %v247_v43 = vadd.f32 %v3053_v42, %v161_v41  ;;  %v241_v44 = vpop.f32.mrb[1].mxu1 }
 0x1c3   :  { %v242_v45 = vadd.f32 %v241_v44, %v161_v41  ;;  %v575_v44 = vld [vmem:[%s4629_s3 + $0x128] sm:$0xff] }
 0x1c4   :  { %v261_v46 = vmax.f32 %v247_v43, 0.0  ;;  %v574_v43 = vld [vmem:[%s4629_s3 + $0x120] sm:$0xff] }
 0x1c5   :  { %v260_v47 = vmax.f32 %v242_v45, 0.0  ;;  %v3056_v48 = vpop.f32.mrb[2].mxu1  ;;  %v560_v45 = vld [vmem:[%s4629_s3 + $0xb0] sm:$0xff] }
 0x1c6   :  { %266 = vst.msk [vmem:[#allocation2 + $0x8] sm:$0xff] %vm264_vm1, %v261_v46  ;;  %v257_v49 = vadd.f32 %v3056_v48, %v161_v41  ;;  %v251_v50 = vpop.f32.mrb[3].mxu1  ;;  %v3315_v46 = vpack.c.bf16 %v575_v44, %v574_v43  ;;  %v544_v48 = vld [vmem:[%s4629_s3 + $0x30] sm:$0xff]  ;;  %v3331_v43 = vpack.c.bf16 %v583_v34, %v582_v32  ;;  %v3301_v44 = vpack.c.bf16 %v569_v36, %v568_v35  ;;  %v786_v32 = vld [vmem:[%s4628_s7 + $0x1] sm:$0x3] }
 0x1c7   :  { %265 = vst.msk [vmem:[#allocation2] sm:$0xff] %vm264_vm1, %v260_v47  ;;  %v252_v51 = vadd.f32 %v251_v50, %v161_v41  ;;  %v561_v47 = vld [vmem:[%s4629_s3 + $0xb8] sm:$0xff] }
 0x1c8   :  { %v263_v52 = vmax.f32 %v257_v49, 0.0  ;;  %v545_v49 = vld [vmem:[%s4629_s3 + $0x38] sm:$0xff]  ;;  %v3285_v50 = vpack.c.bf16 %v561_v47, %v560_v45  ;;  %3316 = vmatpush3.bf16.msra.mxu1 %v3315_v46 }
 0x1c9   :  { %v262_v53 = vmax.f32 %v252_v51, 0.0  ;;  %v3287_v51 = vpack.c.bf16 %v545_v49, %v544_v48  ;;  %v584_v48 = vld [vmem:[%s4629_s3 + $0x170] sm:$0xff]  ;;  %v585_v49 = vld [vmem:[%s4629_s3 + $0x178] sm:$0xff] }
 0x1ca   :  { %268 = vst.msk [vmem:[#allocation2 + $0x18] sm:$0xff] %vm264_vm1, %v263_v52  ;;  %v592_v52 = vld [vmem:[%s4629_s3 + $0x1b0] sm:$0xff]  ;;  %3286 = vmatprep.subr.bf16.mxu0 %v3285_v50  ;;  %v3335_v50 = vpack.c.bf16 %v585_v49, %v584_v48 }
 0x1cb   :  { %267 = vst.msk [vmem:[#allocation2 + $0x10] sm:$0xff] %vm264_vm1, %v262_v53  ;;  %v593_v53 = vld [vmem:[%s4629_s3 + $0x1b8] sm:$0xff]  ;;  %3288 = vmatpush3.bf16.msra.mxu0 %v3287_v51  ;;  %v2801_v51 = vld [vmem:[%s4628_s7 + $0x1] ss:$0 sm:$0xff] }
 0x1cd   :  { %v2791_v54 = vld.sshfl [vmem:[#allocation2 + $0x8] sm:$0x3 pattern:$0x76325410] }
 0x1ce   :  { %349 = vrot.lane.b32.xlu0 %v2791_v54, %s3646_s0  ;;  %344 = vrot.lane.b32.xlu1 %v2791_v54, %s3645_s30  ;;  %v269_v55 = vld [vmem:[#allocation2] sm:$0x3]  ;;  %v2792_v56 = vld.sshfl [vmem:[#allocation2 + $0xa] sm:$0x3 pattern:$0x76325410] }
 0x1cf   :  { %271 = vst.msk [vmem:[#allocation3] sm:$0x3] %vm270_vm2, %v269_v55  ;;  %v2793_v61 = vld.sshfl [vmem:[#allocation2 + $0xc] sm:$0x3 pattern:$0x76325410]  ;;  %v279_v5 = vrot.slane %v269_v55, %v3801_v1 }
 0x1d0   :  { %v2789_v0 = vld.sshfl [vmem:[#allocation2 + $0x4] sm:$0x3 pattern:$0x76325410]  ;;  %v3803_v3 = vld [vmem:[#allocation2 + $0x2] sm:$0x3] }
 0x1d1   :  { %v2790_v2 = vld.sshfl [vmem:[#allocation2 + $0x6] sm:$0x3 pattern:$0x76325410]  ;;  %v292_v4 = vrot.slane %v3803_v3, %v3801_v1 }
 0x1d2   :  { %367 = vrot.lane.b32.xlu0 %v2792_v56, %s3645_s30  ;;  %362 = vrot.lane.b32.xlu1 %v2792_v56, %s3647_s10  ;;  %v3790_v57 = vld [vmem:[#allocation2 + $0x10] sm:$0x3]  ;;  %v2797_v12 = vld.sshfl [vmem:[#allocation2 + $0x18] sm:$0x3 pattern:$0x76325410]  ;;  %v3317_v56 = vpack.c.bf16 %v593_v53, %v592_v52 }
 0x1d3   :  { %408 = vst.msk [vmem:[#allocation3 + $0x2] sm:$0x3] %vm270_vm2, %v3790_v57  ;;  %v2798_v27 = vld.sshfl [vmem:[#allocation2 + $0x1a] sm:$0x3 pattern:$0x76325410]  ;;  %v416_v16 = vrot.slane %v3790_v57, %v3801_v1  ;;  %v3325_v57 = vpack.c.bf16 %v597_v20, %v596_v19 }
 0x1d4   :  { %v2799_v41 = vld.sshfl [vmem:[#allocation2 + $0x1c] sm:$0x3 pattern:$0x76325410]  ;;  %v3910_v55 = vld [vmem:[#allocation2 + $0x12] sm:$0x3]  ;;  %3318 = vmatprep.subr.bf16.mxu1 %v3317_v56 }
 0x1d5   :  { %v2795_v42 = vld.sshfl [vmem:[#allocation2 + $0x14] sm:$0x3 pattern:$0x76325410]  ;;  %v429_v17 = vrot.slane %v3910_v55, %v3801_v1 }
 0x1d6   :  { %385 = vrot.lane.b32.xlu0 %v2793_v61, %s3647_s10  ;;  %380 = vrot.lane.b32.xlu1 %v2793_v61, %s3649_s11  ;;  %v2796_v54 = vld.sshfl [vmem:[#allocation2 + $0x16] sm:$0x3 pattern:$0x76325410]  ;;  %v3319_v61 = vpack.c.bf16 %v577_v59, %v576_v58 }
 0x1d7   :  { %v2794_v37 = vld.sshfl [vmem:[#allocation2 + $0xe] sm:$0x3 pattern:$0x76325410] }
 0x1d8   :  { %3320 = vmatpush3.bf16.msra.mxu1 %v3319_v61  ;;  %v2800_v46 = vld.sshfl [vmem:[#allocation2 + $0x1e] sm:$0x3 pattern:$0x76325410] }
 0x1d9   :  { %3322 = vmatprep.subr.bf16.mxu1 %v3321_v9 }
 0x1da   :  { %313 = vrot.lane.b32.xlu0 %v2789_v0, %s3650_s12  ;;  %308 = vrot.lane.b32.xlu1 %v2789_v0, %s3651_s13  ;;  %v546_v0 = vld [vmem:[%s4629_s3 + $0x40] sm:$0xff] }
 0x1de   :  { %331 = vrot.lane.b32.xlu0 %v2790_v2, %s3651_s13  ;;  %326 = vrot.lane.b32.xlu1 %v2790_v2, %s3646_s0  ;;  %v547_v2 = vld [vmem:[%s4629_s3 + $0x48] sm:$0xff] }
 0x1e2   :  { %293 = vrot.lane.b32.xlu1 %v292_v4, %s3650_s12  ;;  %280 = vrot.lane.b32.xlu0 %v279_v5, %s3652_s20  ;;  %v3289_v4 = vpack.c.bf16 %v563_v62, %v562_v60  ;;  %v3291_v5 = vpack.c.bf16 %v547_v2, %v546_v0 }
 0x1e4   :  { %3290 = vmatprep.subr.bf16.mxu0 %v3289_v4 }
 0x1e5   :  { %3292 = vmatpush3.bf16.msra.mxu0 %v3291_v5 }
 0x1e6   :  { %478 = vrot.lane.b32.xlu1 %v2797_v12, %s3645_s30  ;;  %482 = vrot.lane.b32.xlu0 %v2797_v12, %s3646_s0  ;;  %v3323_v12 = vpack.c.bf16 %v579_v10, %v578_v8 }
 0x1e7   :  { %3294 = vmatprep.subr.bf16.mxu0 %v3293_v18 }
 0x1e8   :  { %3324 = vmatpush3.bf16.msra.mxu1 %v3323_v12 }
 0x1e9   :  { %3326 = vmatprep.subr.bf16.mxu1 %v3325_v57  ;;  %3296 = vmatpush3.bf16.msra.mxu0 %v3295_v22 }
 0x1ea   :  { %495 = vrot.lane.b32.xlu1 %v2798_v27, %s3647_s10  ;;  %499 = vrot.lane.b32.xlu0 %v2798_v27, %s3645_s30  ;;  %v551_v27 = vld [vmem:[%s4629_s3 + $0x68] sm:$0xff] }
 0x1eb   :  { %v3299_v38 = vpack.c.bf16 %v551_v27, %v550_v26  ;;  %3298 = vmatprep.subr.bf16.mxu0 %v3297_v29  ;;  %v783_v26 = vld [vmem:[%s4630_s4 + $0x18] sm:$0xff]  ;;  %v4076_v27 = vsub.s32 0, %v3796_v63  ;;  %v785_v29 = vld [vmem:[%s4630_s4 + $0x48] sm:$0xff] }
 0x1ec   :  { %3328 = vmatpush3.bf16.msra.mxu1 %v3327_v28  ;;  %v3338_v28 = vpack.c.bf16 %v783_v26, %v782_v25  ;;  %v3466_v31 = vpack.i.bf16 %v783_v26, %v782_v25 }
 0x1ed   :  { %3330 = vmatprep.subr.bf16.mxu1 %v3329_v33  ;;  %3300 = vmatpush3.bf16.msra.mxu0 %v3299_v38  ;;  %v4087_v33 = vsub.s32 1, %v3796_v63  ;;  %v791_v34 = vrot.slane %v786_v32, %v4076_v27 }
 0x1ee   :  { %512 = vrot.lane.b32.xlu1 %v2799_v41, %s3649_s11  ;;  %516 = vrot.lane.b32.xlu0 %v2799_v41, %s3647_s10  ;;  %v553_v41 = vld [vmem:[%s4629_s3 + $0x78] sm:$0xff] }
 0x1ef   :  { %v3303_v47 = vpack.c.bf16 %v553_v41, %v552_v39  ;;  %3302 = vmatprep.subr.bf16.mxu0 %v3301_v44  ;;  %v795_v36 = vrot.slane %v786_v32, %v4087_v33 }
 0x1f0   :  { %3332 = vmatpush3.bf16.msra.mxu1 %v3331_v43 }
 0x1f1   :  { %3304 = vmatpush3.bf16.msra.mxu0 %v3303_v47 }
 0x1f2   :  { %444 = vrot.lane.b32.xlu1 %v2795_v42, %s3651_s13  ;;  %448 = vrot.lane.b32.xlu0 %v2795_v42, %s3650_s12  ;;  %v601_v42 = vld [vmem:[%s4629_s3 + $0x1f8] sm:$0xff] }
 0x1f3   :  { %v3333_v45 = vpack.c.bf16 %v601_v42, %v600_v40  ;;  %3337 = vmatprep.subr.bf16.mxu0 %v3653_v24 }
 0x1f5   :  { %3334 = vmatprep.subr.bf16.mxu1 %v3333_v45 }
 0x1f6   :  { %461 = vrot.lane.b32.xlu1 %v2796_v54, %s3646_s0  ;;  %465 = vrot.lane.b32.xlu0 %v2796_v54, %s3651_s13 }
 0x1f7   :  { %3336 = vmatpush3.bf16.msra.mxu1 %v3335_v50 }
 0x1f8   :  { %3343 = vmatprep.subr.bf16.mxu1 %v3653_v24 }
 0x1fa   :  { %417 = vrot.lane.b32.xlu1 %v416_v16, %s3652_s20  ;;  %430 = vrot.lane.b32.xlu0 %v429_v17, %s3650_s12 }
 0x1fe   :  { %398 = vrot.lane.b32.xlu1 %v2794_v37, %s3652_s20  ;;  %403 = vrot.lane.b32.xlu0 %v2794_v37, %s3649_s11 }
 0x202   :  { %529 = vrot.lane.b32.xlu1 %v2800_v46, %s3652_s20  ;;  %533 = vrot.lane.b32.xlu0 %v2800_v46, %s3649_s11 }
 0x206   :  { %630 = vrot.lane.b32.xlu1 %v2801_v51, %s3645_s30  ;;  %3467 = vrot.lane.b32.xlu0 %v3466_v31, %s3645_s30 }
 0x20a   :  { %796 = vrot.lane.b32.xlu1 %v791_v34, %s3650_s12  ;;  %798 = vrot.lane.b32.xlu0 %v795_v36, %s3650_s12 }
 0x20e   :  { %3477 = vrot.lane.b32.xlu0 %v3466_v31, %s3651_s13 }
 0x240   :  { %v350_v52 = vpop.permute.xlu0 %349  ;;  %v345_v53 = vpop.permute.xlu1 %344 }
 0x244   :  { %v368_v54 = vpop.permute.xlu0 %367  ;;  %v363_v56 = vpop.permute.xlu1 %362 }
 0x248   :  { %v386_v58 = vpop.permute.xlu0 %385  ;;  %v381_v59 = vpop.permute.xlu1 %380 }
 0x24c   :  { %v314_v60 = vpop.permute.xlu0 %313  ;;  %v309_v61 = vpop.permute.xlu1 %308 }
 0x250   :  { %v332_v62 = vpop.permute.xlu0 %331  ;;  %v327_v0 = vpop.permute.xlu1 %326 }
 0x254   :  { %v294_v2 = vpop.permute.xlu1 %293  ;;  %v281_v4 = vpop.permute.xlu0 %280 }
 0x255   :  { %297 = vst.msk [vmem:[#allocation3] sm:$0x3] %vm296_vm3, %v294_v2 }
 0x256   :  { %283 = vst.msk [vmem:[#allocation3 + $0x4] sm:$0x3] %vm270_vm2, %v281_v4 }
 0x257   :  { %312 = vst.msk [vmem:[#allocation3] sm:$0x3] %vm311_vm4, %v309_v61 }
 0x258   :  { %298 = vst.msk [vmem:[#allocation3 + $0x4] sm:$0x3] %vm296_vm3, %v3803_v3  ;;  %v479_v5 = vpop.permute.xlu1 %478  ;;  %v483_v6 = vpop.permute.xlu0 %482 }
 0x259   :  { %330 = vst.msk [vmem:[#allocation3] sm:$0x3] %vm329_vm5, %v327_v0 }
 0x25a   :  { %316 = vst.msk [vmem:[#allocation3 + $0x4] sm:$0x3] %vm311_vm4, %v314_v60 }
 0x25b   :  { %334 = vst.msk [vmem:[#allocation3 + $0x4] sm:$0x3] %vm329_vm5, %v332_v62 }
 0x25c   :  { %348 = vst.msk [vmem:[#allocation3] sm:$0x3] %vm347_vm6, %v345_v53  ;;  %352 = vst.msk [vmem:[#allocation3 + $0x4] sm:$0x3] %vm347_vm6, %v350_v52  ;;  %v496_v3 = vpop.permute.xlu1 %495  ;;  %v500_v7 = vpop.permute.xlu0 %499 }
 0x25d   :  { %366 = vst.msk [vmem:[#allocation3] sm:$0x3] %vm365_vm7, %v363_v56  ;;  %370 = vst.msk [vmem:[#allocation3 + $0x4] sm:$0x3] %vm365_vm7, %v368_v54 }
 0x25e   :  { %384 = vst.msk [vmem:[#allocation3] sm:$0x3] %vm383_vm8, %v381_v59  ;;  %388 = vst.msk [vmem:[#allocation3 + $0x4] sm:$0x3] %vm383_vm8, %v386_v58  ;;  %v2803_v59 = vld [vmem:[%s4628_s7 + $0x2] ss:$0 sm:$0xff] }
 0x25f   :  { %899 = vrot.lane.b32.xlu0 %v2803_v59, %s3647_s10 }
 0x260   :  { %v513_v8 = vpop.permute.xlu1 %512  ;;  %v517_v9 = vpop.permute.xlu0 %516 }
 0x264   :  { %v445_v10 = vpop.permute.xlu1 %444  ;;  %v449_v11 = vpop.permute.xlu0 %448 }
 0x268   :  { %v462_v12 = vpop.permute.xlu1 %461  ;;  %v466_v13 = vpop.permute.xlu0 %465 }
 0x26c   :  { %v418_v14 = vpop.permute.xlu1 %417  ;;  %v431_v15 = vpop.permute.xlu0 %430 }
 0x26d   :  { %420 = vst.msk [vmem:[#allocation3 + $0x6] sm:$0x3] %vm270_vm2, %v418_v14 }
 0x26e   :  { %433 = vst.msk [vmem:[#allocation3 + $0x2] sm:$0x3] %vm296_vm3, %v431_v15  ;;  %434 = vst.msk [vmem:[#allocation3 + $0x6] sm:$0x3] %vm296_vm3, %v3910_v55  ;;  %v1069_v15 = vld [vmem:[%s4628_s7 + $0x2] sm:$0x3] }
 0x26f   :  { %447 = vst.msk [vmem:[#allocation3 + $0x2] sm:$0x3] %vm311_vm4, %v445_v10  ;;  %451 = vst.msk [vmem:[#allocation3 + $0x6] sm:$0x3] %vm311_vm4, %v449_v11  ;;  %v1067_v11 = vld [vmem:[%s4630_s4 + $0x38] sm:$0xff]  ;;  %vm2413_vm3 = vcmask 654336  }
 0x270   :  { %464 = vst.msk [vmem:[#allocation3 + $0x2] sm:$0x3] %vm329_vm5, %v462_v12  ;;  %468 = vst.msk [vmem:[#allocation3 + $0x6] sm:$0x3] %vm329_vm5, %v466_v13  ;;  %v399_v16 = vpop.permute.xlu1 %398  ;;  %v404_v17 = vpop.permute.xlu0 %403  ;;  %v1068_v12 = vld [vmem:[%s4630_s4 + $0x50] sm:$0xff]  ;;  %vm2418_vm4 = vcmask 850944  }
 0x271   :  { %481 = vst.msk [vmem:[#allocation3 + $0x2] sm:$0x3] %vm347_vm6, %v479_v5  ;;  %485 = vst.msk [vmem:[#allocation3 + $0x6] sm:$0x3] %vm347_vm6, %v483_v6  ;;  %v3359_v13 = vpack.c.bf16 %v1068_v12, %v1067_v11  ;;  %v4136_v14 = vpack.i.bf16 %v1068_v12, %v1067_v11  ;;  %vm2420_vm5 = vcmask 916480   ;;  %vm2422_vm6 = vcmask 982016  }
 0x272   :  { %402 = vst.msk [vmem:[#allocation3] sm:$0x3] %vm401_vm9, %v399_v16  ;;  %406 = vst.msk [vmem:[#allocation3 + $0x4] sm:$0x3] %vm401_vm9, %v404_v17  ;;  %v1078_v16 = vrot.slane %v1069_v15, %v4087_v33 }
 0x273   :  { %498 = vst.msk [vmem:[#allocation3 + $0x2] sm:$0x3] %vm365_vm7, %v496_v3  ;;  %502 = vst.msk [vmem:[#allocation3 + $0x6] sm:$0x3] %vm365_vm7, %v500_v7  ;;  %v1065_v7 = vld [vmem:[%s4630_s4 + $0x8] sm:$0xff]  ;;  %vm2425_vm7 = vcmask 326656  }
 0x274   :  { %515 = vst.msk [vmem:[#allocation3 + $0x2] sm:$0x3] %vm383_vm8, %v513_v8  ;;  %519 = vst.msk [vmem:[#allocation3 + $0x6] sm:$0x3] %vm383_vm8, %v517_v9  ;;  %v530_v55 = vpop.permute.xlu1 %529  ;;  %v534_v18 = vpop.permute.xlu0 %533  ;;  %v1066_v8 = vld [vmem:[%s4630_s4 + $0x20] sm:$0xff] }
 0x275   :  { %532 = vst.msk [vmem:[#allocation3 + $0x2] sm:$0x3] %vm401_vm9, %v530_v55  ;;  %536 = vst.msk [vmem:[#allocation3 + $0x6] sm:$0x3] %vm401_vm9, %v534_v18  ;;  %v3356_v9 = vpack.c.bf16 %v1066_v8, %v1065_v7  ;;  %v3516_v17 = vpack.i.bf16 %v1066_v8, %v1065_v7 }
 0x278   :  { %v631_v38 = vpop.permute.xlu1 %630  ;;  %v3468_v39 = vpop.permute.xlu0 %3467 }
 0x279   :  { %v3470_v41 = vunpack.i.h.bf16 %v3468_v39  ;;  %v3469_v42 = vunpack.i.l.bf16 %v3468_v39 }
 0x27b   :  { %v3344_v47 = vpack.c.bf16 %v3470_v41, %v3469_v42 }
 0x27c   :  { %v537_v19 = vld [vmem:[#allocation3] sm:$0xff]  ;;  %v797_v43 = vpop.permute.xlu1 %796  ;;  %v799_v60 = vpop.permute.xlu0 %798 }
 0x27d   :  { %v616_v20 = vrot.slane %v537_v19, %v3801_v1  ;;  %v609_v21 = vcombine.high %v537_v19, %v537_v19  ;;  %v801_v4 = vsel %vm800_vm11, %v797_v43, %v799_v60 }
 0x27f   :  { %v624_v22 = vcombine.high %v616_v20, %v616_v20  ;;  %v623_v57 = vrot.slane %v609_v21, %v3801_v1  ;;  %v784_v1 = vld [vmem:[%s4630_s4 + $0x30] sm:$0xff]  ;;  %v4153_v21 = vld [vmem:[%s4628_s7 + $0x3] ss:$0 sm:$0xff] }
 0x280   :  { %v3341_v35 = vpack.c.bf16 %v785_v29, %v784_v1  ;;  %v3471_v37 = vpack.i.bf16 %v785_v29, %v784_v1  ;;  %v3478_v61 = vpop.permute.xlu0 %3477 }
 0x281   :  { %697 = vmatprep.mubr.f32.mxu0 %v624_v22  ;;  %v625_v23 = vcombine.high %v623_v57, %v623_v57  ;;  %v3480_v62 = vunpack.i.h.bf16 %v3478_v61  ;;  %v3479_v0 = vunpack.i.l.bf16 %v3478_v61  ;;  %v4163_v22 = vld [vmem:[%s4631_s1] sm:$0x3]  ;;  %s3658_s1 = smov 8  }
 0x282   :  { %698 = vmatmul.mubr.f32.vlgmr.msra.gmra.mrb[4].mxu0 %v616_v20  ;;  %3472 = vrot.lane.b32.xlu1 %v3471_v37, %s3645_s30 }
 0x283   :  { %767 = vmatprep.mubr.f32.mxu1 %v625_v23  ;;  %3065 = vmatprep.mubr.msk.f32.mxu0 %vm3654_vm10, %v3655_v30  ;;  %v3350_v2 = vpack.c.bf16 %v3480_v62, %v3479_v0 }
 0x284   :  { %768 = vmatmul.mubr.f32.vlgmr.msra.gmra.mrb[4].mxu1 %v623_v57  ;;  %3339 = vmatpush3.bf16.msra.mxu0 %v3338_v28  ;;  %v1074_v57 = vrot.slane %v1069_v15, %v4076_v27 }
 0x285   :  { %3076 = vmatprep.mubr.msk.f32.mxu1 %vm3654_vm10, %v3655_v30  ;;  %3340 = vmatprep.subr.bf16.mxu0 %v3653_v24 }
 0x286   :  { %3345 = vmatpush3.bf16.msra.mxu1 %v3344_v47  ;;  %3482 = vrot.lane.b32.xlu1 %v3471_v37, %s3651_s13 }
 0x287   :  { %3346 = vmatprep.subr.bf16.mxu1 %v3653_v24 }
 0x288   :  { %3342 = vmatpush3.bf16.msra.mxu0 %v3341_v35 }
 0x289   :  { %3349 = vmatprep.subr.bf16.mxu0 %v3653_v24 }
 0x28a   :  { %3487 = vrot.lane.b32.xlu1 %v3516_v17, %s3647_s10 }
 0x28e   :  { %3492 = vrot.lane.b32.xlu1 %v4136_v14, %s3647_s10 }
 0x292   :  { %3497 = vrot.lane.b32.xlu1 %v3516_v17, %s3649_s11 }
 0x296   :  { %1081 = vrot.lane.b32.xlu1 %v1074_v57, %s3650_s12 }
 0x29a   :  { %3507 = vrot.lane.b32.xlu1 %v3516_v17, %s3646_s0 }
 0x29e   :  { %1279 = vrot.lane.b32.xlu1 %v4153_v21, %s3649_s11 }
 0x2a2   :  { %3522 = vrot.lane.b32.xlu1 %v4136_v14, %s3650_s12 }
 0x2a6   :  { %1182 = vrot.lane.b32.xlu1 %v4153_v21, %s3652_s20 }
 0x2aa   :  { %1457 = vrot.lane.b32.xlu1 %v4153_v21, %s3651_s13 }
 0x2d1   :  { %v900_v1 = vpop.permute.xlu0 %899 }
 0x2f4   :  { %v3473_v51 = vpop.permute.xlu1 %3472 }
 0x2f5   :  { %v3475_v52 = vunpack.i.h.bf16 %v3473_v51  ;;  %v3474_v53 = vunpack.i.l.bf16 %v3473_v51 }
 0x2f7   :  { %v3347_v56 = vpack.c.bf16 %v3475_v52, %v3474_v53 }
 0x2f8   :  { %v3483_v55 = vpop.permute.xlu1 %3482 }
 0x2f9   :  { %3348 = vmatpush3.bf16.msra.mxu1 %v3347_v56  ;;  %v3485_v18 = vunpack.i.h.bf16 %v3483_v55  ;;  %v3484_v19 = vunpack.i.l.bf16 %v3483_v55 }
 0x2fa   :  { %3355 = vmatprep.subr.bf16.mxu1 %v3653_v24 }
 0x2fb   :  { %v3353_v20 = vpack.c.bf16 %v3485_v18, %v3484_v19 }
 0x2fc   :  { %v3488_v37 = vpop.permute.xlu1 %3487 }
 0x2fd   :  { %v3489_v41 = vunpack.i.l.bf16 %v3488_v37 }
 0x355   :  { %v2888_v40 = vpop.f32.mrb[4].mxu0 }
 0x356   :  { %v2889_v44 = vpop.f32.mrb[5].mxu0 }
 0x357   :  { %v2890_v45 = vadd.f32 %v2889_v44, %v2888_v40  ;;  %v2923_v46 = vpop.f32.mrb[4].mxu1  ;;  %v3490_v40 = vunpack.i.h.bf16 %v3488_v37  ;;  %v3493_v44 = vpop.permute.xlu1 %3492 }
 0x358   :  { %v2924_v48 = vpop.f32.mrb[5].mxu1  ;;  %v3494_v47 = vunpack.i.l.bf16 %v3493_v44 }
 0x359   :  { %v700_v49 = vadd.f32 %v2890_v45, %v631_v38  ;;  %v2925_v50 = vadd.f32 %v2924_v48, %v2923_v46  ;;  %v3368_v42 = vpack.c.bf16 %v3490_v40, %v3489_v41  ;;  %v3495_v46 = vunpack.i.h.bf16 %v3493_v44 }
 0x35b   :  { %v4101_v54 = vadd.f32 %v2925_v50, %v700_v49  ;;  %v3371_v48 = vpack.c.bf16 %v3495_v46, %v3494_v47  ;;  %v3498_v52 = vpop.permute.xlu1 %3497 }
 0x35c   :  { %v3500_v53 = vunpack.i.h.bf16 %v3498_v52  ;;  %v3499_v56 = vunpack.i.l.bf16 %v3498_v52 }
 0x35d   :  { %v4104_v58 = vmax.f32 %v4101_v54, 0.0  ;;  %v774_v23 = vand.u32 2147483647, %v4101_v54 }
 0x35f   :  { %3066 = vmatmul.mubr.msk.f32.vlgmr.msra.gmra.mrb[6].mxu0 %vm264_vm1, %v4104_v58  ;;  %v775_v25 = vsub.f32 0.0, %v774_v23 }
 0x360   :  { %3087 = vmatprep.mubr.msk.f32.mxu0 %vm3654_vm10, %v3655_v30  ;;  %3351 = vmatpush3.bf16.msra.mxu0 %v3350_v2  ;;  %v3362_v2 = vpack.c.bf16 %v3500_v53, %v3499_v56 }
 0x361   :  { %3352 = vmatprep.subr.bf16.mxu0 %v3653_v24  ;;  %v776_v26 = vmul.f32 1.442695, %v775_v25 }
 0x363   :  { %3617 = vpow2.f32 %v776_v26 }
 0x364   :  { %3354 = vmatpush3.bf16.msra.mxu0 %v3353_v20 }
 0x365   :  { %3361 = vmatprep.subr.bf16.mxu0 %v3653_v24 }
 0x36d   :  { %v3618_v29 = vpop.eup %3617 }
 0x36e   :  { %v778_v32 = vadd.f32 1.0, %v3618_v29 }
 0x370   :  { %3619 = vlog2.f32 %v778_v32 }
 0x37a   :  { %v3620_v38 = vpop.eup %3619 }
 0x37b   :  { %v780_v43 = vmul.f32 0.6931472, %v3620_v38 }
 0x37d   :  { %v4184_v49 = vadd.f32 %v780_v43, %v4104_v58 }
 0x432   :  { %v872_v5 = vpop.f32.mrb[6].mxu0 }
 0x433   :  { %v873_v6 = vadd.f32 %v872_v5, %v801_v4  ;;  %v3067_v3 = vpop.f32.mrb[7].mxu0 }
 0x435   :  { %v876_v10 = vmax.f32 %v873_v6, 0.0  ;;  %v1082_v6 = vpop.permute.xlu1 %1081 }
 0x437   :  { %1079 = vrot.lane.b32.xlu0 %v876_v10, %s3649_s11  ;;  %3077 = vmatmul.mubr.msk.f32.vlgmr.msra.gmra.mrb[6].mxu1 %vm264_vm1, %v876_v10 }
 0x438   :  { %3357 = vmatpush3.bf16.msra.mxu1 %v3356_v9  ;;  %3098 = vmatprep.mubr.msk.f32.mxu1 %vm3654_vm10, %v3655_v30 }
 0x439   :  { %3358 = vmatprep.subr.bf16.mxu1 %v3653_v24  ;;  %v3508_v3 = vpop.permute.xlu1 %3507 }
 0x43a   :  { %v3510_v8 = vunpack.i.h.bf16 %v3508_v3  ;;  %v3509_v9 = vunpack.i.l.bf16 %v3508_v3 }
 0x43b   :  { %988 = vrot.lane.b32.xlu0 %v2803_v59, %s3646_s0 }
 0x43c   :  { %3360 = vmatpush3.bf16.msra.mxu1 %v3359_v13  ;;  %v3374_v15 = vpack.c.bf16 %v3510_v8, %v3509_v9 }
 0x43d   :  { %3367 = vmatprep.subr.bf16.mxu1 %v3653_v24  ;;  %v1280_v55 = vpop.permute.xlu1 %1279 }
 0x43f   :  { %3502 = vrot.lane.b32.xlu0 %v4136_v14, %s3649_s11 }
 0x441   :  { %v3523_v23 = vpop.permute.xlu1 %3522 }
 0x442   :  { %v3525_v26 = vunpack.i.h.bf16 %v3523_v23 }
 0x443   :  { %1083 = vrot.lane.b32.xlu0 %v1078_v16, %s3650_s12 }
 0x447   :  { %3512 = vrot.lane.b32.xlu0 %v4136_v14, %s3646_s0 }
 0x44b   :  { %3517 = vrot.lane.b32.xlu0 %v3516_v17, %s3650_s12 }
 0x44f   :  { %1368 = vrot.lane.b32.xlu0 %v4153_v21, %s3645_s30 }
 0x453   :  { %1544 = vrot.lane.b32.xlu0 %v4163_v22, %s3656_s18 }
 0x457   :  { %1559 = vrot.lane.b32.xlu0 %v4163_v22, %s3657_s19 }
 0x4a9   :  { %v1080_v28 = vpop.permute.xlu0 %1079 }
 0x4aa   :  { %3099 = vmatmul.mubr.msk.f32.vlgmr.msra.gmra.mrb[8].mxu1 %vm264_vm1, %v1080_v28 }
 0x4ab   :  { %3120 = vmatprep.mubr.msk.f32.mxu1 %vm3654_vm10, %v3655_v30  ;;  %3369 = vmatpush3.bf16.msra.mxu1 %v3368_v42 }
 0x4ac   :  { %3370 = vmatprep.subr.bf16.mxu1 %v3653_v24 }
 0x4ad   :  { %v4176_v31 = vpop.permute.xlu0 %988 }
 0x4af   :  { %3372 = vmatpush3.bf16.msra.mxu1 %v3371_v48 }
 0x4b0   :  { %3379 = vmatprep.subr.bf16.mxu1 %v3653_v24 }
 0x4b1   :  { %v3503_v34 = vpop.permute.xlu0 %3502 }
 0x4b2   :  { %v3505_v62 = vunpack.i.h.bf16 %v3503_v34  ;;  %v3504_v0 = vunpack.i.l.bf16 %v3503_v34 }
 0x4b4   :  { %v3365_v5 = vpack.c.bf16 %v3505_v62, %v3504_v0  ;;  %v1579_v62 = vld [vmem:[%s4632_s5] sm:$0xff]  ;;  %v1580_v0 = vld [vmem:[%s4632_s5 + $0x8] sm:$0xff] }
 0x4b5   :  { %v1084_v35 = vpop.permute.xlu0 %1083 }
 0x4b6   :  { %v1085_v7 = vsel %vm800_vm11, %v1082_v6, %v1084_v35 }
 0x4b9   :  { %v3513_v36 = vpop.permute.xlu0 %3512 }
 0x4ba   :  { %v3515_v13 = vunpack.i.h.bf16 %v3513_v36  ;;  %v3514_v14 = vunpack.i.l.bf16 %v3513_v36 }
 0x4bc   :  { %v3377_v17 = vpack.c.bf16 %v3515_v13, %v3514_v14  ;;  %v1674_v13 = vld [vmem:[%s4630_s4 + $0x28] sm:$0xff] }
 0x4bd   :  { %v4178_v39 = vpop.permute.xlu0 %3517 }
 0x4be   :  { %v3520_v18 = vunpack.i.h.bf16 %v4178_v39  ;;  %v3519_v19 = vunpack.i.l.bf16 %v4178_v39 }
 0x4c0   :  { %v3380_v25 = vpack.c.bf16 %v3520_v18, %v3519_v19 }
 0x4c1   :  { %v4180_v45 = vpop.permute.xlu0 %1368 }
 0x4c5   :  { %v1545_v50 = vpop.permute.xlu0 %1544 }
 0x4c6   :  { %v1547_v51 = vmul.f32 %v1545_v50, %v4184_v49 }
 0x4c8   :  { %1549 = vrot.lane.b32.xlu0 %v1547_v51, %s3657_s19 }
 0x50a   :  { %v971_v59 = vpop.f32.mrb[6].mxu1 }
 0x50b   :  { %v972_v60 = vadd.f32 %v971_v59, %v900_v1  ;;  %v3078_v61 = vpop.f32.mrb[7].mxu1  ;;  %v3524_v1 = vunpack.i.l.bf16 %v3523_v23 }
 0x50d   :  { %v975_v4 = vmax.f32 %v972_v60, 0.0  ;;  %v3383_v29 = vpack.c.bf16 %v3525_v26, %v3524_v1 }
 0x50f   :  { %3088 = vmatmul.mubr.msk.f32.vlgmr.msra.gmra.mrb[8].mxu0 %vm264_vm1, %v975_v4 }
 0x510   :  { %3363 = vmatpush3.bf16.msra.mxu0 %v3362_v2  ;;  %3109 = vmatprep.mubr.msk.f32.mxu0 %vm3654_vm10, %v3655_v30  ;;  %v3386_v2 = vpack.c.bf16 %v1580_v0, %v1579_v62 }
 0x511   :  { %3364 = vmatprep.subr.bf16.mxu0 %v3653_v24 }
 0x514   :  { %3366 = vmatpush3.bf16.msra.mxu0 %v3365_v5 }
 0x515   :  { %3373 = vmatprep.subr.bf16.mxu0 %v3653_v24 }
 0x57d   :  { %v1155_v10 = vpop.f32.mrb[8].mxu1 }
 0x57e   :  { %v1156_v11 = vadd.f32 %v1155_v10, %v1085_v7  ;;  %v3100_v12 = vpop.f32.mrb[9].mxu1  ;;  %v1581_v10 = vld [vmem:[%s4632_s5 + $0x10] sm:$0xff] }
 0x57f   :  { %v1673_v12 = vld [vmem:[%s4630_s4 + $0x10] sm:$0xff] }
 0x580   :  { %v1159_v16 = vmax.f32 %v1156_v11, 0.0  ;;  %v1582_v11 = vld [vmem:[%s4628_s7 + $0x4] sm:$0x3]  ;;  %v3389_v18 = vpack.c.bf16 %v1674_v13, %v1673_v12  ;;  %v4269_v19 = vpack.i.bf16 %v1674_v13, %v1673_v12 }
 0x582   :  { %3110 = vmatmul.mubr.msk.f32.vlgmr.msra.gmra.mrb[10].mxu0 %vm264_vm1, %v1159_v16  ;;  %v1587_v16 = vrot.slane %v1582_v11, %v4076_v27 }
 0x583   :  { %3375 = vmatpush3.bf16.msra.mxu0 %v3374_v15  ;;  %3131 = vmatprep.mubr.msk.f32.mxu0 %vm3654_vm10, %v3655_v30  ;;  %v1560_v15 = vpop.permute.xlu0 %1559 }
 0x584   :  { %3376 = vmatprep.subr.bf16.mxu0 %v3653_v24 }
 0x587   :  { %3378 = vmatpush3.bf16.msra.mxu0 %v3377_v17 }
 0x588   :  { %3385 = vmatprep.subr.bf16.mxu0 %v3653_v24 }
 0x5e2   :  { %v1060_v20 = vpop.f32.mrb[8].mxu0 }
 0x5e3   :  { %v4212_v21 = vadd.f32 %v1060_v20, %v4176_v31  ;;  %v3089_v57 = vpop.f32.mrb[9].mxu0  ;;  %v1183_v31 = vpop.permute.xlu1 %1182 }
 0x5e4   :  { %v4276_v57 = vld [vmem:[%s4628_s7 + $0x3] sm:$0x3] }
 0x5e5   :  { %v1064_v28 = vmax.f32 %v4212_v21, 0.0  ;;  %v1686_v26 = vrot.slane %v4276_v57, %v4087_v33  ;;  %v2617_v21 = vld [vmem:[%s4626_s2 + $0x98] sm:$0xff] }
 0x5e7   :  { %3121 = vmatmul.mubr.msk.f32.vlgmr.msra.gmra.mrb[10].mxu1 %vm264_vm1, %v1064_v28  ;;  %v1458_v52 = vpop.permute.xlu1 %1457 }
 0x5e8   :  { %3381 = vmatpush3.bf16.msra.mxu1 %v3380_v25  ;;  %3142 = vmatprep.mubr.msk.f32.mxu1 %vm3654_vm10, %v3655_v30  ;;  %v1550_v25 = vpop.permute.xlu0 %1549 }
 0x5e9   :  { %3382 = vmatprep.subr.bf16.mxu1 %v3653_v24  ;;  %v4286_v1 = vadd.f32 %v1550_v25, %v4101_v54 }
 0x5ec   :  { %3384 = vmatpush3.bf16.msra.mxu1 %v3383_v29  ;;  %v1591_v29 = vrot.slane %v1582_v11, %v4087_v33 }
 0x5ed   :  { %3388 = vmatprep.subr.bf16.mxu1 %v3653_v24 }
 0x655   :  { %v1254_v32 = vpop.f32.mrb[10].mxu0 }
 0x656   :  { %v4222_v34 = vadd.f32 %v1254_v32, %v1183_v31  ;;  %v3111_v35 = vpop.f32.mrb[11].mxu0  ;;  %v4295_v31 = vld [vmem:[%s4628_s7 + $0x4] ss:$0 sm:$0xff] }
 0x657   :  { %v1675_v32 = vld [vmem:[%s4630_s4 + $0x40] sm:$0xff]  ;;  %v1676_v35 = vld [vmem:[%s4630_s4 + $0x58] sm:$0xff] }
 0x658   :  { %v1259_v36 = vand.u32 2147483647, %v4222_v34  ;;  %v1258_v42 = vmax.f32 %v4222_v34, 0.0 }
 0x65a   :  { %v1260_v37 = vsub.f32 0.0, %v1259_v36  ;;  %v4305_v36 = vpack.i.bf16 %v1676_v35, %v1675_v32 }
 0x65c   :  { %v1261_v38 = vmul.f32 1.442695, %v1260_v37  ;;  %v2143_v37 = vld [vmem:[%s4633_s6 + $0x20] sm:$0xff] }
 0x65e   :  { %3621 = vpow2.f32 %v1261_v38  ;;  %v2144_v38 = vld [vmem:[%s4633_s6 + $0x28] sm:$0xff] }
 0x668   :  { %v3622_v39 = vpop.eup %3621 }
 0x669   :  { %v1263_v40 = vadd.f32 1.0, %v3622_v39  ;;  %v3561_v39 = vpack.i.bf16 %v2144_v38, %v2143_v37  ;;  %v4407_v38 = vld [vmem:[%s4633_s6 + $0x60] sm:$0xff] }
 0x66b   :  { %3623 = vlog2.f32 %v1263_v40  ;;  %v2146_v40 = vld [vmem:[%s4633_s6 + $0x38] sm:$0xff] }
 0x675   :  { %v3624_v41 = vpop.eup %3623 }
 0x676   :  { %v1265_v43 = vmul.f32 0.6931472, %v3624_v41  ;;  %v2147_v41 = vld [vmem:[%s4633_s6 + $0x40] sm:$0xff] }
 0x678   :  { %v4226_v44 = vadd.f32 %v1265_v43, %v1258_v42  ;;  %v3571_v42 = vpack.i.bf16 %v2147_v41, %v2146_v40  ;;  %v4330_v43 = vld [vmem:[%s4633_s6 + $0x30] sm:$0xff] }
 0x67a   :  { %v1553_v46 = vmul.f32 %v4163_v22, %v4226_v44 }
 0x67c   :  { %1555 = vrot.lane.b32.xlu1 %v1553_v46, %s3657_s19  ;;  %v4335_v46 = vld [vmem:[%s4633_s6 + $0x48] sm:$0xff] }
 0x67d   :  { %v3404_v37 = vpack.c.bf16 %v4335_v46, %v4330_v43 }
 0x6ba   :  { %v1351_v47 = vpop.f32.mrb[10].mxu1 }
 0x6bb   :  { %v1352_v48 = vadd.f32 %v1351_v47, %v1280_v55  ;;  %v3122_v50 = vpop.f32.mrb[11].mxu1  ;;  %v3581_v47 = vpack.i.bf16 %v4335_v46, %v4330_v43 }
 0x6bc   :  { %v2156_v50 = vld [vmem:[%s4633_s6 + $0x88] sm:$0xff] }
 0x6bd   :  { %v1355_v51 = vmax.f32 %v1352_v48, 0.0  ;;  %v2155_v48 = vld [vmem:[%s4633_s6 + $0x80] sm:$0xff] }
 0x6bf   :  { %3132 = vmatmul.mubr.msk.f32.vlgmr.msra.gmra.mrb[12].mxu0 %vm264_vm1, %v1355_v51  ;;  %v3591_v51 = vpack.i.bf16 %v2156_v50, %v2155_v48 }
 0x6c0   :  { %3151 = vmatprep.mubr.msk.f32.mxu0 %vm3654_vm10, %v3655_v30  ;;  %3387 = vmatpush3.bf16.msra.mxu0 %v3386_v2 }
 0x6c1   :  { %3149 = vmatprep.subr.mxu0 %v3655_v30 }
 0x6c4   :  { %3150 = vmatpush3.msra.mxu0 %v1581_v10 }
 0x6c5   :  { %3394 = vmatprep.subr.bf16.mxu0 %v3653_v24 }
 0x6ee   :  { %v1556_v53 = vpop.permute.xlu1 %1555 }
 0x6ef   :  { %v4235_v56 = vadd.f32 %v1556_v53, %v4222_v34  ;;  %v2159_v53 = vld [vmem:[%s4633_s6 + $0xa0] sm:$0xff] }
 0x6f1   :  { %1569 = vrot.lane.b32.xlu0 %v4235_v56, %s3658_s1 }
 0x6f5   :  { %1592 = vrot.lane.b32.xlu0 %v1587_v16, %s3650_s12 }
 0x6f9   :  { %3527 = vrot.lane.b32.xlu0 %v4269_v19, %s3649_s11 }
 0x6fd   :  { %1689 = vrot.lane.b32.xlu0 %v1686_v26, %s3650_s12 }
 0x701   :  { %1789 = vrot.lane.b32.xlu0 %v4295_v31, %s3652_s20 }
 0x705   :  { %3542 = vrot.lane.b32.xlu0 %v4305_v36, %s3645_s30 }
 0x709   :  { %3547 = vrot.lane.b32.xlu0 %v4269_v19, %s3651_s13 }
 0x70d   :  { %1969 = vrot.lane.b32.xlu0 %v4295_v31, %s3647_s10 }
 0x711   :  { %3562 = vrot.lane.b32.xlu0 %v3561_v39, %s3649_s11  ;;  %v4412_v39 = vld [vmem:[%s4633_s6 + $0x78] sm:$0xff] }
 0x712   :  { %v3407_v40 = vpack.c.bf16 %v4412_v39, %v4407_v38 }
 0x715   :  { %3572 = vrot.lane.b32.xlu0 %v3571_v42, %s3649_s11 }
 0x719   :  { %3582 = vrot.lane.b32.xlu0 %v3581_v47, %s3649_s11 }
 0x71d   :  { %3592 = vrot.lane.b32.xlu0 %v3591_v51, %s3649_s11  ;;  %v2816_v51 = vld [vmem:[%s4628_s7 + $0x5] ss:$0 sm:$0xff] }
 0x763   :  { %v1570_v2 = vpop.permute.xlu0 %1569 }
 0x792   :  { %v1440_v22 = vpop.f32.mrb[12].mxu0 }
 0x793   :  { %v1441_v59 = vadd.f32 %v1440_v22, %v4180_v45  ;;  %v3133_v60 = vpop.f32.mrb[13].mxu0 }
 0x794   :  { %v4362_v60 = vld [vmem:[%s4633_s6 + $0xa8] sm:$0xff] }
 0x795   :  { %v1444_v61 = vmax.f32 %v1441_v59, 0.0  ;;  %v4357_v59 = vld [vmem:[%s4633_s6 + $0x90] sm:$0xff] }
 0x796   :  { %v3410_v50 = vpack.c.bf16 %v4362_v60, %v4357_v59 }
 0x797   :  { %3143 = vmatmul.mubr.msk.f32.vlgmr.msra.gmra.mrb[12].mxu1 %vm264_vm1, %v1444_v61  ;;  %v3611_v61 = vpack.i.bf16 %v4362_v60, %v4357_v59 }
 0x798   :  { %3162 = vmatprep.mubr.msk.f32.mxu1 %vm3654_vm10, %v3655_v30  ;;  %3390 = vmatpush3.bf16.msra.mxu1 %v3389_v18 }
 0x799   :  { %3391 = vmatprep.subr.bf16.mxu1 %v3653_v24 }
 0x86a   :  { %v1529_v45 = vpop.f32.mrb[12].mxu1 }
 0x86b   :  { %v4250_v4 = vadd.f32 %v1529_v45, %v1458_v52  ;;  %v3144_v5 = vpop.f32.mrb[13].mxu1  ;;  %v2158_v52 = vld [vmem:[%s4633_s6 + $0x98] sm:$0xff] }
 0x86c   :  { %v3601_v22 = vpack.i.bf16 %v2159_v53, %v2158_v52 }
 0x86d   :  { %v1534_v6 = vand.u32 2147483647, %v4250_v4  ;;  %v1533_v17 = vmax.f32 %v4250_v4, 0.0 }
 0x86e   :  { %3602 = vrot.lane.b32.xlu0 %v3601_v22, %s3649_s11 }
 0x86f   :  { %v1535_v3 = vsub.f32 0.0, %v1534_v6 }
 0x871   :  { %v1536_v7 = vmul.f32 1.442695, %v1535_v3  ;;  %v1593_v3 = vpop.permute.xlu0 %1592 }
 0x872   :  { %3612 = vrot.lane.b32.xlu0 %v3611_v61, %s3649_s11 }
 0x873   :  { %3625 = vpow2.f32 %v1536_v7  ;;  %v3392_v7 = vpack.c.bf16 %v1676_v35, %v1675_v32  ;;  %v4397_v32 = vld [vmem:[%s4633_s6 + $0x18] sm:$0xff] }
 0x875   :  { %3393 = vmatpush3.bf16.msra.mxu1 %v3392_v7 }
 0x876   :  { %3400 = vmatprep.subr.bf16.mxu1 %v3653_v24 }
 0x87d   :  { %v3626_v8 = vpop.eup %3625 }
 0x87e   :  { %v1538_v9 = vadd.f32 1.0, %v3626_v8  ;;  %v3528_v8 = vpop.permute.xlu0 %3527 }
 0x87f   :  { %v3530_v10 = vunpack.i.h.bf16 %v3528_v8  ;;  %v3529_v11 = vunpack.i.l.bf16 %v3528_v8 }
 0x880   :  { %3627 = vlog2.f32 %v1538_v9  ;;  %v1682_v9 = vrot.slane %v4276_v57, %v4076_v27 }
 0x881   :  { %v3395_v12 = vpack.c.bf16 %v3530_v10, %v3529_v11 }
 0x882   :  { %v1690_v41 = vpop.permute.xlu0 %1689 }
 0x886   :  { %v1790_v52 = vpop.permute.xlu0 %1789 }
 0x88a   :  { %v3628_v14 = vpop.eup %3627  ;;  %v3543_v53 = vpop.permute.xlu0 %3542 }
 0x88b   :  { %v1540_v55 = vmul.f32 0.6931472, %v3628_v14  ;;  %v3545_v61 = vunpack.i.h.bf16 %v3543_v53 }
 0x88d   :  { %v4271_v20 = vadd.f32 %v1540_v55, %v1533_v17 }
 0x88e   :  { %v3548_v8 = vpop.permute.xlu0 %3547 }
 0x88f   :  { %v1562_v23 = vmul.f32 %v1560_v15, %v4271_v20  ;;  %v3549_v10 = vunpack.i.l.bf16 %v3548_v8 }
 0x891   :  { %1564 = vrot.lane.b32.xlu1 %v1562_v23, %s3657_s19 }
 0x895   :  { %1573 = vrot.lane.b32.xlu1 %v4286_v1, %s3652_s20 }
 0x899   :  { %1594 = vrot.lane.b32.xlu1 %v1591_v29, %s3650_s12  ;;  %v4392_v29 = vld [vmem:[%s4633_s6] sm:$0xff] }
 0x89a   :  { %v3401_v35 = vpack.c.bf16 %v4397_v32, %v4392_v29 }
 0x89d   :  { %1687 = vrot.lane.b32.xlu1 %v1682_v9, %s3650_s12  ;;  %v3550_v9 = vunpack.i.h.bf16 %v3548_v8 }
 0x8a1   :  { %3532 = vrot.lane.b32.xlu1 %v4305_v36, %s3649_s11 }
 0x8a5   :  { %3537 = vrot.lane.b32.xlu1 %v4269_v19, %s3645_s30 }
 0x8a9   :  { %1880 = vrot.lane.b32.xlu1 %v2816_v51, %s3646_s0 }
 0x8ad   :  { %3552 = vrot.lane.b32.xlu1 %v4305_v36, %s3651_s13  ;;  %v2140_v36 = vld [vmem:[%s4633_s6 + $0x8] sm:$0xff] }
 0x903   :  { %v1565_v62 = vpop.permute.xlu1 %1564 }
 0x904   :  { %v4369_v0 = vadd.f32 %v1565_v62, %v4250_v4  ;;  %v3544_v62 = vunpack.i.l.bf16 %v3543_v53 }
 0x906   :  { %v1577_v45 = vsel %vm1576_vm12, %v4369_v0, %v1570_v2 }
 0x907   :  { %v1574_v5 = vpop.permute.xlu1 %1573 }
 0x908   :  { %v1578_v6 = vsel %vm800_vm11, %v1577_v45, %v1574_v5 }
 0x909   :  { %3152 = vmatmul.mubr.msk.f32.vlgmr.msra.gmra.mrb[14].mxu0 %vm1598_vm13, %v1578_v6  ;;  %v3416_v6 = vpack.c.bf16 %v3545_v61, %v3544_v62 }
 0x90a   :  { %3173 = vmatprep.mubr.msk.f32.mxu0 %vm3654_vm10, %v3655_v30  ;;  %3396 = vmatpush3.bf16.msra.mxu0 %v3395_v12 }
 0x90b   :  { %3397 = vmatprep.subr.bf16.mxu0 %v3653_v24  ;;  %v1595_v13 = vpop.permute.xlu1 %1594 }
 0x90c   :  { %v1596_v16 = vsel %vm800_vm11, %v1593_v3, %v1595_v13 }
 0x90f   :  { %v1688_v14 = vpop.permute.xlu1 %1687 }
 0x910   :  { %v1691_v42 = vsel %vm800_vm11, %v1688_v14, %v1690_v41  ;;  %v2162_v41 = vld [vmem:[%s4633_s6 + $0xb8] sm:$0xff] }
 0x913   :  { %v3533_v15 = vpop.permute.xlu1 %3532 }
 0x914   :  { %v3535_v17 = vunpack.i.h.bf16 %v3533_v15  ;;  %v3534_v55 = vunpack.i.l.bf16 %v3533_v15  ;;  %v3419_v15 = vpack.c.bf16 %v3550_v9, %v3549_v10 }
 0x916   :  { %v3398_v57 = vpack.c.bf16 %v3535_v17, %v3534_v55 }
 0x917   :  { %v3538_v22 = vpop.permute.xlu1 %3537 }
 0x918   :  { %3399 = vmatpush3.bf16.msra.mxu0 %v3398_v57  ;;  %v3540_v2 = vunpack.i.h.bf16 %v3538_v22  ;;  %v3539_v45 = vunpack.i.l.bf16 %v3538_v22  ;;  %v2141_v57 = vld [vmem:[%s4633_s6 + $0x10] sm:$0xff] }
 0x919   :  { %3412 = vmatprep.subr.bf16.mxu0 %v3653_v24 }
 0x91a   :  { %v3413_v5 = vpack.c.bf16 %v3540_v2, %v3539_v45 }
 0x91b   :  { %v1881_v7 = vpop.permute.xlu1 %1880 }
 0x91f   :  { %v3553_v11 = vpop.permute.xlu1 %3552 }
 0x920   :  { %v3554_v17 = vunpack.i.l.bf16 %v3553_v11 }
 0x9dc   :  { %v1668_v18 = vpop.f32.mrb[14].mxu0 }
 0x9dd   :  { %v1669_v23 = vadd.f32 %v1668_v18, %v1596_v16  ;;  %v3153_v25 = vpop.f32.mrb[15].mxu0  ;;  %v3555_v16 = vunpack.i.h.bf16 %v3553_v11 }
 0x9de   :  { %v3566_v25 = vpack.i.bf16 %v4397_v32, %v4392_v29  ;;  %v3596_v32 = vpack.i.bf16 %v4412_v39, %v4407_v38 }
 0x9df   :  { %v1672_v26 = vmax.f32 %v1669_v23, 0.0  ;;  %2135 = vrot.lane.b32.xlu0 %v1669_v23, %s3649_s11  ;;  %v3422_v18 = vpack.c.bf16 %v3555_v16, %v3554_v17 }
 0x9e1   :  { %3163 = vmatmul.mubr.msk.f32.vlgmr.msra.gmra.mrb[14].mxu1 %vm264_vm1, %v1672_v26 }
 0x9e2   :  { %3192 = vmatprep.mubr.msk.f32.mxu1 %vm3654_vm10, %v3655_v30  ;;  %3402 = vmatpush3.bf16.msra.mxu1 %v3401_v35  ;;  %v2152_v35 = vld [vmem:[%s4633_s6 + $0x68] sm:$0xff] }
 0x9e3   :  { %3403 = vmatprep.subr.bf16.mxu1 %v3653_v24 }
 0x9e6   :  { %3405 = vmatpush3.bf16.msra.mxu1 %v3404_v37  ;;  %v2153_v37 = vld [vmem:[%s4633_s6 + $0x70] sm:$0xff] }
 0x9e7   :  { %3406 = vmatprep.subr.bf16.mxu1 %v3653_v24  ;;  %v3586_v29 = vpack.i.bf16 %v2153_v37, %v2152_v35 }
 0x9ea   :  { %3408 = vmatpush3.bf16.msra.mxu1 %v3407_v40  ;;  %v2161_v40 = vld [vmem:[%s4633_s6 + $0xb0] sm:$0xff] }
 0x9eb   :  { %3409 = vmatprep.subr.bf16.mxu1 %v3653_v24 }
 0x9ee   :  { %3411 = vmatpush3.bf16.msra.mxu1 %v3410_v50 }
 0xab4   :  { %v1762_v43 = vpop.f32.mrb[14].mxu1 }
 0xab5   :  { %v1763_v46 = vadd.f32 %v1762_v43, %v1691_v42  ;;  %v3164_v47 = vpop.f32.mrb[15].mxu1  ;;  %v3606_v42 = vpack.i.bf16 %v2162_v41, %v2161_v40  ;;  %v1970_v43 = vpop.permute.xlu0 %1969 }
 0xab7   :  { %v1766_v48 = vmax.f32 %v1763_v46, 0.0 }
 0xab9   :  { %3174 = vmatmul.mubr.msk.f32.vlgmr.msra.gmra.mrb[16].mxu0 %vm264_vm1, %v1766_v48  ;;  %v3563_v46 = vpop.permute.xlu0 %3562 }
 0xaba   :  { %3203 = vmatprep.mubr.msk.f32.mxu0 %vm3654_vm10, %v3655_v30  ;;  %3414 = vmatpush3.bf16.msra.mxu0 %v3413_v5  ;;  %v3565_v38 = vunpack.i.h.bf16 %v3563_v46  ;;  %v3564_v39 = vunpack.i.l.bf16 %v3563_v46 }
 0xabb   :  { %3415 = vmatprep.subr.bf16.mxu0 %v3653_v24 }
 0xabc   :  { %v2253_v53 = vsel %vm2249_vm14, %v3564_v39, %v3565_v38 }
 0xabd   :  { %v3573_v47 = vpop.permute.xlu0 %3572 }
 0xabe   :  { %3417 = vmatpush3.bf16.msra.mxu0 %v3416_v6  ;;  %v3574_v61 = vunpack.i.l.bf16 %v3573_v47 }
 0xabf   :  { %3418 = vmatprep.subr.bf16.mxu0 %v3653_v24 }
 0xac1   :  { %v3583_v48 = vpop.permute.xlu0 %3582 }
 0xac2   :  { %v3584_v62 = vunpack.i.l.bf16 %v3583_v48 }
 0xac4   :  { %v2254_v11 = vsel %vm2249_vm14, %v3584_v62, %v3574_v61 }
 0xac5   :  { %v3593_v2 = vpop.permute.xlu0 %3592 }
 0xb8c   :  { %v1861_v59 = vpop.f32.mrb[16].mxu0 }
 0xb8d   :  { %v4431_v19 = vadd.f32 %v1861_v59, %v1790_v52  ;;  %v3175_v60 = vpop.f32.mrb[17].mxu0 }
 0xb8f   :  { %v1865_v3 = vsel %vm264_vm1, %v4431_v19, %v1669_v23  ;;  %v3556_v23 = vpack.i.bf16 %v2141_v57, %v2140_v36  ;;  %v3603_v36 = vpop.permute.xlu0 %3602 }
 0xb90   :  { %3193 = vmatmul.mubr.msk.f32.vlgmr.msra.gmra.mrb[16].mxu1 %vm50_vm0, %v1865_v3  ;;  %v3585_v3 = vunpack.i.h.bf16 %v3583_v48 }
 0xb91   :  { %2359 = vmatprep.mubr.f32.mxu1 %v3655_v30  ;;  %3557 = vrot.lane.b32.xlu1 %v3556_v23, %s3649_s11 }
 0xb93   :  { %v3613_v40 = vpop.permute.xlu0 %3612 }
 0xb94   :  { %v3614_v46 = vunpack.i.l.bf16 %v3613_v40 }
 0xb95   :  { %3567 = vrot.lane.b32.xlu1 %v3566_v25, %s3649_s11 }
 0xc03   :  { %v3558_v50 = vpop.permute.xlu1 %3557 }
 0xc04   :  { %v3560_v51 = vunpack.i.h.bf16 %v3558_v50  ;;  %v3559_v52 = vunpack.i.l.bf16 %v3558_v50 }
 0xc06   :  { %v2251_v22 = vsel %vm2249_vm14, %v3559_v52, %v3560_v51 }
 0xc07   :  { %v3568_v45 = vpop.permute.xlu1 %3567  ;;  %v3424_v5 = vpack.c.bf16 %v2253_v53, %v2251_v22 }
 0xc08   :  { %v3570_v6 = vunpack.i.h.bf16 %v3568_v45  ;;  %v3569_v59 = vunpack.i.l.bf16 %v3568_v45 }
 0xc09   :  { %3425 = vmatprep.subr.bf16.mxu1 %v3424_v5 }
 0xc0a   :  { %v2250_v9 = vsel %vm2249_vm14, %v3569_v59, %v3559_v52  ;;  %v2252_v10 = vsel %vm2249_vm14, %v3570_v6, %v3564_v39  ;;  %v3615_v39 = vunpack.i.h.bf16 %v3613_v40  ;;  %v2163_v6 = vld [vmem:[%s4628_s7 + $0x5] sm:$0x7]  ;;  %v2175_v59 = vsub.s32 2, %v3796_v63 }
 0xc63   :  { %v1952_v12 = vpop.f32.mrb[16].mxu1 }
 0xc64   :  { %v1953_v13 = vadd.f32 %v1952_v12, %v1881_v7  ;;  %v3194_v14 = vpop.f32.mrb[17].mxu1  ;;  %v3595_v12 = vunpack.i.h.bf16 %v3593_v2 }
 0xc65   :  { %v3426_v14 = vpack.c.bf16 %v2252_v10, %v2250_v9 }
 0xc66   :  { %v1956_v55 = vmax.f32 %v1953_v13, 0.0  ;;  %v3594_v13 = vunpack.i.l.bf16 %v3593_v2 }
 0xc67   :  { %3427 = vmatpush1.bf16.msra.mxu1 %v3426_v14 }
 0xc68   :  { %3204 = vmatmul.mubr.msk.f32.vlgmr.msra.gmra.mrb[18].mxu0 %vm264_vm1, %v1956_v55  ;;  %v2261_v37 = vsel %vm2249_vm14, %v3594_v13, %v3595_v12  ;;  %v2136_v12 = vpop.permute.xlu0 %2135 }
 0xc69   :  { %3420 = vmatpush3.bf16.msra.mxu0 %v3419_v15  ;;  %3214 = vmatprep.mubr.msk.f32.mxu0 %vm3654_vm10, %v3655_v30  ;;  %v2149_v30 = vld [vmem:[%s4633_s6 + $0x50] sm:$0xff] }
 0xc6a   :  { %3421 = vmatprep.subr.bf16.mxu0 %v3653_v24  ;;  %v2150_v24 = vld [vmem:[%s4633_s6 + $0x58] sm:$0xff] }
 0xc6b   :  { %v3576_v26 = vpack.i.bf16 %v2150_v24, %v2149_v30 }
 0xc6d   :  { %3423 = vmatpush3.bf16.msra.mxu0 %v3422_v18  ;;  %3577 = vrot.lane.b32.xlu1 %v3576_v26, %s3649_s11 }
 0xc71   :  { %3587 = vrot.lane.b32.xlu1 %v3586_v29, %s3649_s11 }
 0xc75   :  { %3597 = vrot.lane.b32.xlu1 %v3596_v32, %s3649_s11  ;;  %v3605_v32 = vunpack.i.h.bf16 %v3603_v36 }
 0xc79   :  { %3607 = vrot.lane.b32.xlu1 %v3606_v42, %s3649_s11 }
 0xc7d   :  { %2058 = vrot.lane.b32.xlu1 %v4295_v31, %s3646_s0  ;;  %v3575_v31 = vunpack.i.h.bf16 %v3573_v47 }
 0xc7f   :  { %v2255_v18 = vsel %vm2249_vm14, %v3574_v61, %v3575_v31 }
 0xcdf   :  { %v3578_v15 = vpop.permute.xlu1 %3577 }
 0xce0   :  { %v3580_v17 = vunpack.i.h.bf16 %v3578_v15  ;;  %v3579_v55 = vunpack.i.l.bf16 %v3578_v15 }
 0xce2   :  { %v2256_v57 = vsel %vm2249_vm14, %v3585_v3, %v3579_v55  ;;  %v2257_v23 = vsel %vm2249_vm14, %v3579_v55, %v3580_v17  ;;  %v2172_v3 = vrot.slane %v2163_v6, %v4087_v33 }
 0xce3   :  { %v3430_v25 = vpack.c.bf16 %v2256_v57, %v2254_v11  ;;  %v3588_v30 = vpop.permute.xlu1 %3587  ;;  %v3428_v24 = vpack.c.bf16 %v2257_v23, %v2255_v18  ;;  %v2504_v23 = vld [vmem:[%s4626_s2 + $0x80] sm:$0xff] }
 0xce4   :  { %v3590_v26 = vunpack.i.h.bf16 %v3588_v30  ;;  %v3589_v35 = vunpack.i.l.bf16 %v3588_v30  ;;  %2284 = vrot.lane.b32.xlu0 %v2172_v3, %s3650_s12 }
 0xce5   :  { %3429 = vmatprep.subr.bf16.mxu1 %v3428_v24  ;;  %v2822_v24 = vld [vmem:[%s4628_s7] ss:$0 sm:$0xff] }
 0xce6   :  { %3431 = vmatpush1.bf16.msra.mxu1 %v3430_v25  ;;  %v2259_v29 = vsel %vm2249_vm14, %v3589_v35, %v3590_v26  ;;  %v2505_v25 = vld [vmem:[%s4626_s2 + $0x88] sm:$0xff]  ;;  %v2616_v26 = vld [vmem:[%s4626_s2 + $0x90] sm:$0xff] }
 0xce7   :  { %v3598_v41 = vpop.permute.xlu1 %3597  ;;  %v3432_v42 = vpack.c.bf16 %v2261_v37, %v2259_v29  ;;  %v3440_v30 = vpack.c.bf16 %v2505_v25, %v2504_v23  ;;  %v2827_v25 = vld [vmem:[%s4628_s7 + $0x1] ss:$0 sm:$0xff] }
 0xce8   :  { %v3600_v47 = vunpack.i.h.bf16 %v3598_v41  ;;  %v3599_v38 = vunpack.i.l.bf16 %v3598_v41 }
 0xce9   :  { %3433 = vmatprep.subr.bf16.mxu1 %v3432_v42  ;;  %3441 = vmatprep.subr.bf16.mxu0 %v3440_v30 }
 0xcea   :  { %v2258_v48 = vsel %vm2249_vm14, %v3599_v38, %v3589_v35  ;;  %v2260_v50 = vsel %vm2249_vm14, %v3600_v47, %v3594_v13 }
 0xceb   :  { %v3434_v51 = vpack.c.bf16 %v2260_v50, %v2258_v48  ;;  %v3608_v52 = vpop.permute.xlu1 %3607 }
 0xcec   :  { %v3610_v22 = vunpack.i.h.bf16 %v3608_v52  ;;  %v3609_v61 = vunpack.i.l.bf16 %v3608_v52 }
 0xced   :  { %3435 = vmatpush1.bf16.msra.mxu1 %v3434_v51 }
 0xcee   :  { %v2264_v2 = vsel %vm2249_vm14, %v3615_v39, %v3609_v61  ;;  %v2265_v45 = vsel %vm2249_vm14, %v3609_v61, %v3610_v22 }
 0xd3b   :  { %v2041_v60 = vpop.f32.mrb[18].mxu0 }
 0xd3c   :  { %v2042_v7 = vadd.f32 %v2041_v60, %v1970_v43  ;;  %v3205_v8 = vpop.f32.mrb[19].mxu0  ;;  %v3604_v43 = vunpack.i.l.bf16 %v3603_v36  ;;  %v2168_v60 = vrot.slane %v2163_v6, %v4076_v27 }
 0xd3d   :  { %v2059_v8 = vpop.permute.xlu1 %2058 }
 0xd3e   :  { %v2045_v16 = vmax.f32 %v2042_v7, 0.0  ;;  %v2262_v53 = vsel %vm2249_vm14, %v3614_v46, %v3604_v43  ;;  %v2263_v62 = vsel %vm2249_vm14, %v3604_v43, %v3605_v32  ;;  %2282 = vrot.lane.b32.xlu1 %v2168_v60, %s3650_s12  ;;  %v2176_v7 = vrot.slane %v2163_v6, %v2175_v59 }
 0xd3f   :  { %v3438_v5 = vpack.c.bf16 %v2264_v2, %v2262_v53  ;;  %v3436_v31 = vpack.c.bf16 %v2265_v45, %v2263_v62 }
 0xd40   :  { %3215 = vmatmul.mubr.msk.f32.vlgmr.msra.gmra.mrb[20].mxu0 %vm264_vm1, %v2045_v16 }
 0xd41   :  { %3437 = vmatprep.subr.bf16.mxu1 %v3436_v31  ;;  %3443 = vmatpush3.bf16.msra.mxu0 %v3440_v30 }
 0xd42   :  { %3439 = vmatpush1.bf16.msra.mxu1 %v3438_v5  ;;  %2286 = vrot.lane.b32.xlu1 %v2176_v7, %s3650_s12 }
 0xd56   :  { %v2285_v27 = vpop.permute.xlu0 %2284 }
 0xdb0   :  { %v2283_v63 = vpop.permute.xlu1 %2282 }
 0xdb1   :  { %v2288_v33 = vsel %vm800_vm11, %v2283_v63, %v2285_v27 }
 0xdb4   :  { %v2287_v14 = vpop.permute.xlu1 %2286 }
 0xdb5   :  { %v2289_v15 = vsel %vm800_vm11, %v2285_v27, %v2287_v14 }
 0xe13   :  { %v2130_v9 = vpop.f32.mrb[20].mxu0 }
 0xe14   :  { %v2131_v10 = vadd.f32 %v2130_v9, %v2059_v8  ;;  %v3216_v11 = vpop.f32.mrb[21].mxu0 }
 0xe16   :  { %v2138_v13 = vsel %vm264_vm1, %v2131_v10, %v2136_v12  ;;  %v2618_v12 = vld [vmem:[%s4626_s2 + $0xa0] sm:$0xff] }
 0xe17   :  { %2820 = vmatmul.mubr.msk.f32.vlgmr.msra.gmra.mrb[18].mxu1 %vm50_vm0, %v2138_v13  ;;  %v2619_v13 = vld [vmem:[%s4626_s2 + $0xa8] sm:$0xff] }
 0xeea   :  { %v2361_v16 = vpop.f32.mrb[18].mxu1 }
 0xeeb   :  { %v2362_v17 = vadd.f32 %v2361_v16, %v2288_v33  ;;  %v2363_v55 = vpop.f32.mrb[19].mxu1 }
 0xeec   :  { %v2364_v18 = vadd.f32 %v2363_v55, %v2289_v15 }
 0xeed   :  { %v2366_v36 = vmax.f32 %v2362_v17, 0.0 }
 0xeee   :  { %v2367_v57 = vmax.f32 %v2364_v18, 0.0 }
 0xeef   :  { %2440 = vst.msk [vmem:[#allocation4] sm:$0x3] %vm270_vm2, %v2366_v36  ;;  %2446 = vrot.lane.b32.xlu1 %v2366_v36, %s3649_s11  ;;  %2442 = vrot.lane.b32.xlu0 %v2366_v36, %s3652_s20 }
 0xef0   :  { %2470 = vst.msk [vmem:[#allocation4 + $0x10] sm:$0x3] %vm270_vm2, %v2367_v57 }
 0xef3   :  { %2454 = vrot.lane.b32.xlu1 %v2366_v36, %s3645_s30  ;;  %2450 = vrot.lane.b32.xlu0 %v2366_v36, %s3647_s10 }
 0xef7   :  { %2462 = vrot.lane.b32.xlu1 %v2366_v36, %s3651_s13  ;;  %2458 = vrot.lane.b32.xlu0 %v2366_v36, %s3646_s0 }
 0xefb   :  { %2472 = vrot.lane.b32.xlu1 %v2367_v57, %s3652_s20  ;;  %2466 = vrot.lane.b32.xlu0 %v2366_v36, %s3650_s12 }
 0xeff   :  { %2480 = vrot.lane.b32.xlu1 %v2367_v57, %s3647_s10  ;;  %2476 = vrot.lane.b32.xlu0 %v2367_v57, %s3649_s11 }
 0xf03   :  { %2488 = vrot.lane.b32.xlu1 %v2367_v57, %s3646_s0  ;;  %2484 = vrot.lane.b32.xlu0 %v2367_v57, %s3645_s30 }
 0xf07   :  { %2496 = vrot.lane.b32.xlu1 %v2367_v57, %s3650_s12  ;;  %2492 = vrot.lane.b32.xlu0 %v2367_v57, %s3651_s13 }
 0xf0b   :  { %2368 = vrot.lane.b32.xlu1 %v1064_v28, %s3651_s13  ;;  %2512 = vrot.lane.b32.xlu0 %v2822_v24, %s3651_s13 }
 0xf0f   :  { %2376 = vrot.lane.b32.xlu1 %v4184_v49, %s3651_s13  ;;  %2372 = vrot.lane.b32.xlu0 %v4101_v54, %s3651_s13  ;;  %v3444_v54 = vpack.c.bf16 %v2617_v21, %v2616_v26 }
 0xf11   :  { %3445 = vmatprep.subr.bf16.mxu0 %v3444_v54 }
 0xf13   :  { %2384 = vrot.lane.b32.xlu1 %v4226_v44, %s3647_s10  ;;  %2380 = vrot.lane.b32.xlu0 %v4222_v34, %s3647_s10 }
 0xf17   :  { %2392 = vrot.lane.b32.xlu1 %v4271_v20, %s3649_s11  ;;  %2388 = vrot.lane.b32.xlu0 %v4250_v4, %s3649_s11 }
 0xf1b   :  { %2395 = vrot.lane.b32.xlu1 %v4286_v1, %s3647_s10  ;;  %2402 = vrot.lane.b32.xlu0 %v4431_v19, %s3658_s1 }
 0xf1f   :  { %2398 = vrot.lane.b32.xlu1 %v4235_v56, %s3657_s19  ;;  %2406 = vrot.lane.b32.xlu0 %v2131_v10, %s3656_s18 }
 0xf61   :  { %v2447_v49 = vpop.permute.xlu1 %2446  ;;  %v2443_v28 = vpop.permute.xlu0 %2442 }
 0xf62   :  { %2449 = vst.msk [vmem:[#allocation4 + $0x4] sm:$0x3] %vm270_vm2, %v2447_v49  ;;  %2445 = vst.msk [vmem:[#allocation4 + $0x2] sm:$0x3] %vm270_vm2, %v2443_v28 }
 0xf65   :  { %v2455_v34 = vpop.permute.xlu1 %2454  ;;  %v2451_v44 = vpop.permute.xlu0 %2450 }
 0xf66   :  { %2457 = vst.msk [vmem:[#allocation4 + $0x8] sm:$0x3] %vm270_vm2, %v2455_v34  ;;  %2453 = vst.msk [vmem:[#allocation4 + $0x6] sm:$0x3] %vm270_vm2, %v2451_v44 }
 0xf69   :  { %v2463_v4 = vpop.permute.xlu1 %2462  ;;  %v2459_v20 = vpop.permute.xlu0 %2458 }
 0xf6a   :  { %2465 = vst.msk [vmem:[#allocation4 + $0xc] sm:$0x3] %vm270_vm2, %v2463_v4  ;;  %2461 = vst.msk [vmem:[#allocation4 + $0xa] sm:$0x3] %vm270_vm2, %v2459_v20 }
 0xf6d   :  { %v2473_v56 = vpop.permute.xlu1 %2472  ;;  %v2467_v1 = vpop.permute.xlu0 %2466  ;;  %v2500_v19 = vld [vmem:[#allocation4] sm:$0xff] }
 0xf6e   :  { %2475 = vst.msk [vmem:[#allocation4 + $0x12] sm:$0x3] %vm270_vm2, %v2473_v56  ;;  %2469 = vst.msk [vmem:[#allocation4 + $0xe] sm:$0x3] %vm270_vm2, %v2467_v1  ;;  %3221 = vmatprep.mubr.msk.f32.mxu0 %vm800_vm11, %v2500_v19 }
 0xf71   :  { %v2481_v35 = vpop.permute.xlu1 %2480  ;;  %v2477_v37 = vpop.permute.xlu0 %2476 }
 0xf72   :  { %2483 = vst.msk [vmem:[#allocation4 + $0x16] sm:$0x3] %vm270_vm2, %v2481_v35  ;;  %2479 = vst.msk [vmem:[#allocation4 + $0x14] sm:$0x3] %vm270_vm2, %v2477_v37 }
 0xf75   :  { %v2489_v29 = vpop.permute.xlu1 %2488  ;;  %v2485_v32 = vpop.permute.xlu0 %2484  ;;  %v2501_v40 = vld [vmem:[#allocation4 + $0x8] sm:$0xff] }
 0xf76   :  { %2491 = vst.msk [vmem:[#allocation4 + $0x1a] sm:$0x3] %vm270_vm2, %v2489_v29  ;;  %2487 = vst.msk [vmem:[#allocation4 + $0x18] sm:$0x3] %vm270_vm2, %v2485_v32  ;;  %3222 = vmatmul.mubr.msk.f32.vlgmr.msra.gmra.mrb[22].mxu0 %vm800_vm11, %v2501_v40 }
 0xf77   :  { %3447 = vmatpush3.bf16.msra.mxu0 %v3444_v54 }
 0xf79   :  { %v2497_v41 = vpop.permute.xlu1 %2496  ;;  %v2493_v42 = vpop.permute.xlu0 %2492  ;;  %v2502_v43 = vld [vmem:[#allocation4 + $0x10] sm:$0xff] }
 0xf7a   :  { %2499 = vst.msk [vmem:[#allocation4 + $0x1e] sm:$0x3] %vm270_vm2, %v2497_v41  ;;  %2495 = vst.msk [vmem:[#allocation4 + $0x1c] sm:$0x3] %vm270_vm2, %v2493_v42  ;;  %3224 = vmatprep.mubr.msk.f32.mxu0 %vm800_vm11, %v2502_v43  ;;  %vm2415_vm2 = vcmask 719872  }
 0xf7d   :  { %v2369_v46 = vpop.permute.xlu1 %2368  ;;  %v2513_v47 = vpop.permute.xlu0 %2512 }
 0xf7e   :  { %v2409_v50 = vsel %vm264_vm1, %v4104_v58, %v2369_v46 }
 0xf81   :  { %v2377_v38 = vpop.permute.xlu1 %2376  ;;  %v2373_v39 = vpop.permute.xlu0 %2372  ;;  %v2503_v48 = vld [vmem:[#allocation4 + $0x18] sm:$0xff] }
 0xf82   :  { %3225 = vmatmul.mubr.msk.f32.gmra.mrb[24].mxu0 %vm800_vm11, %v2503_v48  ;;  %v2410_v51 = vsel %vm50_vm0, %v2409_v50, %v2373_v39 }
 0xf83   :  { %v2412_v22 = vsel %vm2411_vm15, %v2410_v51, %v2377_v38 }
 0xf85   :  { %v2385_v52 = vpop.permute.xlu1 %2384  ;;  %v2381_v53 = vpop.permute.xlu0 %2380 }
 0xf86   :  { %v2414_v61 = vsel %vm2413_vm3, %v2412_v22, %v2381_v53 }
 0xf87   :  { %v2416_v45 = vsel %vm2415_vm2, %v2414_v61, %v2385_v52 }
 0xf89   :  { %v2393_v62 = vpop.permute.xlu1 %2392  ;;  %v2389_v2 = vpop.permute.xlu0 %2388 }
 0xf8a   :  { %v2417_v5 = vsel %vm2249_vm14, %v2416_v45, %v2389_v2 }
 0xf8b   :  { %v2419_v58 = vsel %vm2418_vm4, %v2417_v5, %v2393_v62 }
 0xf8d   :  { %v2396_v31 = vpop.permute.xlu1 %2395  ;;  %v2403_v6 = vpop.permute.xlu0 %2402 }
 0xf8e   :  { %v2421_v59 = vsel %vm2420_vm5, %v2419_v58, %v2396_v31  ;;  %v2424_v60 = vsel %vm1576_vm12, %v4369_v0, %v2403_v6  ;;  %v3448_v0 = vpack.c.bf16 %v2619_v13, %v2618_v12 }
 0xf90   :  { %3449 = vmatprep.subr.bf16.mxu0 %v3448_v0 }
 0xf91   :  { %v2399_v3 = vpop.permute.xlu1 %2398  ;;  %v2407_v7 = vpop.permute.xlu0 %2406  ;;  %3451 = vmatpush3.bf16.msra.mxu0 %v3448_v0 }
 0xf92   :  { %v2423_v8 = vsel %vm2422_vm6, %v2421_v59, %v2399_v3  ;;  %v2426_v9 = vsel %vm2425_vm7, %v2424_v60, %v2407_v7 }
 0xf93   :  { %v2427_v10 = vsel %vm2411_vm15, %v2426_v9, 0.0 }
 0xf94   :  { %v2430_v11 = vcombine.low %v2423_v8, %v2427_v10 }
 0xf96   :  { %2821 = vst.sshfl [vmem:[%s4634_s8] sm:$0x33 pattern:$0x76325410] %v2430_v11 }
0x1049   :  { %v3223_v63 = vpop.f32.mrb[22].mxu0 }
0x104a   :  { %v2599_v27 = vadd.f32 %v3223_v63, %v2513_v47  ;;  %v2593_v14 = vpop.f32.mrb[23].mxu0 }
0x104b   :  { %v2594_v33 = vadd.f32 %v2593_v14, %v2513_v47 }
0x104c   :  { %v2613_v16 = vmax.f32 %v2599_v27, 0.0 }
0x104d   :  { %v2612_v15 = vmax.f32 %v2594_v33, 0.0 }
0x104f   :  { %3235 = vmatprep.mubr.msk.f32.mxu0 %vm264_vm1, %v2612_v15 }
0x1050   :  { %3236 = vmatmul.mubr.msk.f32.vlgmr.msra.gmra.mrb[26].mxu0 %vm264_vm1, %v2613_v16 }
0x1055   :  { %v3226_v17 = vpop.f32.mrb[24].mxu0 }
0x1056   :  { %v2609_v55 = vadd.f32 %v3226_v17, %v2513_v47  ;;  %v2603_v18 = vpop.f32.mrb[25].mxu0 }
0x1057   :  { %v2604_v36 = vadd.f32 %v2603_v18, %v2513_v47 }
0x1058   :  { %v2615_v23 = vmax.f32 %v2609_v55, 0.0 }
0x1059   :  { %v2614_v57 = vmax.f32 %v2604_v36, 0.0 }
0x105b   :  { %3238 = vmatprep.mubr.msk.f32.mxu0 %vm264_vm1, %v2614_v57 }
0x105c   :  { %3239 = vmatmul.mubr.msk.f32.gmra.mrb[28].mxu0 %vm264_vm1, %v2615_v23 }
0x1123   :  { %v3237_v30 = vpop.f32.mrb[26].mxu0 }
0x1124   :  { %v2711_v24 = vadd.f32 %v3237_v30, %v2827_v25  ;;  %v2705_v26 = vpop.f32.mrb[27].mxu0 }
0x1125   :  { %v2706_v21 = vadd.f32 %v2827_v25, %v2705_v26 }
0x1126   :  { %v2725_v54 = vsub.f32 0.0, %v2711_v24 }
0x1127   :  { %v2724_v49 = vsub.f32 0.0, %v2706_v21 }
0x1128   :  { %v2730_v28 = vmul.f32 1.442695, %v2725_v54 }
0x1129   :  { %v2728_v34 = vmul.f32 1.442695, %v2724_v49 }
0x112a   :  { %3629 = vpow2.f32 %v2730_v28 }
0x112b   :  { %3631 = vpow2.f32 %v2728_v34 }
0x112f   :  { %v3240_v44 = vpop.f32.mrb[28].mxu0 }
0x1130   :  { %v2721_v4 = vadd.f32 %v3240_v44, %v2827_v25  ;;  %v2715_v20 = vpop.f32.mrb[29].mxu0 }
0x1131   :  { %v2716_v56 = vadd.f32 %v2827_v25, %v2715_v20 }
0x1132   :  { %v2727_v1 = vsub.f32 0.0, %v2721_v4 }
0x1133   :  { %v2726_v19 = vsub.f32 0.0, %v2716_v56 }
0x1134   :  { %v3630_v35 = vpop.eup %3629  ;;  %v2734_v37 = vmul.f32 1.442695, %v2727_v1 }
0x1135   :  { %v3632_v29 = vpop.eup %3631  ;;  %v2737_v32 = vadd.f32 1.0, %v3630_v35  ;;  %v2732_v40 = vmul.f32 1.442695, %v2726_v19 }
0x1136   :  { %v2736_v41 = vadd.f32 1.0, %v3632_v29  ;;  %3633 = vpow2.f32 %v2734_v37 }
0x1137   :  { %3635 = vrcp.f32 %v2737_v32 }
0x1138   :  { %3637 = vrcp.f32 %v2736_v41 }
0x1139   :  { %3639 = vpow2.f32 %v2732_v40 }
0x1140   :  { %v3634_v42 = vpop.eup %3633 }
0x1141   :  { %v3636_v43 = vpop.eup %3635  ;;  %v2739_v46 = vadd.f32 1.0, %v3634_v42 }
0x1142   :  { %v3638_v47 = vpop.eup %3637  ;;  %2754 = vrot.lane.b32.xlu1 %v3636_v43, %s3645_s30 }
0x1143   :  { %v3640_v38 = vpop.eup %3639  ;;  %3641 = vrcp.f32 %v2739_v46  ;;  %2752 = vrot.lane.b32.xlu0 %v3638_v47, %s3645_s30 }
0x1144   :  { %v2738_v39 = vadd.f32 1.0, %v3640_v38 }
0x1146   :  { %3643 = vrcp.f32 %v2738_v39 }
0x114d   :  { %v3642_v48 = vpop.eup %3641 }
0x114e   :  { %2758 = vrot.lane.b32.xlu1 %v3642_v48, %s3645_s30 }
0x1150   :  { %v3644_v50 = vpop.eup %3643 }
0x1151   :  { %2756 = vrot.lane.b32.xlu0 %v3644_v50, %s3645_s30 }
0x11b4   :  { %v2755_v51 = vpop.permute.xlu1 %2754 }
0x11b5   :  { %v2765_v52 = vsel %vm50_vm0, %v2711_v24, %v2755_v51  ;;  %v2753_v53 = vpop.permute.xlu0 %2752 }
0x11b6   :  { %2769 = vst [vmem:[%s4635_s9 + $0x8] sm:$0xff] %v2765_v52  ;;  %v2764_v22 = vsel %vm50_vm0, %v2706_v21, %v2753_v53 }
0x11b7   :  { %2768 = vst [vmem:[%s4635_s9] sm:$0xff] %v2764_v22 }
0x11c0   :  { %v2759_v61 = vpop.permute.xlu1 %2758 }
0x11c1   :  { %v2767_v62 = vsel %vm50_vm0, %v2721_v4, %v2759_v61 }
0x11c2   :  { %2771 = vst [vmem:[%s4635_s9 + $0x18] sm:$0xff] %v2767_v62 }
0x11c3   :  { %v2757_v2 = vpop.permute.xlu0 %2756 }
0x11c4   :  { %v2766_v45 = vsel %vm50_vm0, %v2716_v56, %v2757_v2 }
0x11c5   :  { %2770 = vst [vmem:[%s4635_s9 + $0x10] sm:$0xff] %v2766_v45 }

</bundles_post_ra>
